<compile_context>
chip_gen: v7x
topology: tpu7x:2x2x1
jax: 0.10.0
libtpu: 0.0.40
codegen_flags: <defaults>
</compile_context>

<pallas_src>
import math

import jax
import jax.numpy as jnp
from jax.experimental import pallas as pl
from jax.experimental.pallas import tpu as pltpu

# ----------------------------- config (small, forward-consistent) -----------------
SAMPLE_SIZE = 16
PATCH_SIZE = 4
CHANNELS = 3
D_MODEL = 32
LATENT_CHANNELS = 4
N_LATENTS = 8            # config.latent_size
N_LAYERS = 2
N_HEADS = 4
BATCH = 2

N_TOKENS = (SAMPLE_SIZE // PATCH_SIZE) ** 2      # 16
SEQ = N_TOKENS + N_LATENTS                       # 24
HEAD_DIM = D_MODEL // N_HEADS                    # 8
MLP_DIM = 4 * D_MODEL                            # 128
PATCH_OUT = CHANNELS * PATCH_SIZE * PATCH_SIZE   # 48
PATCH_OUT_PAD = 128                              # lane-dense padded output width
ROWS = BATCH * SEQ                               # 48 (batch merged into rows)
LN_EPS = 1e-5


# ----------------------------- in-kernel helpers ----------------------------------
def _layernorm(x, w, b):
    mu = jnp.mean(x, axis=-1, keepdims=True)
    xc = x - mu
    var = jnp.mean(xc * xc, axis=-1, keepdims=True)
    return xc * jax.lax.rsqrt(var + LN_EPS) * w + b


def _gelu(x):
    # tanh-approximate GELU (torch default is exact erf; acknowledged assumption)
    return 0.5 * x * (1.0 + jnp.tanh(0.7978845608028654 * (x + 0.044715 * x * x * x)))


# ----------------------------- fused decoder kernel --------------------------------
def decoder_kernel(z_ref, w_in_ref, img_ref, pos_ref,
                   ln1w_ref, ln1b_ref, wq_ref, bq_ref, wk_ref, bk_ref,
                   wv_ref, bv_ref, wo_ref, bo_ref, ln2w_ref, ln2b_ref,
                   w1_ref, b1_ref, w2_ref, b2_ref,
                   olnw_ref, olnb_ref, wout_ref, bout_ref,
                   o_ref, x_sc, attn_sc):
    # ---- prologue: proj_in(z), concat [z, image_tokens], + learned pos enc -------
    zp = jnp.dot(z_ref[...].astype(jnp.bfloat16), w_in_ref[...],
                 preferred_element_type=jnp.float32)              # (B*NL, D) f32
    pos = pos_ref[...]                                            # (SEQ, D)
    pos_lat = pos[:N_LATENTS, :]                                  # hoisted once
    img_pos = img_ref[...] + pos[N_LATENTS:, :]                   # hoisted once
    for b in range(BATCH):
        r0 = b * SEQ
        x_sc[r0:r0 + N_LATENTS, :] = (
            zp[b * N_LATENTS:(b + 1) * N_LATENTS, :] + pos_lat)
        x_sc[r0 + N_LATENTS:r0 + SEQ, :] = img_pos

    # activation stays in registers for the rest of the kernel
    x = x_sc[...]                                                 # (ROWS, D) f32

    # ---- stacked transformer (layers statically unrolled, x register-resident) ----
    for l in range(N_LAYERS):
        # attention: batch-merged projections, per-(batch, head) score/value matmuls
        h = _layernorm(x, ln1w_ref[l], ln1b_ref[l]).astype(jnp.bfloat16)
        q = jnp.dot(h, wq_ref[l], preferred_element_type=jnp.float32) + bq_ref[l]
        k = jnp.dot(h, wk_ref[l], preferred_element_type=jnp.float32) + bk_ref[l]
        v = jnp.dot(h, wv_ref[l], preferred_element_type=jnp.float32) + bv_ref[l]
        qb = q.astype(jnp.bfloat16)
        kb = k.astype(jnp.bfloat16)
        vb = v.astype(jnp.bfloat16)
        for b in range(BATCH):                                    # static unroll
            r0 = b * SEQ
            for hd in range(N_HEADS):                             # static unroll
                c0 = hd * HEAD_DIM
                qh = qb[r0:r0 + SEQ, c0:c0 + HEAD_DIM]
                kh = kb[r0:r0 + SEQ, c0:c0 + HEAD_DIM]
                vh = vb[r0:r0 + SEQ, c0:c0 + HEAD_DIM]
                # q @ k^T (scale already folded into w_q/b_q at init)
                s = jax.lax.dot_general(qh, kh, (((1,), (1,)), ((), ())),
                                        preferred_element_type=jnp.float32)
                s = s - jnp.max(s, axis=-1, keepdims=True)
                e = jnp.exp(s)
                p = e * pl.reciprocal(jnp.sum(e, axis=-1, keepdims=True), approx=True)
                # write head output straight into its lane slice (no concatenate)
                attn_sc[r0:r0 + SEQ, c0:c0 + HEAD_DIM] = jnp.dot(
                    p.astype(jnp.bfloat16), vh, preferred_element_type=jnp.float32)
        a = jnp.dot(attn_sc[...].astype(jnp.bfloat16), wo_ref[l],
                    preferred_element_type=jnp.float32) + bo_ref[l]
        x = x + a

        # mlp (batch merged)
        h2 = _layernorm(x, ln2w_ref[l], ln2b_ref[l]).astype(jnp.bfloat16)
        m = jnp.dot(h2, w1_ref[l], preferred_element_type=jnp.float32) + b1_ref[l]
        m = _gelu(m).astype(jnp.bfloat16)
        m = jnp.dot(m, w2_ref[l], preferred_element_type=jnp.float32) + b2_ref[l]
        x = x + m

    # ---- PatchProjOut core: LN + Linear (output lanes padded to 128) -------------
    # LN+matmul applied to all rows (latent rows are extra throwaway work, ~33% of a
    # tiny matmul), then only image-token rows are stored -> lane-dense HBM writes.
    y = _layernorm(x, olnw_ref[...], olnb_ref[...]).astype(jnp.bfloat16)
    y = jnp.dot(y, wout_ref[...], preferred_element_type=jnp.float32) + bout_ref[...]
    for b in range(BATCH):
        o_ref[b * N_TOKENS:(b + 1) * N_TOKENS, :] = \
            y[b * SEQ + N_LATENTS:(b + 1) * SEQ, :]


# ----------------------------- pallas_call wrapper ---------------------------------
def run_decoder(z2, p):
    def full(shape):
        return pl.BlockSpec(shape, lambda i: (0,) * len(shape))

    args = (z2, p["w_in"], p["image_tokens"], p["pos"],
            p["ln1_w"], p["ln1_b"], p["w_q"], p["b_q"], p["w_k"], p["b_k"],
            p["w_v"], p["b_v"], p["w_o"], p["b_o"], p["ln2_w"], p["ln2_b"],
            p["w_mlp1"], p["b_mlp1"], p["w_mlp2"], p["b_mlp2"],
            p["out_ln_w"], p["out_ln_b"], p["w_out"], p["b_out"])

    return pl.pallas_call(
        decoder_kernel,
        grid=(1,),
        in_specs=[full(a.shape) for a in args],
        out_specs=pl.BlockSpec((BATCH * N_TOKENS, PATCH_OUT_PAD), lambda i: (0, 0)),
        out_shape=jax.ShapeDtypeStruct((BATCH * N_TOKENS, PATCH_OUT_PAD), jnp.float32),
        scratch_shapes=[
            pltpu.VMEM((ROWS, D_MODEL), jnp.float32),   # prologue-assembled activation
            pltpu.VMEM((ROWS, D_MODEL), jnp.float32),   # per-head attention output
        ],
        compiler_params=pltpu.CompilerParams(dimension_semantics=("arbitrary",)),
    )(*args)


# ----------------------------- parameters (deterministic, synthetic) ---------------
def init_params(key):
    ks = iter(jax.random.split(key, 64))
    nrm = lambda shape, std=0.02: jax.random.normal(next(ks), shape, jnp.float32) * std
    bf16 = lambda a: a.astype(jnp.bfloat16)
    scale = 1.0 / math.sqrt(HEAD_DIM)

    w_out_core = nrm((D_MODEL, PATCH_OUT))
    w_out_pad = jnp.zeros((D_MODEL, PATCH_OUT_PAD), jnp.float32)
    w_out_pad = w_out_pad.at[:, :PATCH_OUT].set(w_out_core)

    p = {
        # MXU operands stored bf16; adds / norms / biases stay f32.
        "w_in": bf16(nrm((LATENT_CHANNELS, D_MODEL))),            # proj_in (no bias)
        "image_tokens": nrm((N_TOKENS, D_MODEL)),
        "pos": nrm((SEQ, D_MODEL)),
        # per-layer params stacked on a leading layer axis
        "ln1_w": jnp.ones((N_LAYERS, 1, D_MODEL), jnp.float32),
        "ln1_b": jnp.zeros((N_LAYERS, 1, D_MODEL), jnp.float32),
        "w_q": bf16(nrm((N_LAYERS, D_MODEL, D_MODEL)) * scale),   # 1/sqrt(dh) folded
        "b_q": jnp.zeros((N_LAYERS, 1, D_MODEL), jnp.float32),    # (zero, scale no-op)
        "w_k": bf16(nrm((N_LAYERS, D_MODEL, D_MODEL))),
        "b_k": jnp.zeros((N_LAYERS, 1, D_MODEL), jnp.float32),
        "w_v": bf16(nrm((N_LAYERS, D_MODEL, D_MODEL))),
        "b_v": jnp.zeros((N_LAYERS, 1, D_MODEL), jnp.float32),
        "w_o": bf16(nrm((N_LAYERS, D_MODEL, D_MODEL))),
        "b_o": jnp.zeros((N_LAYERS, 1, D_MODEL), jnp.float32),
        "ln2_w": jnp.ones((N_LAYERS, 1, D_MODEL), jnp.float32),
        "ln2_b": jnp.zeros((N_LAYERS, 1, D_MODEL), jnp.float32),
        "w_mlp1": bf16(nrm((N_LAYERS, D_MODEL, MLP_DIM))),
        "b_mlp1": jnp.zeros((N_LAYERS, 1, MLP_DIM), jnp.float32),
        "w_mlp2": bf16(nrm((N_LAYERS, MLP_DIM, D_MODEL))),
        "b_mlp2": jnp.zeros((N_LAYERS, 1, D_MODEL), jnp.float32),
        # PatchProjOut: LN + Linear, output lanes zero-padded 48 -> 128
        "out_ln_w": jnp.ones((1, D_MODEL), jnp.float32),
        "out_ln_b": jnp.zeros((1, D_MODEL), jnp.float32),
        "w_out": bf16(w_out_pad),
        "b_out": jnp.zeros((1, PATCH_OUT_PAD), jnp.float32),
    }
    return p


# ----------------------------- full decoder forward --------------------------------
def decoder_forward(z, params):
    B = z.shape[0]
    z2 = z.reshape(B * N_LATENTS, LATENT_CHANNELS)
    y = run_decoder(z2, params)                                  # (B*n_tok, 128) dense
    # drop the lane padding, unpatchify to NCHW (JAX glue in the wrapper)
    y = y.reshape(B, N_TOKENS, PATCH_OUT_PAD)[:, :, :PATCH_OUT]
    g = SAMPLE_SIZE // PATCH_SIZE
    y = y.reshape(B, g, g, CHANNELS, PATCH_SIZE, PATCH_SIZE)
    y = y.transpose(0, 3, 1, 4, 2, 5).reshape(B, CHANNELS, SAMPLE_SIZE, SAMPLE_SIZE)
    return y


# ----------------------------- main -------------------------------------------------
if __name__ == "__main__":
    key = jax.random.PRNGKey(0)
    k_param, k_z = jax.random.split(key)
    params = init_params(k_param)
    z = jax.random.normal(k_z, (BATCH, N_LATENTS, LATENT_CHANNELS), jnp.float32)

    out = decoder_forward(z, params)
    out = jax.block_until_ready(out)

    assert out.shape == (BATCH, CHANNELS, SAMPLE_SIZE, SAMPLE_SIZE), out.shape
    assert bool(jnp.all(jnp.isfinite(out)))
    print("KERNEL_OK")
</pallas_src>

<mosaic_0001>
module attributes {stable_mosaic.version = 11 : i64} {
  func.func @decoder_kernel(%arg0: i32, %arg1: memref<16x4xf32, #tpu.memory_space<vmem>>, %arg2: memref<4x32xbf16, #tpu.memory_space<vmem>>, %arg3: memref<16x32xf32, #tpu.memory_space<vmem>>, %arg4: memref<24x32xf32, #tpu.memory_space<vmem>>, %arg5: memref<2x1x32xf32, #tpu.memory_space<vmem>>, %arg6: memref<2x1x32xf32, #tpu.memory_space<vmem>>, %arg7: memref<2x32x32xbf16, #tpu.memory_space<vmem>>, %arg8: memref<2x1x32xf32, #tpu.memory_space<vmem>>, %arg9: memref<2x32x32xbf16, #tpu.memory_space<vmem>>, %arg10: memref<2x1x32xf32, #tpu.memory_space<vmem>>, %arg11: memref<2x32x32xbf16, #tpu.memory_space<vmem>>, %arg12: memref<2x1x32xf32, #tpu.memory_space<vmem>>, %arg13: memref<2x32x32xbf16, #tpu.memory_space<vmem>>, %arg14: memref<2x1x32xf32, #tpu.memory_space<vmem>>, %arg15: memref<2x1x32xf32, #tpu.memory_space<vmem>>, %arg16: memref<2x1x32xf32, #tpu.memory_space<vmem>>, %arg17: memref<2x32x128xbf16, #tpu.memory_space<vmem>>, %arg18: memref<2x1x128xf32, #tpu.memory_space<vmem>>, %arg19: memref<2x128x32xbf16, #tpu.memory_space<vmem>>, %arg20: memref<2x1x32xf32, #tpu.memory_space<vmem>>, %arg21: memref<1x32xf32, #tpu.memory_space<vmem>>, %arg22: memref<1x32xf32, #tpu.memory_space<vmem>>, %arg23: memref<32x128xbf16, #tpu.memory_space<vmem>>, %arg24: memref<1x128xf32, #tpu.memory_space<vmem>>, %arg25: memref<32x128xf32, #tpu.memory_space<vmem>>, %arg26: memref<48x32xf32, #tpu.memory_space<vmem>>, %arg27: memref<48x32xf32, #tpu.memory_space<vmem>>) attributes {dimension_semantics = [#tpu.dimension_semantics<arbitrary>], iteration_bounds = array<i64: 1>, scalar_prefetch = 0 : i64, scratch_operands = 2 : i64, tpu.core_type = #tpu.core_type<tc>, window_params = [{pipeline_mode = #tpu.pipeline_mode<synchronous>, transform_indices = @transform_0, window_bounds = array<i64: 16, 4>}, {pipeline_mode = #tpu.pipeline_mode<synchronous>, transform_indices = @transform_1, window_bounds = array<i64: 4, 32>}, {pipeline_mode = #tpu.pipeline_mode<synchronous>, transform_indices = @transform_2, window_bounds = array<i64: 16, 32>}, {pipeline_mode = #tpu.pipeline_mode<synchronous>, transform_indices = @transform_3, window_bounds = array<i64: 24, 32>}, {pipeline_mode = #tpu.pipeline_mode<synchronous>, transform_indices = @transform_4, window_bounds = array<i64: 2, 1, 32>}, {pipeline_mode = #tpu.pipeline_mode<synchronous>, transform_indices = @transform_5, window_bounds = array<i64: 2, 1, 32>}, {pipeline_mode = #tpu.pipeline_mode<synchronous>, transform_indices = @transform_6, window_bounds = array<i64: 2, 32, 32>}, {pipeline_mode = #tpu.pipeline_mode<synchronous>, transform_indices = @transform_7, window_bounds = array<i64: 2, 1, 32>}, {pipeline_mode = #tpu.pipeline_mode<synchronous>, transform_indices = @transform_8, window_bounds = array<i64: 2, 32, 32>}, {pipeline_mode = #tpu.pipeline_mode<synchronous>, transform_indices = @transform_9, window_bounds = array<i64: 2, 1, 32>}, {pipeline_mode = #tpu.pipeline_mode<synchronous>, transform_indices = @transform_10, window_bounds = array<i64: 2, 32, 32>}, {pipeline_mode = #tpu.pipeline_mode<synchronous>, transform_indices = @transform_11, window_bounds = array<i64: 2, 1, 32>}, {pipeline_mode = #tpu.pipeline_mode<synchronous>, transform_indices = @transform_12, window_bounds = array<i64: 2, 32, 32>}, {pipeline_mode = #tpu.pipeline_mode<synchronous>, transform_indices = @transform_13, window_bounds = array<i64: 2, 1, 32>}, {pipeline_mode = #tpu.pipeline_mode<synchronous>, transform_indices = @transform_14, window_bounds = array<i64: 2, 1, 32>}, {pipeline_mode = #tpu.pipeline_mode<synchronous>, transform_indices = @transform_15, window_bounds = array<i64: 2, 1, 32>}, {pipeline_mode = #tpu.pipeline_mode<synchronous>, transform_indices = @transform_16, window_bounds = array<i64: 2, 32, 128>}, {pipeline_mode = #tpu.pipeline_mode<synchronous>, transform_indices = @transform_17, window_bounds = array<i64: 2, 1, 128>}, {pipeline_mode = #tpu.pipeline_mode<synchronous>, transform_indices = @transform_18, window_bounds = array<i64: 2, 128, 32>}, {pipeline_mode = #tpu.pipeline_mode<synchronous>, transform_indices = @transform_19, window_bounds = array<i64: 2, 1, 32>}, {pipeline_mode = #tpu.pipeline_mode<synchronous>, transform_indices = @transform_20, window_bounds = array<i64: 1, 32>}, {pipeline_mode = #tpu.pipeline_mode<synchronous>, transform_indices = @transform_21, window_bounds = array<i64: 1, 32>}, {pipeline_mode = #tpu.pipeline_mode<synchronous>, transform_indices = @transform_22, window_bounds = array<i64: 32, 128>}, {pipeline_mode = #tpu.pipeline_mode<synchronous>, transform_indices = @transform_23, window_bounds = array<i64: 1, 128>}, {pipeline_mode = #tpu.pipeline_mode<synchronous>, transform_indices = @transform_24, window_bounds = array<i64: 32, 128>}]} {
    %c0 = arith.constant 0 : index
    %c0_0 = arith.constant 0 : index
    %0 = vector.load %arg1[%c0, %c0_0] : memref<16x4xf32, #tpu.memory_space<vmem>>, vector<16x4xf32>
    %1 = arith.truncf %0 : vector<16x4xf32> to vector<16x4xbf16>
    %c0_1 = arith.constant 0 : index
    %c0_2 = arith.constant 0 : index
    %2 = vector.load %arg2[%c0_1, %c0_2] : memref<4x32xbf16, #tpu.memory_space<vmem>>, vector<4x32xbf16>
    %cst = arith.constant dense<0.000000e+00> : vector<16x32xf32>
    %3 = tpu.matmul %1, %2, %cst {dimension_numbers = #tpu.dot_dimension_numbers<[1], [0], [0], [1], [0, 0, 1, 1], [], []>} : vector<16x4xbf16>, vector<4x32xbf16>, vector<16x32xf32> -> vector<16x32xf32>
    %c0_3 = arith.constant 0 : index
    %c0_4 = arith.constant 0 : index
    %4 = vector.load %arg4[%c0_3, %c0_4] : memref<24x32xf32, #tpu.memory_space<vmem>>, vector<24x32xf32>
    %5 = vector.extract_strided_slice %4 {offsets = [0, 0], sizes = [8, 32], strides = [1, 1]} : vector<24x32xf32> to vector<8x32xf32>
    %c0_5 = arith.constant 0 : index
    %c0_6 = arith.constant 0 : index
    %6 = vector.load %arg3[%c0_5, %c0_6] : memref<16x32xf32, #tpu.memory_space<vmem>>, vector<16x32xf32>
    %7 = vector.extract_strided_slice %4 {offsets = [8, 0], sizes = [16, 32], strides = [1, 1]} : vector<24x32xf32> to vector<16x32xf32>
    %8 = arith.addf %6, %7 : vector<16x32xf32>
    %9 = vector.extract_strided_slice %3 {offsets = [0, 0], sizes = [8, 32], strides = [1, 1]} : vector<16x32xf32> to vector<8x32xf32>
    %10 = arith.addf %9, %5 : vector<8x32xf32>
    %c0_7 = arith.constant 0 : index
    %c0_8 = arith.constant 0 : index
    %11 = vector.load %arg26[%c0_7, %c0_8] : memref<48x32xf32, #tpu.memory_space<vmem>>, vector<8x32xf32>
    tpu.vector_store %arg26[%c0_7, %c0_8], %10 {strides = array<i32>} : memref<48x32xf32, #tpu.memory_space<vmem>>, vector<8x32xf32>,
    %c8 = arith.constant 8 : index
    %c0_9 = arith.constant 0 : index
    %12 = vector.load %arg26[%c8, %c0_9] : memref<48x32xf32, #tpu.memory_space<vmem>>, vector<16x32xf32>
    tpu.vector_store %arg26[%c8, %c0_9], %8 {strides = array<i32>} : memref<48x32xf32, #tpu.memory_space<vmem>>, vector<16x32xf32>,
    %13 = vector.extract_strided_slice %3 {offsets = [8, 0], sizes = [8, 32], strides = [1, 1]} : vector<16x32xf32> to vector<8x32xf32>
    %14 = arith.addf %13, %5 : vector<8x32xf32>
    %c24 = arith.constant 24 : index
    %c0_10 = arith.constant 0 : index
    %15 = vector.load %arg26[%c24, %c0_10] : memref<48x32xf32, #tpu.memory_space<vmem>>, vector<8x32xf32>
    tpu.vector_store %arg26[%c24, %c0_10], %14 {strides = array<i32>} : memref<48x32xf32, #tpu.memory_space<vmem>>, vector<8x32xf32>,
    %c32 = arith.constant 32 : index
    %c0_11 = arith.constant 0 : index
    %16 = vector.load %arg26[%c32, %c0_11] : memref<48x32xf32, #tpu.memory_space<vmem>>, vector<16x32xf32>
    tpu.vector_store %arg26[%c32, %c0_11], %8 {strides = array<i32>} : memref<48x32xf32, #tpu.memory_space<vmem>>, vector<16x32xf32>,
    %c0_12 = arith.constant 0 : index
    %c0_13 = arith.constant 0 : index
    %17 = vector.load %arg26[%c0_12, %c0_13] : memref<48x32xf32, #tpu.memory_space<vmem>>, vector<48x32xf32>
    %c0_14 = arith.constant 0 : index
    %c0_15 = arith.constant 0 : index
    %c0_16 = arith.constant 0 : index
    %18 = vector.load %arg5[%c0_14, %c0_15, %c0_16] : memref<2x1x32xf32, #tpu.memory_space<vmem>>, vector<1x1x32xf32>
    %19 = vector.shape_cast %18 : vector<1x1x32xf32> to vector<1x32xf32>
    %c0_17 = arith.constant 0 : index
    %c0_18 = arith.constant 0 : index
    %c0_19 = arith.constant 0 : index
    %20 = vector.load %arg6[%c0_17, %c0_18, %c0_19] : memref<2x1x32xf32, #tpu.memory_space<vmem>>, vector<1x1x32xf32>
    %21 = vector.shape_cast %20 : vector<1x1x32xf32> to vector<1x32xf32>
    %cst_20 = arith.constant dense<0.000000e+00> : vector<48xf32>
    %22 = vector.multi_reduction <add>, %17, %cst_20 [1] : vector<48x32xf32> to vector<48xf32>
    %23 = vector.shape_cast %22 : vector<48xf32> to vector<48x1xf32>
    %cst_21 = arith.constant 3.200000e+01 : f32
    %24 = vector.broadcast %cst_21 : f32 to vector<48x1xf32>
    %25 = arith.divf %23, %24 : vector<48x1xf32>
    %26 = vector.broadcast %25 : vector<48x1xf32> to vector<48x32xf32>
    %27 = arith.subf %17, %26 : vector<48x32xf32>
    %28 = arith.mulf %27, %27 : vector<48x32xf32>
    %cst_22 = arith.constant dense<0.000000e+00> : vector<48xf32>
    %29 = vector.multi_reduction <add>, %28, %cst_22 [1] : vector<48x32xf32> to vector<48xf32>
    %30 = vector.shape_cast %29 : vector<48xf32> to vector<48x1xf32>
    %cst_23 = arith.constant 3.200000e+01 : f32
    %31 = vector.broadcast %cst_23 : f32 to vector<48x1xf32>
    %32 = arith.divf %30, %31 : vector<48x1xf32>
    %cst_24 = arith.constant 9.99999974E-6 : f32
    %33 = vector.broadcast %cst_24 : f32 to vector<48x1xf32>
    %34 = arith.addf %32, %33 : vector<48x1xf32>
    %35 = math.rsqrt %34 : vector<48x1xf32>
    %36 = vector.broadcast %35 : vector<48x1xf32> to vector<48x32xf32>
    %37 = arith.mulf %27, %36 : vector<48x32xf32>
    %38 = vector.broadcast %19 : vector<1x32xf32> to vector<48x32xf32>
    %39 = arith.mulf %37, %38 : vector<48x32xf32>
    %40 = vector.broadcast %21 : vector<1x32xf32> to vector<48x32xf32>
    %41 = arith.addf %39, %40 : vector<48x32xf32>
    %42 = arith.truncf %41 : vector<48x32xf32> to vector<48x32xbf16>
    %c0_25 = arith.constant 0 : index
    %c0_26 = arith.constant 0 : index
    %c0_27 = arith.constant 0 : index
    %43 = vector.load %arg7[%c0_25, %c0_26, %c0_27] : memref<2x32x32xbf16, #tpu.memory_space<vmem>>, vector<1x32x32xbf16>
    %44 = vector.shape_cast %43 : vector<1x32x32xbf16> to vector<32x32xbf16>
    %cst_28 = arith.constant dense<0.000000e+00> : vector<48x32xf32>
    %45 = tpu.matmul %42, %44, %cst_28 {dimension_numbers = #tpu.dot_dimension_numbers<[1], [0], [0], [1], [0, 0, 1, 1], [], []>} : vector<48x32xbf16>, vector<32x32xbf16>, vector<48x32xf32> -> vector<48x32xf32>
    %c0_29 = arith.constant 0 : index
    %c0_30 = arith.constant 0 : index
    %c0_31 = arith.constant 0 : index
    %46 = vector.load %arg8[%c0_29, %c0_30, %c0_31] : memref<2x1x32xf32, #tpu.memory_space<vmem>>, vector<1x1x32xf32>
    %47 = vector.shape_cast %46 : vector<1x1x32xf32> to vector<1x32xf32>
    %48 = vector.broadcast %47 : vector<1x32xf32> to vector<48x32xf32>
    %49 = arith.addf %45, %48 : vector<48x32xf32>
    %c0_32 = arith.constant 0 : index
    %c0_33 = arith.constant 0 : index
    %c0_34 = arith.constant 0 : index
    %50 = vector.load %arg9[%c0_32, %c0_33, %c0_34] : memref<2x32x32xbf16, #tpu.memory_space<vmem>>, vector<1x32x32xbf16>
    %51 = vector.shape_cast %50 : vector<1x32x32xbf16> to vector<32x32xbf16>
    %cst_35 = arith.constant dense<0.000000e+00> : vector<48x32xf32>
    %52 = tpu.matmul %42, %51, %cst_35 {dimension_numbers = #tpu.dot_dimension_numbers<[1], [0], [0], [1], [0, 0, 1, 1], [], []>} : vector<48x32xbf16>, vector<32x32xbf16>, vector<48x32xf32> -> vector<48x32xf32>
    %c0_36 = arith.constant 0 : index
    %c0_37 = arith.constant 0 : index
    %c0_38 = arith.constant 0 : index
    %53 = vector.load %arg10[%c0_36, %c0_37, %c0_38] : memref<2x1x32xf32, #tpu.memory_space<vmem>>, vector<1x1x32xf32>
    %54 = vector.shape_cast %53 : vector<1x1x32xf32> to vector<1x32xf32>
    %55 = vector.broadcast %54 : vector<1x32xf32> to vector<48x32xf32>
    %56 = arith.addf %52, %55 : vector<48x32xf32>
    %c0_39 = arith.constant 0 : index
    %c0_40 = arith.constant 0 : index
    %c0_41 = arith.constant 0 : index
    %57 = vector.load %arg11[%c0_39, %c0_40, %c0_41] : memref<2x32x32xbf16, #tpu.memory_space<vmem>>, vector<1x32x32xbf16>
    %58 = vector.shape_cast %57 : vector<1x32x32xbf16> to vector<32x32xbf16>
    %cst_42 = arith.constant dense<0.000000e+00> : vector<48x32xf32>
    %59 = tpu.matmul %42, %58, %cst_42 {dimension_numbers = #tpu.dot_dimension_numbers<[1], [0], [0], [1], [0, 0, 1, 1], [], []>} : vector<48x32xbf16>, vector<32x32xbf16>, vector<48x32xf32> -> vector<48x32xf32>
    %c0_43 = arith.constant 0 : index
    %c0_44 = arith.constant 0 : index
    %c0_45 = arith.constant 0 : index
    %60 = vector.load %arg12[%c0_43, %c0_44, %c0_45] : memref<2x1x32xf32, #tpu.memory_space<vmem>>, vector<1x1x32xf32>
    %61 = vector.shape_cast %60 : vector<1x1x32xf32> to vector<1x32xf32>
    %62 = vector.broadcast %61 : vector<1x32xf32> to vector<48x32xf32>
    %63 = arith.addf %59, %62 : vector<48x32xf32>
    %64 = arith.truncf %49 : vector<48x32xf32> to vector<48x32xbf16>
    %65 = arith.truncf %56 : vector<48x32xf32> to vector<48x32xbf16>
    %66 = arith.truncf %63 : vector<48x32xf32> to vector<48x32xbf16>
    %67 = vector.extract_strided_slice %64 {offsets = [0, 0], sizes = [24, 8], strides = [1, 1]} : vector<48x32xbf16> to vector<24x8xbf16>
    %68 = vector.extract_strided_slice %65 {offsets = [0, 0], sizes = [24, 8], strides = [1, 1]} : vector<48x32xbf16> to vector<24x8xbf16>
    %69 = vector.extract_strided_slice %66 {offsets = [0, 0], sizes = [24, 8], strides = [1, 1]} : vector<48x32xbf16> to vector<24x8xbf16>
    %cst_46 = arith.constant dense<0.000000e+00> : vector<24x24xf32>
    %70 = tpu.matmul %67, %68, %cst_46 {dimension_numbers = #tpu.dot_dimension_numbers<[1], [1], [0], [0], [0, 0, 1, 0], [], []>} : vector<24x8xbf16>, vector<24x8xbf16>, vector<24x24xf32> -> vector<24x24xf32>
    %cst_47 = arith.constant dense<0xFF800000> : vector<24xf32>
    %71 = vector.multi_reduction <maximumf>, %70, %cst_47 [1] : vector<24x24xf32> to vector<24xf32>
    %72 = vector.shape_cast %71 : vector<24xf32> to vector<24x1xf32>
    %73 = vector.broadcast %72 : vector<24x1xf32> to vector<24x24xf32>
    %74 = arith.subf %70, %73 : vector<24x24xf32>
    %75 = math.exp %74 : vector<24x24xf32>
    %cst_48 = arith.constant dense<0.000000e+00> : vector<24xf32>
    %76 = vector.multi_reduction <add>, %75, %cst_48 [1] : vector<24x24xf32> to vector<24xf32>
    %77 = vector.shape_cast %76 : vector<24xf32> to vector<24x1xf32>
    %78 = tpu.reciprocal %77 {approx = true} : vector<24x1xf32> -> vector<24x1xf32>
    %79 = vector.broadcast %78 : vector<24x1xf32> to vector<24x24xf32>
    %80 = arith.mulf %75, %79 : vector<24x24xf32>
    %81 = arith.truncf %80 : vector<24x24xf32> to vector<24x24xbf16>
    %cst_49 = arith.constant dense<0.000000e+00> : vector<24x8xf32>
    %82 = tpu.matmul %81, %69, %cst_49 {dimension_numbers = #tpu.dot_dimension_numbers<[1], [0], [0], [1], [0, 0, 1, 1], [], []>} : vector<24x24xbf16>, vector<24x8xbf16>, vector<24x8xf32> -> vector<24x8xf32>
    %c0_50 = arith.constant 0 : index
    %c0_51 = arith.constant 0 : index
    %83 = vector.load %arg27[%c0_50, %c0_51] : memref<48x32xf32, #tpu.memory_space<vmem>>, vector<24x8xf32>
    tpu.vector_store %arg27[%c0_50, %c0_51], %82 {strides = array<i32>} : memref<48x32xf32, #tpu.memory_space<vmem>>, vector<24x8xf32>,
    %84 = vector.extract_strided_slice %64 {offsets = [0, 8], sizes = [24, 8], strides = [1, 1]} : vector<48x32xbf16> to vector<24x8xbf16>
    %85 = vector.extract_strided_slice %65 {offsets = [0, 8], sizes = [24, 8], strides = [1, 1]} : vector<48x32xbf16> to vector<24x8xbf16>
    %86 = vector.extract_strided_slice %66 {offsets = [0, 8], sizes = [24, 8], strides = [1, 1]} : vector<48x32xbf16> to vector<24x8xbf16>
    %cst_52 = arith.constant dense<0.000000e+00> : vector<24x24xf32>
    %87 = tpu.matmul %84, %85, %cst_52 {dimension_numbers = #tpu.dot_dimension_numbers<[1], [1], [0], [0], [0, 0, 1, 0], [], []>} : vector<24x8xbf16>, vector<24x8xbf16>, vector<24x24xf32> -> vector<24x24xf32>
    %cst_53 = arith.constant dense<0xFF800000> : vector<24xf32>
    %88 = vector.multi_reduction <maximumf>, %87, %cst_53 [1] : vector<24x24xf32> to vector<24xf32>
    %89 = vector.shape_cast %88 : vector<24xf32> to vector<24x1xf32>
    %90 = vector.broadcast %89 : vector<24x1xf32> to vector<24x24xf32>
    %91 = arith.subf %87, %90 : vector<24x24xf32>
    %92 = math.exp %91 : vector<24x24xf32>
    %cst_54 = arith.constant dense<0.000000e+00> : vector<24xf32>
    %93 = vector.multi_reduction <add>, %92, %cst_54 [1] : vector<24x24xf32> to vector<24xf32>
    %94 = vector.shape_cast %93 : vector<24xf32> to vector<24x1xf32>
    %95 = tpu.reciprocal %94 {approx = true} : vector<24x1xf32> -> vector<24x1xf32>
    %96 = vector.broadcast %95 : vector<24x1xf32> to vector<24x24xf32>
    %97 = arith.mulf %92, %96 : vector<24x24xf32>
    %98 = arith.truncf %97 : vector<24x24xf32> to vector<24x24xbf16>
    %cst_55 = arith.constant dense<0.000000e+00> : vector<24x8xf32>
    %99 = tpu.matmul %98, %86, %cst_55 {dimension_numbers = #tpu.dot_dimension_numbers<[1], [0], [0], [1], [0, 0, 1, 1], [], []>} : vector<24x24xbf16>, vector<24x8xbf16>, vector<24x8xf32> -> vector<24x8xf32>
    %c0_56 = arith.constant 0 : index
    %c8_57 = arith.constant 8 : index
    %100 = vector.load %arg27[%c0_56, %c8_57] : memref<48x32xf32, #tpu.memory_space<vmem>>, vector<24x8xf32>
    tpu.vector_store %arg27[%c0_56, %c8_57], %99 {strides = array<i32>} : memref<48x32xf32, #tpu.memory_space<vmem>>, vector<24x8xf32>,
    %101 = vector.extract_strided_slice %64 {offsets = [0, 16], sizes = [24, 8], strides = [1, 1]} : vector<48x32xbf16> to vector<24x8xbf16>
    %102 = vector.extract_strided_slice %65 {offsets = [0, 16], sizes = [24, 8], strides = [1, 1]} : vector<48x32xbf16> to vector<24x8xbf16>
    %103 = vector.extract_strided_slice %66 {offsets = [0, 16], sizes = [24, 8], strides = [1, 1]} : vector<48x32xbf16> to vector<24x8xbf16>
    %cst_58 = arith.constant dense<0.000000e+00> : vector<24x24xf32>
    %104 = tpu.matmul %101, %102, %cst_58 {dimension_numbers = #tpu.dot_dimension_numbers<[1], [1], [0], [0], [0, 0, 1, 0], [], []>} : vector<24x8xbf16>, vector<24x8xbf16>, vector<24x24xf32> -> vector<24x24xf32>
    %cst_59 = arith.constant dense<0xFF800000> : vector<24xf32>
    %105 = vector.multi_reduction <maximumf>, %104, %cst_59 [1] : vector<24x24xf32> to vector<24xf32>
    %106 = vector.shape_cast %105 : vector<24xf32> to vector<24x1xf32>
    %107 = vector.broadcast %106 : vector<24x1xf32> to vector<24x24xf32>
    %108 = arith.subf %104, %107 : vector<24x24xf32>
    %109 = math.exp %108 : vector<24x24xf32>
    %cst_60 = arith.constant dense<0.000000e+00> : vector<24xf32>
    %110 = vector.multi_reduction <add>, %109, %cst_60 [1] : vector<24x24xf32> to vector<24xf32>
    %111 = vector.shape_cast %110 : vector<24xf32> to vector<24x1xf32>
    %112 = tpu.reciprocal %111 {approx = true} : vector<24x1xf32> -> vector<24x1xf32>
    %113 = vector.broadcast %112 : vector<24x1xf32> to vector<24x24xf32>
    %114 = arith.mulf %109, %113 : vector<24x24xf32>
    %115 = arith.truncf %114 : vector<24x24xf32> to vector<24x24xbf16>
    %cst_61 = arith.constant dense<0.000000e+00> : vector<24x8xf32>
    %116 = tpu.matmul %115, %103, %cst_61 {dimension_numbers = #tpu.dot_dimension_numbers<[1], [0], [0], [1], [0, 0, 1, 1], [], []>} : vector<24x24xbf16>, vector<24x8xbf16>, vector<24x8xf32> -> vector<24x8xf32>
    %c0_62 = arith.constant 0 : index
    %c16 = arith.constant 16 : index
    %117 = vector.load %arg27[%c0_62, %c16] : memref<48x32xf32, #tpu.memory_space<vmem>>, vector<24x8xf32>
    tpu.vector_store %arg27[%c0_62, %c16], %116 {strides = array<i32>} : memref<48x32xf32, #tpu.memory_space<vmem>>, vector<24x8xf32>,
    %118 = vector.extract_strided_slice %64 {offsets = [0, 24], sizes = [24, 8], strides = [1, 1]} : vector<48x32xbf16> to vector<24x8xbf16>
    %119 = vector.extract_strided_slice %65 {offsets = [0, 24], sizes = [24, 8], strides = [1, 1]} : vector<48x32xbf16> to vector<24x8xbf16>
    %120 = vector.extract_strided_slice %66 {offsets = [0, 24], sizes = [24, 8], strides = [1, 1]} : vector<48x32xbf16> to vector<24x8xbf16>
    %cst_63 = arith.constant dense<0.000000e+00> : vector<24x24xf32>
    %121 = tpu.matmul %118, %119, %cst_63 {dimension_numbers = #tpu.dot_dimension_numbers<[1], [1], [0], [0], [0, 0, 1, 0], [], []>} : vector<24x8xbf16>, vector<24x8xbf16>, vector<24x24xf32> -> vector<24x24xf32>
    %cst_64 = arith.constant dense<0xFF800000> : vector<24xf32>
    %122 = vector.multi_reduction <maximumf>, %121, %cst_64 [1] : vector<24x24xf32> to vector<24xf32>
    %123 = vector.shape_cast %122 : vector<24xf32> to vector<24x1xf32>
    %124 = vector.broadcast %123 : vector<24x1xf32> to vector<24x24xf32>
    %125 = arith.subf %121, %124 : vector<24x24xf32>
    %126 = math.exp %125 : vector<24x24xf32>
    %cst_65 = arith.constant dense<0.000000e+00> : vector<24xf32>
    %127 = vector.multi_reduction <add>, %126, %cst_65 [1] : vector<24x24xf32> to vector<24xf32>
    %128 = vector.shape_cast %127 : vector<24xf32> to vector<24x1xf32>
    %129 = tpu.reciprocal %128 {approx = true} : vector<24x1xf32> -> vector<24x1xf32>
    %130 = vector.broadcast %129 : vector<24x1xf32> to vector<24x24xf32>
    %131 = arith.mulf %126, %130 : vector<24x24xf32>
    %132 = arith.truncf %131 : vector<24x24xf32> to vector<24x24xbf16>
    %cst_66 = arith.constant dense<0.000000e+00> : vector<24x8xf32>
    %133 = tpu.matmul %132, %120, %cst_66 {dimension_numbers = #tpu.dot_dimension_numbers<[1], [0], [0], [1], [0, 0, 1, 1], [], []>} : vector<24x24xbf16>, vector<24x8xbf16>, vector<24x8xf32> -> vector<24x8xf32>
    %c0_67 = arith.constant 0 : index
    %c24_68 = arith.constant 24 : index
    %134 = vector.load %arg27[%c0_67, %c24_68] : memref<48x32xf32, #tpu.memory_space<vmem>>, vector<24x8xf32>
    tpu.vector_store %arg27[%c0_67, %c24_68], %133 {strides = array<i32>} : memref<48x32xf32, #tpu.memory_space<vmem>>, vector<24x8xf32>,
    %135 = vector.extract_strided_slice %64 {offsets = [24, 0], sizes = [24, 8], strides = [1, 1]} : vector<48x32xbf16> to vector<24x8xbf16>
    %136 = vector.extract_strided_slice %65 {offsets = [24, 0], sizes = [24, 8], strides = [1, 1]} : vector<48x32xbf16> to vector<24x8xbf16>
    %137 = vector.extract_strided_slice %66 {offsets = [24, 0], sizes = [24, 8], strides = [1, 1]} : vector<48x32xbf16> to vector<24x8xbf16>
    %cst_69 = arith.constant dense<0.000000e+00> : vector<24x24xf32>
    %138 = tpu.matmul %135, %136, %cst_69 {dimension_numbers = #tpu.dot_dimension_numbers<[1], [1], [0], [0], [0, 0, 1, 0], [], []>} : vector<24x8xbf16>, vector<24x8xbf16>, vector<24x24xf32> -> vector<24x24xf32>
    %cst_70 = arith.constant dense<0xFF800000> : vector<24xf32>
    %139 = vector.multi_reduction <maximumf>, %138, %cst_70 [1] : vector<24x24xf32> to vector<24xf32>
    %140 = vector.shape_cast %139 : vector<24xf32> to vector<24x1xf32>
    %141 = vector.broadcast %140 : vector<24x1xf32> to vector<24x24xf32>
    %142 = arith.subf %138, %141 : vector<24x24xf32>
    %143 = math.exp %142 : vector<24x24xf32>
    %cst_71 = arith.constant dense<0.000000e+00> : vector<24xf32>
    %144 = vector.multi_reduction <add>, %143, %cst_71 [1] : vector<24x24xf32> to vector<24xf32>
    %145 = vector.shape_cast %144 : vector<24xf32> to vector<24x1xf32>
    %146 = tpu.reciprocal %145 {approx = true} : vector<24x1xf32> -> vector<24x1xf32>
    %147 = vector.broadcast %146 : vector<24x1xf32> to vector<24x24xf32>
    %148 = arith.mulf %143, %147 : vector<24x24xf32>
    %149 = arith.truncf %148 : vector<24x24xf32> to vector<24x24xbf16>
    %cst_72 = arith.constant dense<0.000000e+00> : vector<24x8xf32>
    %150 = tpu.matmul %149, %137, %cst_72 {dimension_numbers = #tpu.dot_dimension_numbers<[1], [0], [0], [1], [0, 0, 1, 1], [], []>} : vector<24x24xbf16>, vector<24x8xbf16>, vector<24x8xf32> -> vector<24x8xf32>
    %c24_73 = arith.constant 24 : index
    %c0_74 = arith.constant 0 : index
    %151 = vector.load %arg27[%c24_73, %c0_74] : memref<48x32xf32, #tpu.memory_space<vmem>>, vector<24x8xf32>
    tpu.vector_store %arg27[%c24_73, %c0_74], %150 {strides = array<i32>} : memref<48x32xf32, #tpu.memory_space<vmem>>, vector<24x8xf32>,
    %152 = vector.extract_strided_slice %64 {offsets = [24, 8], sizes = [24, 8], strides = [1, 1]} : vector<48x32xbf16> to vector<24x8xbf16>
    %153 = vector.extract_strided_slice %65 {offsets = [24, 8], sizes = [24, 8], strides = [1, 1]} : vector<48x32xbf16> to vector<24x8xbf16>
    %154 = vector.extract_strided_slice %66 {offsets = [24, 8], sizes = [24, 8], strides = [1, 1]} : vector<48x32xbf16> to vector<24x8xbf16>
    %cst_75 = arith.constant dense<0.000000e+00> : vector<24x24xf32>
    %155 = tpu.matmul %152, %153, %cst_75 {dimension_numbers = #tpu.dot_dimension_numbers<[1], [1], [0], [0], [0, 0, 1, 0], [], []>} : vector<24x8xbf16>, vector<24x8xbf16>, vector<24x24xf32> -> vector<24x24xf32>
    %cst_76 = arith.constant dense<0xFF800000> : vector<24xf32>
    %156 = vector.multi_reduction <maximumf>, %155, %cst_76 [1] : vector<24x24xf32> to vector<24xf32>
    %157 = vector.shape_cast %156 : vector<24xf32> to vector<24x1xf32>
    %158 = vector.broadcast %157 : vector<24x1xf32> to vector<24x24xf32>
    %159 = arith.subf %155, %158 : vector<24x24xf32>
    %160 = math.exp %159 : vector<24x24xf32>
    %cst_77 = arith.constant dense<0.000000e+00> : vector<24xf32>
    %161 = vector.multi_reduction <add>, %160, %cst_77 [1] : vector<24x24xf32> to vector<24xf32>
    %162 = vector.shape_cast %161 : vector<24xf32> to vector<24x1xf32>
    %163 = tpu.reciprocal %162 {approx = true} : vector<24x1xf32> -> vector<24x1xf32>
    %164 = vector.broadcast %163 : vector<24x1xf32> to vector<24x24xf32>
    %165 = arith.mulf %160, %164 : vector<24x24xf32>
    %166 = arith.truncf %165 : vector<24x24xf32> to vector<24x24xbf16>
    %cst_78 = arith.constant dense<0.000000e+00> : vector<24x8xf32>
    %167 = tpu.matmul %166, %154, %cst_78 {dimension_numbers = #tpu.dot_dimension_numbers<[1], [0], [0], [1], [0, 0, 1, 1], [], []>} : vector<24x24xbf16>, vector<24x8xbf16>, vector<24x8xf32> -> vector<24x8xf32>
    %c24_79 = arith.constant 24 : index
    %c8_80 = arith.constant 8 : index
    %168 = vector.load %arg27[%c24_79, %c8_80] : memref<48x32xf32, #tpu.memory_space<vmem>>, vector<24x8xf32>
    tpu.vector_store %arg27[%c24_79, %c8_80], %167 {strides = array<i32>} : memref<48x32xf32, #tpu.memory_space<vmem>>, vector<24x8xf32>,
    %169 = vector.extract_strided_slice %64 {offsets = [24, 16], sizes = [24, 8], strides = [1, 1]} : vector<48x32xbf16> to vector<24x8xbf16>
    %170 = vector.extract_strided_slice %65 {offsets = [24, 16], sizes = [24, 8], strides = [1, 1]} : vector<48x32xbf16> to vector<24x8xbf16>
    %171 = vector.extract_strided_slice %66 {offsets = [24, 16], sizes = [24, 8], strides = [1, 1]} : vector<48x32xbf16> to vector<24x8xbf16>
    %cst_81 = arith.constant dense<0.000000e+00> : vector<24x24xf32>
    %172 = tpu.matmul %169, %170, %cst_81 {dimension_numbers = #tpu.dot_dimension_numbers<[1], [1], [0], [0], [0, 0, 1, 0], [], []>} : vector<24x8xbf16>, vector<24x8xbf16>, vector<24x24xf32> -> vector<24x24xf32>
    %cst_82 = arith.constant dense<0xFF800000> : vector<24xf32>
    %173 = vector.multi_reduction <maximumf>, %172, %cst_82 [1] : vector<24x24xf32> to vector<24xf32>
    %174 = vector.shape_cast %173 : vector<24xf32> to vector<24x1xf32>
    %175 = vector.broadcast %174 : vector<24x1xf32> to vector<24x24xf32>
    %176 = arith.subf %172, %175 : vector<24x24xf32>
    %177 = math.exp %176 : vector<24x24xf32>
    %cst_83 = arith.constant dense<0.000000e+00> : vector<24xf32>
    %178 = vector.multi_reduction <add>, %177, %cst_83 [1] : vector<24x24xf32> to vector<24xf32>
    %179 = vector.shape_cast %178 : vector<24xf32> to vector<24x1xf32>
    %180 = tpu.reciprocal %179 {approx = true} : vector<24x1xf32> -> vector<24x1xf32>
    %181 = vector.broadcast %180 : vector<24x1xf32> to vector<24x24xf32>
    %182 = arith.mulf %177, %181 : vector<24x24xf32>
    %183 = arith.truncf %182 : vector<24x24xf32> to vector<24x24xbf16>
    %cst_84 = arith.constant dense<0.000000e+00> : vector<24x8xf32>
    %184 = tpu.matmul %183, %171, %cst_84 {dimension_numbers = #tpu.dot_dimension_numbers<[1], [0], [0], [1], [0, 0, 1, 1], [], []>} : vector<24x24xbf16>, vector<24x8xbf16>, vector<24x8xf32> -> vector<24x8xf32>
    %c24_85 = arith.constant 24 : index
    %c16_86 = arith.constant 16 : index
    %185 = vector.load %arg27[%c24_85, %c16_86] : memref<48x32xf32, #tpu.memory_space<vmem>>, vector<24x8xf32>
    tpu.vector_store %arg27[%c24_85, %c16_86], %184 {strides = array<i32>} : memref<48x32xf32, #tpu.memory_space<vmem>>, vector<24x8xf32>,
    %186 = vector.extract_strided_slice %64 {offsets = [24, 24], sizes = [24, 8], strides = [1, 1]} : vector<48x32xbf16> to vector<24x8xbf16>
    %187 = vector.extract_strided_slice %65 {offsets = [24, 24], sizes = [24, 8], strides = [1, 1]} : vector<48x32xbf16> to vector<24x8xbf16>
    %188 = vector.extract_strided_slice %66 {offsets = [24, 24], sizes = [24, 8], strides = [1, 1]} : vector<48x32xbf16> to vector<24x8xbf16>
    %cst_87 = arith.constant dense<0.000000e+00> : vector<24x24xf32>
    %189 = tpu.matmul %186, %187, %cst_87 {dimension_numbers = #tpu.dot_dimension_numbers<[1], [1], [0], [0], [0, 0, 1, 0], [], []>} : vector<24x8xbf16>, vector<24x8xbf16>, vector<24x24xf32> -> vector<24x24xf32>
    %cst_88 = arith.constant dense<0xFF800000> : vector<24xf32>
    %190 = vector.multi_reduction <maximumf>, %189, %cst_88 [1] : vector<24x24xf32> to vector<24xf32>
    %191 = vector.shape_cast %190 : vector<24xf32> to vector<24x1xf32>
    %192 = vector.broadcast %191 : vector<24x1xf32> to vector<24x24xf32>
    %193 = arith.subf %189, %192 : vector<24x24xf32>
    %194 = math.exp %193 : vector<24x24xf32>
    %cst_89 = arith.constant dense<0.000000e+00> : vector<24xf32>
    %195 = vector.multi_reduction <add>, %194, %cst_89 [1] : vector<24x24xf32> to vector<24xf32>
    %196 = vector.shape_cast %195 : vector<24xf32> to vector<24x1xf32>
    %197 = tpu.reciprocal %196 {approx = true} : vector<24x1xf32> -> vector<24x1xf32>
    %198 = vector.broadcast %197 : vector<24x1xf32> to vector<24x24xf32>
    %199 = arith.mulf %194, %198 : vector<24x24xf32>
    %200 = arith.truncf %199 : vector<24x24xf32> to vector<24x24xbf16>
    %cst_90 = arith.constant dense<0.000000e+00> : vector<24x8xf32>
    %201 = tpu.matmul %200, %188, %cst_90 {dimension_numbers = #tpu.dot_dimension_numbers<[1], [0], [0], [1], [0, 0, 1, 1], [], []>} : vector<24x24xbf16>, vector<24x8xbf16>, vector<24x8xf32> -> vector<24x8xf32>
    %c24_91 = arith.constant 24 : index
    %c24_92 = arith.constant 24 : index
    %202 = vector.load %arg27[%c24_91, %c24_92] : memref<48x32xf32, #tpu.memory_space<vmem>>, vector<24x8xf32>
    tpu.vector_store %arg27[%c24_91, %c24_92], %201 {strides = array<i32>} : memref<48x32xf32, #tpu.memory_space<vmem>>, vector<24x8xf32>,
    %c0_93 = arith.constant 0 : index
    %c0_94 = arith.constant 0 : index
    %203 = vector.load %arg27[%c0_93, %c0_94] : memref<48x32xf32, #tpu.memory_space<vmem>>, vector<48x32xf32>
    %204 = arith.truncf %203 : vector<48x32xf32> to vector<48x32xbf16>
    %c0_95 = arith.constant 0 : index
    %c0_96 = arith.constant 0 : index
    %c0_97 = arith.constant 0 : index
    %205 = vector.load %arg13[%c0_95, %c0_96, %c0_97] : memref<2x32x32xbf16, #tpu.memory_space<vmem>>, vector<1x32x32xbf16>
    %206 = vector.shape_cast %205 : vector<1x32x32xbf16> to vector<32x32xbf16>
    %cst_98 = arith.constant dense<0.000000e+00> : vector<48x32xf32>
    %207 = tpu.matmul %204, %206, %cst_98 {dimension_numbers = #tpu.dot_dimension_numbers<[1], [0], [0], [1], [0, 0, 1, 1], [], []>} : vector<48x32xbf16>, vector<32x32xbf16>, vector<48x32xf32> -> vector<48x32xf32>
    %c0_99 = arith.constant 0 : index
    %c0_100 = arith.constant 0 : index
    %c0_101 = arith.constant 0 : index
    %208 = vector.load %arg14[%c0_99, %c0_100, %c0_101] : memref<2x1x32xf32, #tpu.memory_space<vmem>>, vector<1x1x32xf32>
    %209 = vector.shape_cast %208 : vector<1x1x32xf32> to vector<1x32xf32>
    %210 = vector.broadcast %209 : vector<1x32xf32> to vector<48x32xf32>
    %211 = arith.addf %207, %210 : vector<48x32xf32>
    %212 = arith.addf %17, %211 : vector<48x32xf32>
    %c0_102 = arith.constant 0 : index
    %c0_103 = arith.constant 0 : index
    %c0_104 = arith.constant 0 : index
    %213 = vector.load %arg15[%c0_102, %c0_103, %c0_104] : memref<2x1x32xf32, #tpu.memory_space<vmem>>, vector<1x1x32xf32>
    %214 = vector.shape_cast %213 : vector<1x1x32xf32> to vector<1x32xf32>
    %c0_105 = arith.constant 0 : index
    %c0_106 = arith.constant 0 : index
    %c0_107 = arith.constant 0 : index
    %215 = vector.load %arg16[%c0_105, %c0_106, %c0_107] : memref<2x1x32xf32, #tpu.memory_space<vmem>>, vector<1x1x32xf32>
    %216 = vector.shape_cast %215 : vector<1x1x32xf32> to vector<1x32xf32>
    %cst_108 = arith.constant dense<0.000000e+00> : vector<48xf32>
    %217 = vector.multi_reduction <add>, %212, %cst_108 [1] : vector<48x32xf32> to vector<48xf32>
    %218 = vector.shape_cast %217 : vector<48xf32> to vector<48x1xf32>
    %cst_109 = arith.constant 3.200000e+01 : f32
    %219 = vector.broadcast %cst_109 : f32 to vector<48x1xf32>
    %220 = arith.divf %218, %219 : vector<48x1xf32>
    %221 = vector.broadcast %220 : vector<48x1xf32> to vector<48x32xf32>
    %222 = arith.subf %212, %221 : vector<48x32xf32>
    %223 = arith.mulf %222, %222 : vector<48x32xf32>
    %cst_110 = arith.constant dense<0.000000e+00> : vector<48xf32>
    %224 = vector.multi_reduction <add>, %223, %cst_110 [1] : vector<48x32xf32> to vector<48xf32>
    %225 = vector.shape_cast %224 : vector<48xf32> to vector<48x1xf32>
    %cst_111 = arith.constant 3.200000e+01 : f32
    %226 = vector.broadcast %cst_111 : f32 to vector<48x1xf32>
    %227 = arith.divf %225, %226 : vector<48x1xf32>
    %cst_112 = arith.constant 9.99999974E-6 : f32
    %228 = vector.broadcast %cst_112 : f32 to vector<48x1xf32>
    %229 = arith.addf %227, %228 : vector<48x1xf32>
    %230 = math.rsqrt %229 : vector<48x1xf32>
    %231 = vector.broadcast %230 : vector<48x1xf32> to vector<48x32xf32>
    %232 = arith.mulf %222, %231 : vector<48x32xf32>
    %233 = vector.broadcast %214 : vector<1x32xf32> to vector<48x32xf32>
    %234 = arith.mulf %232, %233 : vector<48x32xf32>
    %235 = vector.broadcast %216 : vector<1x32xf32> to vector<48x32xf32>
    %236 = arith.addf %234, %235 : vector<48x32xf32>
    %237 = arith.truncf %236 : vector<48x32xf32> to vector<48x32xbf16>
    %c0_113 = arith.constant 0 : index
    %c0_114 = arith.constant 0 : index
    %c0_115 = arith.constant 0 : index
    %238 = vector.load %arg17[%c0_113, %c0_114, %c0_115] : memref<2x32x128xbf16, #tpu.memory_space<vmem>>, vector<1x32x128xbf16>
    %239 = vector.shape_cast %238 : vector<1x32x128xbf16> to vector<32x128xbf16>
    %cst_116 = arith.constant dense<0.000000e+00> : vector<48x128xf32>
    %240 = tpu.matmul %237, %239, %cst_116 {dimension_numbers = #tpu.dot_dimension_numbers<[1], [0], [0], [1], [0, 0, 1, 1], [], []>} : vector<48x32xbf16>, vector<32x128xbf16>, vector<48x128xf32> -> vector<48x128xf32>
    %c0_117 = arith.constant 0 : index
    %c0_118 = arith.constant 0 : index
    %c0_119 = arith.constant 0 : index
    %241 = vector.load %arg18[%c0_117, %c0_118, %c0_119] : memref<2x1x128xf32, #tpu.memory_space<vmem>>, vector<1x1x128xf32>
    %242 = vector.shape_cast %241 : vector<1x1x128xf32> to vector<1x128xf32>
    %243 = vector.broadcast %242 : vector<1x128xf32> to vector<48x128xf32>
    %244 = arith.addf %240, %243 : vector<48x128xf32>
    %cst_120 = arith.constant 5.000000e-01 : f32
    %245 = vector.broadcast %cst_120 : f32 to vector<48x128xf32>
    %246 = arith.mulf %245, %244 : vector<48x128xf32>
    %cst_121 = arith.constant 4.471500e-02 : f32
    %247 = vector.broadcast %cst_121 : f32 to vector<48x128xf32>
    %248 = arith.mulf %247, %244 : vector<48x128xf32>
    %249 = arith.mulf %248, %244 : vector<48x128xf32>
    %250 = arith.mulf %249, %244 : vector<48x128xf32>
    %251 = arith.addf %244, %250 : vector<48x128xf32>
    %cst_122 = arith.constant 0.797884583 : f32
    %252 = vector.broadcast %cst_122 : f32 to vector<48x128xf32>
    %253 = arith.mulf %252, %251 : vector<48x128xf32>
    %254 = math.tanh %253 : vector<48x128xf32>
    %cst_123 = arith.constant 1.000000e+00 : f32
    %255 = vector.broadcast %cst_123 : f32 to vector<48x128xf32>
    %256 = arith.addf %255, %254 : vector<48x128xf32>
    %257 = arith.mulf %246, %256 : vector<48x128xf32>
    %258 = arith.truncf %257 : vector<48x128xf32> to vector<48x128xbf16>
    %c0_124 = arith.constant 0 : index
    %c0_125 = arith.constant 0 : index
    %c0_126 = arith.constant 0 : index
    %259 = vector.load %arg19[%c0_124, %c0_125, %c0_126] : memref<2x128x32xbf16, #tpu.memory_space<vmem>>, vector<1x128x32xbf16>
    %260 = vector.shape_cast %259 : vector<1x128x32xbf16> to vector<128x32xbf16>
    %cst_127 = arith.constant dense<0.000000e+00> : vector<48x32xf32>
    %261 = tpu.matmul %258, %260, %cst_127 {dimension_numbers = #tpu.dot_dimension_numbers<[1], [0], [0], [1], [0, 0, 1, 1], [], []>} : vector<48x128xbf16>, vector<128x32xbf16>, vector<48x32xf32> -> vector<48x32xf32>
    %c0_128 = arith.constant 0 : index
    %c0_129 = arith.constant 0 : index
    %c0_130 = arith.constant 0 : index
    %262 = vector.load %arg20[%c0_128, %c0_129, %c0_130] : memref<2x1x32xf32, #tpu.memory_space<vmem>>, vector<1x1x32xf32>
    %263 = vector.shape_cast %262 : vector<1x1x32xf32> to vector<1x32xf32>
    %264 = vector.broadcast %263 : vector<1x32xf32> to vector<48x32xf32>
    %265 = arith.addf %261, %264 : vector<48x32xf32>
    %266 = arith.addf %212, %265 : vector<48x32xf32>
    %c1 = arith.constant 1 : index
    %c0_131 = arith.constant 0 : index
    %c0_132 = arith.constant 0 : index
    %267 = vector.load %arg5[%c1, %c0_131, %c0_132] : memref<2x1x32xf32, #tpu.memory_space<vmem>>, vector<1x1x32xf32>
    %268 = vector.shape_cast %267 : vector<1x1x32xf32> to vector<1x32xf32>
    %c1_133 = arith.constant 1 : index
    %c0_134 = arith.constant 0 : index
    %c0_135 = arith.constant 0 : index
    %269 = vector.load %arg6[%c1_133, %c0_134, %c0_135] : memref<2x1x32xf32, #tpu.memory_space<vmem>>, vector<1x1x32xf32>
    %270 = vector.shape_cast %269 : vector<1x1x32xf32> to vector<1x32xf32>
    %cst_136 = arith.constant dense<0.000000e+00> : vector<48xf32>
    %271 = vector.multi_reduction <add>, %266, %cst_136 [1] : vector<48x32xf32> to vector<48xf32>
    %272 = vector.shape_cast %271 : vector<48xf32> to vector<48x1xf32>
    %cst_137 = arith.constant 3.200000e+01 : f32
    %273 = vector.broadcast %cst_137 : f32 to vector<48x1xf32>
    %274 = arith.divf %272, %273 : vector<48x1xf32>
    %275 = vector.broadcast %274 : vector<48x1xf32> to vector<48x32xf32>
    %276 = arith.subf %266, %275 : vector<48x32xf32>
    %277 = arith.mulf %276, %276 : vector<48x32xf32>
    %cst_138 = arith.constant dense<0.000000e+00> : vector<48xf32>
    %278 = vector.multi_reduction <add>, %277, %cst_138 [1] : vector<48x32xf32> to vector<48xf32>
    %279 = vector.shape_cast %278 : vector<48xf32> to vector<48x1xf32>
    %cst_139 = arith.constant 3.200000e+01 : f32
    %280 = vector.broadcast %cst_139 : f32 to vector<48x1xf32>
    %281 = arith.divf %279, %280 : vector<48x1xf32>
    %cst_140 = arith.constant 9.99999974E-6 : f32
    %282 = vector.broadcast %cst_140 : f32 to vector<48x1xf32>
    %283 = arith.addf %281, %282 : vector<48x1xf32>
    %284 = math.rsqrt %283 : vector<48x1xf32>
    %285 = vector.broadcast %284 : vector<48x1xf32> to vector<48x32xf32>
    %286 = arith.mulf %276, %285 : vector<48x32xf32>
    %287 = vector.broadcast %268 : vector<1x32xf32> to vector<48x32xf32>
    %288 = arith.mulf %286, %287 : vector<48x32xf32>
    %289 = vector.broadcast %270 : vector<1x32xf32> to vector<48x32xf32>
    %290 = arith.addf %288, %289 : vector<48x32xf32>
    %291 = arith.truncf %290 : vector<48x32xf32> to vector<48x32xbf16>
    %c1_141 = arith.constant 1 : index
    %c0_142 = arith.constant 0 : index
    %c0_143 = arith.constant 0 : index
    %292 = vector.load %arg7[%c1_141, %c0_142, %c0_143] : memref<2x32x32xbf16, #tpu.memory_space<vmem>>, vector<1x32x32xbf16>
    %293 = vector.shape_cast %292 : vector<1x32x32xbf16> to vector<32x32xbf16>
    %cst_144 = arith.constant dense<0.000000e+00> : vector<48x32xf32>
    %294 = tpu.matmul %291, %293, %cst_144 {dimension_numbers = #tpu.dot_dimension_numbers<[1], [0], [0], [1], [0, 0, 1, 1], [], []>} : vector<48x32xbf16>, vector<32x32xbf16>, vector<48x32xf32> -> vector<48x32xf32>
    %c1_145 = arith.constant 1 : index
    %c0_146 = arith.constant 0 : index
    %c0_147 = arith.constant 0 : index
    %295 = vector.load %arg8[%c1_145, %c0_146, %c0_147] : memref<2x1x32xf32, #tpu.memory_space<vmem>>, vector<1x1x32xf32>
    %296 = vector.shape_cast %295 : vector<1x1x32xf32> to vector<1x32xf32>
    %297 = vector.broadcast %296 : vector<1x32xf32> to vector<48x32xf32>
    %298 = arith.addf %294, %297 : vector<48x32xf32>
    %c1_148 = arith.constant 1 : index
    %c0_149 = arith.constant 0 : index
    %c0_150 = arith.constant 0 : index
    %299 = vector.load %arg9[%c1_148, %c0_149, %c0_150] : memref<2x32x32xbf16, #tpu.memory_space<vmem>>, vector<1x32x32xbf16>
    %300 = vector.shape_cast %299 : vector<1x32x32xbf16> to vector<32x32xbf16>
    %cst_151 = arith.constant dense<0.000000e+00> : vector<48x32xf32>
    %301 = tpu.matmul %291, %300, %cst_151 {dimension_numbers = #tpu.dot_dimension_numbers<[1], [0], [0], [1], [0, 0, 1, 1], [], []>} : vector<48x32xbf16>, vector<32x32xbf16>, vector<48x32xf32> -> vector<48x32xf32>
    %c1_152 = arith.constant 1 : index
    %c0_153 = arith.constant 0 : index
    %c0_154 = arith.constant 0 : index
    %302 = vector.load %arg10[%c1_152, %c0_153, %c0_154] : memref<2x1x32xf32, #tpu.memory_space<vmem>>, vector<1x1x32xf32>
    %303 = vector.shape_cast %302 : vector<1x1x32xf32> to vector<1x32xf32>
    %304 = vector.broadcast %303 : vector<1x32xf32> to vector<48x32xf32>
    %305 = arith.addf %301, %304 : vector<48x32xf32>
    %c1_155 = arith.constant 1 : index
    %c0_156 = arith.constant 0 : index
    %c0_157 = arith.constant 0 : index
    %306 = vector.load %arg11[%c1_155, %c0_156, %c0_157] : memref<2x32x32xbf16, #tpu.memory_space<vmem>>, vector<1x32x32xbf16>
    %307 = vector.shape_cast %306 : vector<1x32x32xbf16> to vector<32x32xbf16>
    %cst_158 = arith.constant dense<0.000000e+00> : vector<48x32xf32>
    %308 = tpu.matmul %291, %307, %cst_158 {dimension_numbers = #tpu.dot_dimension_numbers<[1], [0], [0], [1], [0, 0, 1, 1], [], []>} : vector<48x32xbf16>, vector<32x32xbf16>, vector<48x32xf32> -> vector<48x32xf32>
    %c1_159 = arith.constant 1 : index
    %c0_160 = arith.constant 0 : index
    %c0_161 = arith.constant 0 : index
    %309 = vector.load %arg12[%c1_159, %c0_160, %c0_161] : memref<2x1x32xf32, #tpu.memory_space<vmem>>, vector<1x1x32xf32>
    %310 = vector.shape_cast %309 : vector<1x1x32xf32> to vector<1x32xf32>
    %311 = vector.broadcast %310 : vector<1x32xf32> to vector<48x32xf32>
    %312 = arith.addf %308, %311 : vector<48x32xf32>
    %313 = arith.truncf %298 : vector<48x32xf32> to vector<48x32xbf16>
    %314 = arith.truncf %305 : vector<48x32xf32> to vector<48x32xbf16>
    %315 = arith.truncf %312 : vector<48x32xf32> to vector<48x32xbf16>
    %316 = vector.extract_strided_slice %313 {offsets = [0, 0], sizes = [24, 8], strides = [1, 1]} : vector<48x32xbf16> to vector<24x8xbf16>
    %317 = vector.extract_strided_slice %314 {offsets = [0, 0], sizes = [24, 8], strides = [1, 1]} : vector<48x32xbf16> to vector<24x8xbf16>
    %318 = vector.extract_strided_slice %315 {offsets = [0, 0], sizes = [24, 8], strides = [1, 1]} : vector<48x32xbf16> to vector<24x8xbf16>
    %cst_162 = arith.constant dense<0.000000e+00> : vector<24x24xf32>
    %319 = tpu.matmul %316, %317, %cst_162 {dimension_numbers = #tpu.dot_dimension_numbers<[1], [1], [0], [0], [0, 0, 1, 0], [], []>} : vector<24x8xbf16>, vector<24x8xbf16>, vector<24x24xf32> -> vector<24x24xf32>
    %cst_163 = arith.constant dense<0xFF800000> : vector<24xf32>
    %320 = vector.multi_reduction <maximumf>, %319, %cst_163 [1] : vector<24x24xf32> to vector<24xf32>
    %321 = vector.shape_cast %320 : vector<24xf32> to vector<24x1xf32>
    %322 = vector.broadcast %321 : vector<24x1xf32> to vector<24x24xf32>
    %323 = arith.subf %319, %322 : vector<24x24xf32>
    %324 = math.exp %323 : vector<24x24xf32>
    %cst_164 = arith.constant dense<0.000000e+00> : vector<24xf32>
    %325 = vector.multi_reduction <add>, %324, %cst_164 [1] : vector<24x24xf32> to vector<24xf32>
    %326 = vector.shape_cast %325 : vector<24xf32> to vector<24x1xf32>
    %327 = tpu.reciprocal %326 {approx = true} : vector<24x1xf32> -> vector<24x1xf32>
    %328 = vector.broadcast %327 : vector<24x1xf32> to vector<24x24xf32>
    %329 = arith.mulf %324, %328 : vector<24x24xf32>
    %330 = arith.truncf %329 : vector<24x24xf32> to vector<24x24xbf16>
    %cst_165 = arith.constant dense<0.000000e+00> : vector<24x8xf32>
    %331 = tpu.matmul %330, %318, %cst_165 {dimension_numbers = #tpu.dot_dimension_numbers<[1], [0], [0], [1], [0, 0, 1, 1], [], []>} : vector<24x24xbf16>, vector<24x8xbf16>, vector<24x8xf32> -> vector<24x8xf32>
    %c0_166 = arith.constant 0 : index
    %c0_167 = arith.constant 0 : index
    %332 = vector.load %arg27[%c0_166, %c0_167] : memref<48x32xf32, #tpu.memory_space<vmem>>, vector<24x8xf32>
    tpu.vector_store %arg27[%c0_166, %c0_167], %331 {strides = array<i32>} : memref<48x32xf32, #tpu.memory_space<vmem>>, vector<24x8xf32>,
    %333 = vector.extract_strided_slice %313 {offsets = [0, 8], sizes = [24, 8], strides = [1, 1]} : vector<48x32xbf16> to vector<24x8xbf16>
    %334 = vector.extract_strided_slice %314 {offsets = [0, 8], sizes = [24, 8], strides = [1, 1]} : vector<48x32xbf16> to vector<24x8xbf16>
    %335 = vector.extract_strided_slice %315 {offsets = [0, 8], sizes = [24, 8], strides = [1, 1]} : vector<48x32xbf16> to vector<24x8xbf16>
    %cst_168 = arith.constant dense<0.000000e+00> : vector<24x24xf32>
    %336 = tpu.matmul %333, %334, %cst_168 {dimension_numbers = #tpu.dot_dimension_numbers<[1], [1], [0], [0], [0, 0, 1, 0], [], []>} : vector<24x8xbf16>, vector<24x8xbf16>, vector<24x24xf32> -> vector<24x24xf32>
    %cst_169 = arith.constant dense<0xFF800000> : vector<24xf32>
    %337 = vector.multi_reduction <maximumf>, %336, %cst_169 [1] : vector<24x24xf32> to vector<24xf32>
    %338 = vector.shape_cast %337 : vector<24xf32> to vector<24x1xf32>
    %339 = vector.broadcast %338 : vector<24x1xf32> to vector<24x24xf32>
    %340 = arith.subf %336, %339 : vector<24x24xf32>
    %341 = math.exp %340 : vector<24x24xf32>
    %cst_170 = arith.constant dense<0.000000e+00> : vector<24xf32>
    %342 = vector.multi_reduction <add>, %341, %cst_170 [1] : vector<24x24xf32> to vector<24xf32>
    %343 = vector.shape_cast %342 : vector<24xf32> to vector<24x1xf32>
    %344 = tpu.reciprocal %343 {approx = true} : vector<24x1xf32> -> vector<24x1xf32>
    %345 = vector.broadcast %344 : vector<24x1xf32> to vector<24x24xf32>
    %346 = arith.mulf %341, %345 : vector<24x24xf32>
    %347 = arith.truncf %346 : vector<24x24xf32> to vector<24x24xbf16>
    %cst_171 = arith.constant dense<0.000000e+00> : vector<24x8xf32>
    %348 = tpu.matmul %347, %335, %cst_171 {dimension_numbers = #tpu.dot_dimension_numbers<[1], [0], [0], [1], [0, 0, 1, 1], [], []>} : vector<24x24xbf16>, vector<24x8xbf16>, vector<24x8xf32> -> vector<24x8xf32>
    %c0_172 = arith.constant 0 : index
    %c8_173 = arith.constant 8 : index
    %349 = vector.load %arg27[%c0_172, %c8_173] : memref<48x32xf32, #tpu.memory_space<vmem>>, vector<24x8xf32>
    tpu.vector_store %arg27[%c0_172, %c8_173], %348 {strides = array<i32>} : memref<48x32xf32, #tpu.memory_space<vmem>>, vector<24x8xf32>,
    %350 = vector.extract_strided_slice %313 {offsets = [0, 16], sizes = [24, 8], strides = [1, 1]} : vector<48x32xbf16> to vector<24x8xbf16>
    %351 = vector.extract_strided_slice %314 {offsets = [0, 16], sizes = [24, 8], strides = [1, 1]} : vector<48x32xbf16> to vector<24x8xbf16>
    %352 = vector.extract_strided_slice %315 {offsets = [0, 16], sizes = [24, 8], strides = [1, 1]} : vector<48x32xbf16> to vector<24x8xbf16>
    %cst_174 = arith.constant dense<0.000000e+00> : vector<24x24xf32>
    %353 = tpu.matmul %350, %351, %cst_174 {dimension_numbers = #tpu.dot_dimension_numbers<[1], [1], [0], [0], [0, 0, 1, 0], [], []>} : vector<24x8xbf16>, vector<24x8xbf16>, vector<24x24xf32> -> vector<24x24xf32>
    %cst_175 = arith.constant dense<0xFF800000> : vector<24xf32>
    %354 = vector.multi_reduction <maximumf>, %353, %cst_175 [1] : vector<24x24xf32> to vector<24xf32>
    %355 = vector.shape_cast %354 : vector<24xf32> to vector<24x1xf32>
    %356 = vector.broadcast %355 : vector<24x1xf32> to vector<24x24xf32>
    %357 = arith.subf %353, %356 : vector<24x24xf32>
    %358 = math.exp %357 : vector<24x24xf32>
    %cst_176 = arith.constant dense<0.000000e+00> : vector<24xf32>
    %359 = vector.multi_reduction <add>, %358, %cst_176 [1] : vector<24x24xf32> to vector<24xf32>
    %360 = vector.shape_cast %359 : vector<24xf32> to vector<24x1xf32>
    %361 = tpu.reciprocal %360 {approx = true} : vector<24x1xf32> -> vector<24x1xf32>
    %362 = vector.broadcast %361 : vector<24x1xf32> to vector<24x24xf32>
    %363 = arith.mulf %358, %362 : vector<24x24xf32>
    %364 = arith.truncf %363 : vector<24x24xf32> to vector<24x24xbf16>
    %cst_177 = arith.constant dense<0.000000e+00> : vector<24x8xf32>
    %365 = tpu.matmul %364, %352, %cst_177 {dimension_numbers = #tpu.dot_dimension_numbers<[1], [0], [0], [1], [0, 0, 1, 1], [], []>} : vector<24x24xbf16>, vector<24x8xbf16>, vector<24x8xf32> -> vector<24x8xf32>
    %c0_178 = arith.constant 0 : index
    %c16_179 = arith.constant 16 : index
    %366 = vector.load %arg27[%c0_178, %c16_179] : memref<48x32xf32, #tpu.memory_space<vmem>>, vector<24x8xf32>
    tpu.vector_store %arg27[%c0_178, %c16_179], %365 {strides = array<i32>} : memref<48x32xf32, #tpu.memory_space<vmem>>, vector<24x8xf32>,
    %367 = vector.extract_strided_slice %313 {offsets = [0, 24], sizes = [24, 8], strides = [1, 1]} : vector<48x32xbf16> to vector<24x8xbf16>
    %368 = vector.extract_strided_slice %314 {offsets = [0, 24], sizes = [24, 8], strides = [1, 1]} : vector<48x32xbf16> to vector<24x8xbf16>
    %369 = vector.extract_strided_slice %315 {offsets = [0, 24], sizes = [24, 8], strides = [1, 1]} : vector<48x32xbf16> to vector<24x8xbf16>
    %cst_180 = arith.constant dense<0.000000e+00> : vector<24x24xf32>
    %370 = tpu.matmul %367, %368, %cst_180 {dimension_numbers = #tpu.dot_dimension_numbers<[1], [1], [0], [0], [0, 0, 1, 0], [], []>} : vector<24x8xbf16>, vector<24x8xbf16>, vector<24x24xf32> -> vector<24x24xf32>
    %cst_181 = arith.constant dense<0xFF800000> : vector<24xf32>
    %371 = vector.multi_reduction <maximumf>, %370, %cst_181 [1] : vector<24x24xf32> to vector<24xf32>
    %372 = vector.shape_cast %371 : vector<24xf32> to vector<24x1xf32>
    %373 = vector.broadcast %372 : vector<24x1xf32> to vector<24x24xf32>
    %374 = arith.subf %370, %373 : vector<24x24xf32>
    %375 = math.exp %374 : vector<24x24xf32>
    %cst_182 = arith.constant dense<0.000000e+00> : vector<24xf32>
    %376 = vector.multi_reduction <add>, %375, %cst_182 [1] : vector<24x24xf32> to vector<24xf32>
    %377 = vector.shape_cast %376 : vector<24xf32> to vector<24x1xf32>
    %378 = tpu.reciprocal %377 {approx = true} : vector<24x1xf32> -> vector<24x1xf32>
    %379 = vector.broadcast %378 : vector<24x1xf32> to vector<24x24xf32>
    %380 = arith.mulf %375, %379 : vector<24x24xf32>
    %381 = arith.truncf %380 : vector<24x24xf32> to vector<24x24xbf16>
    %cst_183 = arith.constant dense<0.000000e+00> : vector<24x8xf32>
    %382 = tpu.matmul %381, %369, %cst_183 {dimension_numbers = #tpu.dot_dimension_numbers<[1], [0], [0], [1], [0, 0, 1, 1], [], []>} : vector<24x24xbf16>, vector<24x8xbf16>, vector<24x8xf32> -> vector<24x8xf32>
    %c0_184 = arith.constant 0 : index
    %c24_185 = arith.constant 24 : index
    %383 = vector.load %arg27[%c0_184, %c24_185] : memref<48x32xf32, #tpu.memory_space<vmem>>, vector<24x8xf32>
    tpu.vector_store %arg27[%c0_184, %c24_185], %382 {strides = array<i32>} : memref<48x32xf32, #tpu.memory_space<vmem>>, vector<24x8xf32>,
    %384 = vector.extract_strided_slice %313 {offsets = [24, 0], sizes = [24, 8], strides = [1, 1]} : vector<48x32xbf16> to vector<24x8xbf16>
    %385 = vector.extract_strided_slice %314 {offsets = [24, 0], sizes = [24, 8], strides = [1, 1]} : vector<48x32xbf16> to vector<24x8xbf16>
    %386 = vector.extract_strided_slice %315 {offsets = [24, 0], sizes = [24, 8], strides = [1, 1]} : vector<48x32xbf16> to vector<24x8xbf16>
    %cst_186 = arith.constant dense<0.000000e+00> : vector<24x24xf32>
    %387 = tpu.matmul %384, %385, %cst_186 {dimension_numbers = #tpu.dot_dimension_numbers<[1], [1], [0], [0], [0, 0, 1, 0], [], []>} : vector<24x8xbf16>, vector<24x8xbf16>, vector<24x24xf32> -> vector<24x24xf32>
    %cst_187 = arith.constant dense<0xFF800000> : vector<24xf32>
    %388 = vector.multi_reduction <maximumf>, %387, %cst_187 [1] : vector<24x24xf32> to vector<24xf32>
    %389 = vector.shape_cast %388 : vector<24xf32> to vector<24x1xf32>
    %390 = vector.broadcast %389 : vector<24x1xf32> to vector<24x24xf32>
    %391 = arith.subf %387, %390 : vector<24x24xf32>
    %392 = math.exp %391 : vector<24x24xf32>
    %cst_188 = arith.constant dense<0.000000e+00> : vector<24xf32>
    %393 = vector.multi_reduction <add>, %392, %cst_188 [1] : vector<24x24xf32> to vector<24xf32>
    %394 = vector.shape_cast %393 : vector<24xf32> to vector<24x1xf32>
    %395 = tpu.reciprocal %394 {approx = true} : vector<24x1xf32> -> vector<24x1xf32>
    %396 = vector.broadcast %395 : vector<24x1xf32> to vector<24x24xf32>
    %397 = arith.mulf %392, %396 : vector<24x24xf32>
    %398 = arith.truncf %397 : vector<24x24xf32> to vector<24x24xbf16>
    %cst_189 = arith.constant dense<0.000000e+00> : vector<24x8xf32>
    %399 = tpu.matmul %398, %386, %cst_189 {dimension_numbers = #tpu.dot_dimension_numbers<[1], [0], [0], [1], [0, 0, 1, 1], [], []>} : vector<24x24xbf16>, vector<24x8xbf16>, vector<24x8xf32> -> vector<24x8xf32>
    %c24_190 = arith.constant 24 : index
    %c0_191 = arith.constant 0 : index
    %400 = vector.load %arg27[%c24_190, %c0_191] : memref<48x32xf32, #tpu.memory_space<vmem>>, vector<24x8xf32>
    tpu.vector_store %arg27[%c24_190, %c0_191], %399 {strides = array<i32>} : memref<48x32xf32, #tpu.memory_space<vmem>>, vector<24x8xf32>,
    %401 = vector.extract_strided_slice %313 {offsets = [24, 8], sizes = [24, 8], strides = [1, 1]} : vector<48x32xbf16> to vector<24x8xbf16>
    %402 = vector.extract_strided_slice %314 {offsets = [24, 8], sizes = [24, 8], strides = [1, 1]} : vector<48x32xbf16> to vector<24x8xbf16>
    %403 = vector.extract_strided_slice %315 {offsets = [24, 8], sizes = [24, 8], strides = [1, 1]} : vector<48x32xbf16> to vector<24x8xbf16>
    %cst_192 = arith.constant dense<0.000000e+00> : vector<24x24xf32>
    %404 = tpu.matmul %401, %402, %cst_192 {dimension_numbers = #tpu.dot_dimension_numbers<[1], [1], [0], [0], [0, 0, 1, 0], [], []>} : vector<24x8xbf16>, vector<24x8xbf16>, vector<24x24xf32> -> vector<24x24xf32>
    %cst_193 = arith.constant dense<0xFF800000> : vector<24xf32>
    %405 = vector.multi_reduction <maximumf>, %404, %cst_193 [1] : vector<24x24xf32> to vector<24xf32>
    %406 = vector.shape_cast %405 : vector<24xf32> to vector<24x1xf32>
    %407 = vector.broadcast %406 : vector<24x1xf32> to vector<24x24xf32>
    %408 = arith.subf %404, %407 : vector<24x24xf32>
    %409 = math.exp %408 : vector<24x24xf32>
    %cst_194 = arith.constant dense<0.000000e+00> : vector<24xf32>
    %410 = vector.multi_reduction <add>, %409, %cst_194 [1] : vector<24x24xf32> to vector<24xf32>
    %411 = vector.shape_cast %410 : vector<24xf32> to vector<24x1xf32>
    %412 = tpu.reciprocal %411 {approx = true} : vector<24x1xf32> -> vector<24x1xf32>
    %413 = vector.broadcast %412 : vector<24x1xf32> to vector<24x24xf32>
    %414 = arith.mulf %409, %413 : vector<24x24xf32>
    %415 = arith.truncf %414 : vector<24x24xf32> to vector<24x24xbf16>
    %cst_195 = arith.constant dense<0.000000e+00> : vector<24x8xf32>
    %416 = tpu.matmul %415, %403, %cst_195 {dimension_numbers = #tpu.dot_dimension_numbers<[1], [0], [0], [1], [0, 0, 1, 1], [], []>} : vector<24x24xbf16>, vector<24x8xbf16>, vector<24x8xf32> -> vector<24x8xf32>
    %c24_196 = arith.constant 24 : index
    %c8_197 = arith.constant 8 : index
    %417 = vector.load %arg27[%c24_196, %c8_197] : memref<48x32xf32, #tpu.memory_space<vmem>>, vector<24x8xf32>
    tpu.vector_store %arg27[%c24_196, %c8_197], %416 {strides = array<i32>} : memref<48x32xf32, #tpu.memory_space<vmem>>, vector<24x8xf32>,
    %418 = vector.extract_strided_slice %313 {offsets = [24, 16], sizes = [24, 8], strides = [1, 1]} : vector<48x32xbf16> to vector<24x8xbf16>
    %419 = vector.extract_strided_slice %314 {offsets = [24, 16], sizes = [24, 8], strides = [1, 1]} : vector<48x32xbf16> to vector<24x8xbf16>
    %420 = vector.extract_strided_slice %315 {offsets = [24, 16], sizes = [24, 8], strides = [1, 1]} : vector<48x32xbf16> to vector<24x8xbf16>
    %cst_198 = arith.constant dense<0.000000e+00> : vector<24x24xf32>
    %421 = tpu.matmul %418, %419, %cst_198 {dimension_numbers = #tpu.dot_dimension_numbers<[1], [1], [0], [0], [0, 0, 1, 0], [], []>} : vector<24x8xbf16>, vector<24x8xbf16>, vector<24x24xf32> -> vector<24x24xf32>
    %cst_199 = arith.constant dense<0xFF800000> : vector<24xf32>
    %422 = vector.multi_reduction <maximumf>, %421, %cst_199 [1] : vector<24x24xf32> to vector<24xf32>
    %423 = vector.shape_cast %422 : vector<24xf32> to vector<24x1xf32>
    %424 = vector.broadcast %423 : vector<24x1xf32> to vector<24x24xf32>
    %425 = arith.subf %421, %424 : vector<24x24xf32>
    %426 = math.exp %425 : vector<24x24xf32>
    %cst_200 = arith.constant dense<0.000000e+00> : vector<24xf32>
    %427 = vector.multi_reduction <add>, %426, %cst_200 [1] : vector<24x24xf32> to vector<24xf32>
    %428 = vector.shape_cast %427 : vector<24xf32> to vector<24x1xf32>
    %429 = tpu.reciprocal %428 {approx = true} : vector<24x1xf32> -> vector<24x1xf32>
    %430 = vector.broadcast %429 : vector<24x1xf32> to vector<24x24xf32>
    %431 = arith.mulf %426, %430 : vector<24x24xf32>
    %432 = arith.truncf %431 : vector<24x24xf32> to vector<24x24xbf16>
    %cst_201 = arith.constant dense<0.000000e+00> : vector<24x8xf32>
    %433 = tpu.matmul %432, %420, %cst_201 {dimension_numbers = #tpu.dot_dimension_numbers<[1], [0], [0], [1], [0, 0, 1, 1], [], []>} : vector<24x24xbf16>, vector<24x8xbf16>, vector<24x8xf32> -> vector<24x8xf32>
    %c24_202 = arith.constant 24 : index
    %c16_203 = arith.constant 16 : index
    %434 = vector.load %arg27[%c24_202, %c16_203] : memref<48x32xf32, #tpu.memory_space<vmem>>, vector<24x8xf32>
    tpu.vector_store %arg27[%c24_202, %c16_203], %433 {strides = array<i32>} : memref<48x32xf32, #tpu.memory_space<vmem>>, vector<24x8xf32>,
    %435 = vector.extract_strided_slice %313 {offsets = [24, 24], sizes = [24, 8], strides = [1, 1]} : vector<48x32xbf16> to vector<24x8xbf16>
    %436 = vector.extract_strided_slice %314 {offsets = [24, 24], sizes = [24, 8], strides = [1, 1]} : vector<48x32xbf16> to vector<24x8xbf16>
    %437 = vector.extract_strided_slice %315 {offsets = [24, 24], sizes = [24, 8], strides = [1, 1]} : vector<48x32xbf16> to vector<24x8xbf16>
    %cst_204 = arith.constant dense<0.000000e+00> : vector<24x24xf32>
    %438 = tpu.matmul %435, %436, %cst_204 {dimension_numbers = #tpu.dot_dimension_numbers<[1], [1], [0], [0], [0, 0, 1, 0], [], []>} : vector<24x8xbf16>, vector<24x8xbf16>, vector<24x24xf32> -> vector<24x24xf32>
    %cst_205 = arith.constant dense<0xFF800000> : vector<24xf32>
    %439 = vector.multi_reduction <maximumf>, %438, %cst_205 [1] : vector<24x24xf32> to vector<24xf32>
    %440 = vector.shape_cast %439 : vector<24xf32> to vector<24x1xf32>
    %441 = vector.broadcast %440 : vector<24x1xf32> to vector<24x24xf32>
    %442 = arith.subf %438, %441 : vector<24x24xf32>
    %443 = math.exp %442 : vector<24x24xf32>
    %cst_206 = arith.constant dense<0.000000e+00> : vector<24xf32>
    %444 = vector.multi_reduction <add>, %443, %cst_206 [1] : vector<24x24xf32> to vector<24xf32>
    %445 = vector.shape_cast %444 : vector<24xf32> to vector<24x1xf32>
    %446 = tpu.reciprocal %445 {approx = true} : vector<24x1xf32> -> vector<24x1xf32>
    %447 = vector.broadcast %446 : vector<24x1xf32> to vector<24x24xf32>
    %448 = arith.mulf %443, %447 : vector<24x24xf32>
    %449 = arith.truncf %448 : vector<24x24xf32> to vector<24x24xbf16>
    %cst_207 = arith.constant dense<0.000000e+00> : vector<24x8xf32>
    %450 = tpu.matmul %449, %437, %cst_207 {dimension_numbers = #tpu.dot_dimension_numbers<[1], [0], [0], [1], [0, 0, 1, 1], [], []>} : vector<24x24xbf16>, vector<24x8xbf16>, vector<24x8xf32> -> vector<24x8xf32>
    %c24_208 = arith.constant 24 : index
    %c24_209 = arith.constant 24 : index
    %451 = vector.load %arg27[%c24_208, %c24_209] : memref<48x32xf32, #tpu.memory_space<vmem>>, vector<24x8xf32>
    tpu.vector_store %arg27[%c24_208, %c24_209], %450 {strides = array<i32>} : memref<48x32xf32, #tpu.memory_space<vmem>>, vector<24x8xf32>,
    %c0_210 = arith.constant 0 : index
    %c0_211 = arith.constant 0 : index
    %452 = vector.load %arg27[%c0_210, %c0_211] : memref<48x32xf32, #tpu.memory_space<vmem>>, vector<48x32xf32>
    %453 = arith.truncf %452 : vector<48x32xf32> to vector<48x32xbf16>
    %c1_212 = arith.constant 1 : index
    %c0_213 = arith.constant 0 : index
    %c0_214 = arith.constant 0 : index
    %454 = vector.load %arg13[%c1_212, %c0_213, %c0_214] : memref<2x32x32xbf16, #tpu.memory_space<vmem>>, vector<1x32x32xbf16>
    %455 = vector.shape_cast %454 : vector<1x32x32xbf16> to vector<32x32xbf16>
    %cst_215 = arith.constant dense<0.000000e+00> : vector<48x32xf32>
    %456 = tpu.matmul %453, %455, %cst_215 {dimension_numbers = #tpu.dot_dimension_numbers<[1], [0], [0], [1], [0, 0, 1, 1], [], []>} : vector<48x32xbf16>, vector<32x32xbf16>, vector<48x32xf32> -> vector<48x32xf32>
    %c1_216 = arith.constant 1 : index
    %c0_217 = arith.constant 0 : index
    %c0_218 = arith.constant 0 : index
    %457 = vector.load %arg14[%c1_216, %c0_217, %c0_218] : memref<2x1x32xf32, #tpu.memory_space<vmem>>, vector<1x1x32xf32>
    %458 = vector.shape_cast %457 : vector<1x1x32xf32> to vector<1x32xf32>
    %459 = vector.broadcast %458 : vector<1x32xf32> to vector<48x32xf32>
    %460 = arith.addf %456, %459 : vector<48x32xf32>
    %461 = arith.addf %266, %460 : vector<48x32xf32>
    %c1_219 = arith.constant 1 : index
    %c0_220 = arith.constant 0 : index
    %c0_221 = arith.constant 0 : index
    %462 = vector.load %arg15[%c1_219, %c0_220, %c0_221] : memref<2x1x32xf32, #tpu.memory_space<vmem>>, vector<1x1x32xf32>
    %463 = vector.shape_cast %462 : vector<1x1x32xf32> to vector<1x32xf32>
    %c1_222 = arith.constant 1 : index
    %c0_223 = arith.constant 0 : index
    %c0_224 = arith.constant 0 : index
    %464 = vector.load %arg16[%c1_222, %c0_223, %c0_224] : memref<2x1x32xf32, #tpu.memory_space<vmem>>, vector<1x1x32xf32>
    %465 = vector.shape_cast %464 : vector<1x1x32xf32> to vector<1x32xf32>
    %cst_225 = arith.constant dense<0.000000e+00> : vector<48xf32>
    %466 = vector.multi_reduction <add>, %461, %cst_225 [1] : vector<48x32xf32> to vector<48xf32>
    %467 = vector.shape_cast %466 : vector<48xf32> to vector<48x1xf32>
    %cst_226 = arith.constant 3.200000e+01 : f32
    %468 = vector.broadcast %cst_226 : f32 to vector<48x1xf32>
    %469 = arith.divf %467, %468 : vector<48x1xf32>
    %470 = vector.broadcast %469 : vector<48x1xf32> to vector<48x32xf32>
    %471 = arith.subf %461, %470 : vector<48x32xf32>
    %472 = arith.mulf %471, %471 : vector<48x32xf32>
    %cst_227 = arith.constant dense<0.000000e+00> : vector<48xf32>
    %473 = vector.multi_reduction <add>, %472, %cst_227 [1] : vector<48x32xf32> to vector<48xf32>
    %474 = vector.shape_cast %473 : vector<48xf32> to vector<48x1xf32>
    %cst_228 = arith.constant 3.200000e+01 : f32
    %475 = vector.broadcast %cst_228 : f32 to vector<48x1xf32>
    %476 = arith.divf %474, %475 : vector<48x1xf32>
    %cst_229 = arith.constant 9.99999974E-6 : f32
    %477 = vector.broadcast %cst_229 : f32 to vector<48x1xf32>
    %478 = arith.addf %476, %477 : vector<48x1xf32>
    %479 = math.rsqrt %478 : vector<48x1xf32>
    %480 = vector.broadcast %479 : vector<48x1xf32> to vector<48x32xf32>
    %481 = arith.mulf %471, %480 : vector<48x32xf32>
    %482 = vector.broadcast %463 : vector<1x32xf32> to vector<48x32xf32>
    %483 = arith.mulf %481, %482 : vector<48x32xf32>
    %484 = vector.broadcast %465 : vector<1x32xf32> to vector<48x32xf32>
    %485 = arith.addf %483, %484 : vector<48x32xf32>
    %486 = arith.truncf %485 : vector<48x32xf32> to vector<48x32xbf16>
    %c1_230 = arith.constant 1 : index
    %c0_231 = arith.constant 0 : index
    %c0_232 = arith.constant 0 : index
    %487 = vector.load %arg17[%c1_230, %c0_231, %c0_232] : memref<2x32x128xbf16, #tpu.memory_space<vmem>>, vector<1x32x128xbf16>
    %488 = vector.shape_cast %487 : vector<1x32x128xbf16> to vector<32x128xbf16>
    %cst_233 = arith.constant dense<0.000000e+00> : vector<48x128xf32>
    %489 = tpu.matmul %486, %488, %cst_233 {dimension_numbers = #tpu.dot_dimension_numbers<[1], [0], [0], [1], [0, 0, 1, 1], [], []>} : vector<48x32xbf16>, vector<32x128xbf16>, vector<48x128xf32> -> vector<48x128xf32>
    %c1_234 = arith.constant 1 : index
    %c0_235 = arith.constant 0 : index
    %c0_236 = arith.constant 0 : index
    %490 = vector.load %arg18[%c1_234, %c0_235, %c0_236] : memref<2x1x128xf32, #tpu.memory_space<vmem>>, vector<1x1x128xf32>
    %491 = vector.shape_cast %490 : vector<1x1x128xf32> to vector<1x128xf32>
    %492 = vector.broadcast %491 : vector<1x128xf32> to vector<48x128xf32>
    %493 = arith.addf %489, %492 : vector<48x128xf32>
    %cst_237 = arith.constant 5.000000e-01 : f32
    %494 = vector.broadcast %cst_237 : f32 to vector<48x128xf32>
    %495 = arith.mulf %494, %493 : vector<48x128xf32>
    %cst_238 = arith.constant 4.471500e-02 : f32
    %496 = vector.broadcast %cst_238 : f32 to vector<48x128xf32>
    %497 = arith.mulf %496, %493 : vector<48x128xf32>
    %498 = arith.mulf %497, %493 : vector<48x128xf32>
    %499 = arith.mulf %498, %493 : vector<48x128xf32>
    %500 = arith.addf %493, %499 : vector<48x128xf32>
    %cst_239 = arith.constant 0.797884583 : f32
    %501 = vector.broadcast %cst_239 : f32 to vector<48x128xf32>
    %502 = arith.mulf %501, %500 : vector<48x128xf32>
    %503 = math.tanh %502 : vector<48x128xf32>
    %cst_240 = arith.constant 1.000000e+00 : f32
    %504 = vector.broadcast %cst_240 : f32 to vector<48x128xf32>
    %505 = arith.addf %504, %503 : vector<48x128xf32>
    %506 = arith.mulf %495, %505 : vector<48x128xf32>
    %507 = arith.truncf %506 : vector<48x128xf32> to vector<48x128xbf16>
    %c1_241 = arith.constant 1 : index
    %c0_242 = arith.constant 0 : index
    %c0_243 = arith.constant 0 : index
    %508 = vector.load %arg19[%c1_241, %c0_242, %c0_243] : memref<2x128x32xbf16, #tpu.memory_space<vmem>>, vector<1x128x32xbf16>
    %509 = vector.shape_cast %508 : vector<1x128x32xbf16> to vector<128x32xbf16>
    %cst_244 = arith.constant dense<0.000000e+00> : vector<48x32xf32>
    %510 = tpu.matmul %507, %509, %cst_244 {dimension_numbers = #tpu.dot_dimension_numbers<[1], [0], [0], [1], [0, 0, 1, 1], [], []>} : vector<48x128xbf16>, vector<128x32xbf16>, vector<48x32xf32> -> vector<48x32xf32>
    %c1_245 = arith.constant 1 : index
    %c0_246 = arith.constant 0 : index
    %c0_247 = arith.constant 0 : index
    %511 = vector.load %arg20[%c1_245, %c0_246, %c0_247] : memref<2x1x32xf32, #tpu.memory_space<vmem>>, vector<1x1x32xf32>
    %512 = vector.shape_cast %511 : vector<1x1x32xf32> to vector<1x32xf32>
    %513 = vector.broadcast %512 : vector<1x32xf32> to vector<48x32xf32>
    %514 = arith.addf %510, %513 : vector<48x32xf32>
    %515 = arith.addf %461, %514 : vector<48x32xf32>
    %c0_248 = arith.constant 0 : index
    %c0_249 = arith.constant 0 : index
    %516 = vector.load %arg21[%c0_248, %c0_249] : memref<1x32xf32, #tpu.memory_space<vmem>>, vector<1x32xf32>
    %c0_250 = arith.constant 0 : index
    %c0_251 = arith.constant 0 : index
    %517 = vector.load %arg22[%c0_250, %c0_251] : memref<1x32xf32, #tpu.memory_space<vmem>>, vector<1x32xf32>
    %cst_252 = arith.constant dense<0.000000e+00> : vector<48xf32>
    %518 = vector.multi_reduction <add>, %515, %cst_252 [1] : vector<48x32xf32> to vector<48xf32>
    %519 = vector.shape_cast %518 : vector<48xf32> to vector<48x1xf32>
    %cst_253 = arith.constant 3.200000e+01 : f32
    %520 = vector.broadcast %cst_253 : f32 to vector<48x1xf32>
    %521 = arith.divf %519, %520 : vector<48x1xf32>
    %522 = vector.broadcast %521 : vector<48x1xf32> to vector<48x32xf32>
    %523 = arith.subf %515, %522 : vector<48x32xf32>
    %524 = arith.mulf %523, %523 : vector<48x32xf32>
    %cst_254 = arith.constant dense<0.000000e+00> : vector<48xf32>
    %525 = vector.multi_reduction <add>, %524, %cst_254 [1] : vector<48x32xf32> to vector<48xf32>
    %526 = vector.shape_cast %525 : vector<48xf32> to vector<48x1xf32>
    %cst_255 = arith.constant 3.200000e+01 : f32
    %527 = vector.broadcast %cst_255 : f32 to vector<48x1xf32>
    %528 = arith.divf %526, %527 : vector<48x1xf32>
    %cst_256 = arith.constant 9.99999974E-6 : f32
    %529 = vector.broadcast %cst_256 : f32 to vector<48x1xf32>
    %530 = arith.addf %528, %529 : vector<48x1xf32>
    %531 = math.rsqrt %530 : vector<48x1xf32>
    %532 = vector.broadcast %531 : vector<48x1xf32> to vector<48x32xf32>
    %533 = arith.mulf %523, %532 : vector<48x32xf32>
    %534 = vector.broadcast %516 : vector<1x32xf32> to vector<48x32xf32>
    %535 = arith.mulf %533, %534 : vector<48x32xf32>
    %536 = vector.broadcast %517 : vector<1x32xf32> to vector<48x32xf32>
    %537 = arith.addf %535, %536 : vector<48x32xf32>
    %538 = arith.truncf %537 : vector<48x32xf32> to vector<48x32xbf16>
    %c0_257 = arith.constant 0 : index
    %c0_258 = arith.constant 0 : index
    %539 = vector.load %arg23[%c0_257, %c0_258] : memref<32x128xbf16, #tpu.memory_space<vmem>>, vector<32x128xbf16>
    %cst_259 = arith.constant dense<0.000000e+00> : vector<48x128xf32>
    %540 = tpu.matmul %538, %539, %cst_259 {dimension_numbers = #tpu.dot_dimension_numbers<[1], [0], [0], [1], [0, 0, 1, 1], [], []>} : vector<48x32xbf16>, vector<32x128xbf16>, vector<48x128xf32> -> vector<48x128xf32>
    %c0_260 = arith.constant 0 : index
    %c0_261 = arith.constant 0 : index
    %541 = vector.load %arg24[%c0_260, %c0_261] : memref<1x128xf32, #tpu.memory_space<vmem>>, vector<1x128xf32>
    %542 = vector.broadcast %541 : vector<1x128xf32> to vector<48x128xf32>
    %543 = arith.addf %540, %542 : vector<48x128xf32>
    %544 = vector.extract_strided_slice %543 {offsets = [8, 0], sizes = [16, 128], strides = [1, 1]} : vector<48x128xf32> to vector<16x128xf32>
    %c0_262 = arith.constant 0 : index
    %c0_263 = arith.constant 0 : index
    %545 = vector.load %arg25[%c0_262, %c0_263] : memref<32x128xf32, #tpu.memory_space<vmem>>, vector<16x128xf32>
    tpu.vector_store %arg25[%c0_262, %c0_263], %544 {strides = array<i32>} : memref<32x128xf32, #tpu.memory_space<vmem>>, vector<16x128xf32>,
    %546 = vector.extract_strided_slice %543 {offsets = [32, 0], sizes = [16, 128], strides = [1, 1]} : vector<48x128xf32> to vector<16x128xf32>
    %c16_264 = arith.constant 16 : index
    %c0_265 = arith.constant 0 : index
    %547 = vector.load %arg25[%c16_264, %c0_265] : memref<32x128xf32, #tpu.memory_space<vmem>>, vector<16x128xf32>
    tpu.vector_store %arg25[%c16_264, %c0_265], %546 {strides = array<i32>} : memref<32x128xf32, #tpu.memory_space<vmem>>, vector<16x128xf32>,
    return
  }
  func.func @transform_0(%arg0: i32) -> (i32, i32) {
    %c0_i32 = arith.constant 0 : i32
    %c0_i32_0 = arith.constant 0 : i32
    %c0_i32_1 = arith.constant 0 : i32
    return %c0_i32, %c0_i32_0 : i32, i32
  }
  func.func @transform_1(%arg0: i32) -> (i32, i32) {
    %c0_i32 = arith.constant 0 : i32
    %c0_i32_0 = arith.constant 0 : i32
    %c0_i32_1 = arith.constant 0 : i32
    return %c0_i32, %c0_i32_0 : i32, i32
  }
  func.func @transform_2(%arg0: i32) -> (i32, i32) {
    %c0_i32 = arith.constant 0 : i32
    %c0_i32_0 = arith.constant 0 : i32
    %c0_i32_1 = arith.constant 0 : i32
    return %c0_i32, %c0_i32_0 : i32, i32
  }
  func.func @transform_3(%arg0: i32) -> (i32, i32) {
    %c0_i32 = arith.constant 0 : i32
    %c0_i32_0 = arith.constant 0 : i32
    %c0_i32_1 = arith.constant 0 : i32
    return %c0_i32, %c0_i32_0 : i32, i32
  }
  func.func @transform_4(%arg0: i32) -> (i32, i32, i32) {
    %c0_i32 = arith.constant 0 : i32
    %c0_i32_0 = arith.constant 0 : i32
    %c0_i32_1 = arith.constant 0 : i32
    %c0_i32_2 = arith.constant 0 : i32
    return %c0_i32, %c0_i32_0, %c0_i32_1 : i32, i32, i32
  }
  func.func @transform_5(%arg0: i32) -> (i32, i32, i32) {
    %c0_i32 = arith.constant 0 : i32
    %c0_i32_0 = arith.constant 0 : i32
    %c0_i32_1 = arith.constant 0 : i32
    %c0_i32_2 = arith.constant 0 : i32
    return %c0_i32, %c0_i32_0, %c0_i32_1 : i32, i32, i32
  }
  func.func @transform_6(%arg0: i32) -> (i32, i32, i32) {
    %c0_i32 = arith.constant 0 : i32
    %c0_i32_0 = arith.constant 0 : i32
    %c0_i32_1 = arith.constant 0 : i32
    %c0_i32_2 = arith.constant 0 : i32
    return %c0_i32, %c0_i32_0, %c0_i32_1 : i32, i32, i32
  }
  func.func @transform_7(%arg0: i32) -> (i32, i32, i32) {
    %c0_i32 = arith.constant 0 : i32
    %c0_i32_0 = arith.constant 0 : i32
    %c0_i32_1 = arith.constant 0 : i32
    %c0_i32_2 = arith.constant 0 : i32
    return %c0_i32, %c0_i32_0, %c0_i32_1 : i32, i32, i32
  }
  func.func @transform_8(%arg0: i32) -> (i32, i32, i32) {
    %c0_i32 = arith.constant 0 : i32
    %c0_i32_0 = arith.constant 0 : i32
    %c0_i32_1 = arith.constant 0 : i32
    %c0_i32_2 = arith.constant 0 : i32
    return %c0_i32, %c0_i32_0, %c0_i32_1 : i32, i32, i32
  }
  func.func @transform_9(%arg0: i32) -> (i32, i32, i32) {
    %c0_i32 = arith.constant 0 : i32
    %c0_i32_0 = arith.constant 0 : i32
    %c0_i32_1 = arith.constant 0 : i32
    %c0_i32_2 = arith.constant 0 : i32
    return %c0_i32, %c0_i32_0, %c0_i32_1 : i32, i32, i32
  }
  func.func @transform_10(%arg0: i32) -> (i32, i32, i32) {
    %c0_i32 = arith.constant 0 : i32
    %c0_i32_0 = arith.constant 0 : i32
    %c0_i32_1 = arith.constant 0 : i32
    %c0_i32_2 = arith.constant 0 : i32
    return %c0_i32, %c0_i32_0, %c0_i32_1 : i32, i32, i32
  }
  func.func @transform_11(%arg0: i32) -> (i32, i32, i32) {
    %c0_i32 = arith.constant 0 : i32
    %c0_i32_0 = arith.constant 0 : i32
    %c0_i32_1 = arith.constant 0 : i32
    %c0_i32_2 = arith.constant 0 : i32
    return %c0_i32, %c0_i32_0, %c0_i32_1 : i32, i32, i32
  }
  func.func @transform_12(%arg0: i32) -> (i32, i32, i32) {
    %c0_i32 = arith.constant 0 : i32
    %c0_i32_0 = arith.constant 0 : i32
    %c0_i32_1 = arith.constant 0 : i32
    %c0_i32_2 = arith.constant 0 : i32
    return %c0_i32, %c0_i32_0, %c0_i32_1 : i32, i32, i32
  }
  func.func @transform_13(%arg0: i32) -> (i32, i32, i32) {
    %c0_i32 = arith.constant 0 : i32
    %c0_i32_0 = arith.constant 0 : i32
    %c0_i32_1 = arith.constant 0 : i32
    %c0_i32_2 = arith.constant 0 : i32
    return %c0_i32, %c0_i32_0, %c0_i32_1 : i32, i32, i32
  }
  func.func @transform_14(%arg0: i32) -> (i32, i32, i32) {
    %c0_i32 = arith.constant 0 : i32
    %c0_i32_0 = arith.constant 0 : i32
    %c0_i32_1 = arith.constant 0 : i32
    %c0_i32_2 = arith.constant 0 : i32
    return %c0_i32, %c0_i32_0, %c0_i32_1 : i32, i32, i32
  }
  func.func @transform_15(%arg0: i32) -> (i32, i32, i32) {
    %c0_i32 = arith.constant 0 : i32
    %c0_i32_0 = arith.constant 0 : i32
    %c0_i32_1 = arith.constant 0 : i32
    %c0_i32_2 = arith.constant 0 : i32
    return %c0_i32, %c0_i32_0, %c0_i32_1 : i32, i32, i32
  }
  func.func @transform_16(%arg0: i32) -> (i32, i32, i32) {
    %c0_i32 = arith.constant 0 : i32
    %c0_i32_0 = arith.constant 0 : i32
    %c0_i32_1 = arith.constant 0 : i32
    %c0_i32_2 = arith.constant 0 : i32
    return %c0_i32, %c0_i32_0, %c0_i32_1 : i32, i32, i32
  }
  func.func @transform_17(%arg0: i32) -> (i32, i32, i32) {
    %c0_i32 = arith.constant 0 : i32
    %c0_i32_0 = arith.constant 0 : i32
    %c0_i32_1 = arith.constant 0 : i32
    %c0_i32_2 = arith.constant 0 : i32
    return %c0_i32, %c0_i32_0, %c0_i32_1 : i32, i32, i32
  }
  func.func @transform_18(%arg0: i32) -> (i32, i32, i32) {
    %c0_i32 = arith.constant 0 : i32
    %c0_i32_0 = arith.constant 0 : i32
    %c0_i32_1 = arith.constant 0 : i32
    %c0_i32_2 = arith.constant 0 : i32
    return %c0_i32, %c0_i32_0, %c0_i32_1 : i32, i32, i32
  }
  func.func @transform_19(%arg0: i32) -> (i32, i32, i32) {
    %c0_i32 = arith.constant 0 : i32
    %c0_i32_0 = arith.constant 0 : i32
    %c0_i32_1 = arith.constant 0 : i32
    %c0_i32_2 = arith.constant 0 : i32
    return %c0_i32, %c0_i32_0, %c0_i32_1 : i32, i32, i32
  }
  func.func @transform_20(%arg0: i32) -> (i32, i32) {
    %c0_i32 = arith.constant 0 : i32
    %c0_i32_0 = arith.constant 0 : i32
    %c0_i32_1 = arith.constant 0 : i32
    return %c0_i32, %c0_i32_0 : i32, i32
  }
  func.func @transform_21(%arg0: i32) -> (i32, i32) {
    %c0_i32 = arith.constant 0 : i32
    %c0_i32_0 = arith.constant 0 : i32
    %c0_i32_1 = arith.constant 0 : i32
    return %c0_i32, %c0_i32_0 : i32, i32
  }
  func.func @transform_22(%arg0: i32) -> (i32, i32) {
    %c0_i32 = arith.constant 0 : i32
    %c0_i32_0 = arith.constant 0 : i32
    %c0_i32_1 = arith.constant 0 : i32
    return %c0_i32, %c0_i32_0 : i32, i32
  }
  func.func @transform_23(%arg0: i32) -> (i32, i32) {
    %c0_i32 = arith.constant 0 : i32
    %c0_i32_0 = arith.constant 0 : i32
    %c0_i32_1 = arith.constant 0 : i32
    return %c0_i32, %c0_i32_0 : i32, i32
  }
  func.func @transform_24(%arg0: i32) -> (i32, i32) {
    %c0_i32 = arith.constant 0 : i32
    %c0_i32_0 = arith.constant 0 : i32
    %c0_i32_1 = arith.constant 0 : i32
    return %c0_i32, %c0_i32_0 : i32, i32
  }
}

</mosaic_0001>

<bundles_post_ra>
// kernel: tpu_custom_call.1
= control target key start
LH: loop header
LB: loop body
LE: loop exit
PB: predicated region body
PF: predicated region fallthrough
CT: control target
= control target key end

     0   :  { %s8167_s0 = inlined_call_operand.vmem [shape: f32[16,4], index: 0, kind: input, shape index: {}]   ;;  %s8168_s1 = inlined_call_operand.hbm [shape: bf16[4,32], index: 1, kind: input, shape index: {}]   ;;  %s8169_s2 = inlined_call_operand.hbm [shape: f32[16,32], index: 2, kind: input, shape index: {}]   ;;  %s8170_s3 = inlined_call_operand.vmem [shape: f32[24,32], index: 3, kind: input, shape index: {}]   ;;  %s8171_s4 = inlined_call_operand.hbm [shape: f32[2,1,32], index: 4, kind: input, shape index: {}]   ;;  %s8172_s5 = inlined_call_operand.hbm [shape: f32[2,1,32], index: 5, kind: input, shape index: {}]   ;;  %s8173_s6 = inlined_call_operand.vmem [shape: bf16[2,32,32], index: 6, kind: input, shape index: {}]   ;;  %s8174_s7 = inlined_call_operand.hbm [shape: f32[2,1,32], index: 7, kind: input, shape index: {}]   ;;  %s8175_s8 = inlined_call_operand.vmem [shape: bf16[2,32,32], index: 8, kind: input, shape index: {}]   ;;  %s8176_s9 = inlined_call_operand.hbm [shape: f32[2,1,32], index: 9, kind: input, shape index: {}]   ;;  %s8177_s10 = inlined_call_operand.vmem [shape: bf16[2,32,32], index: 10, kind: input, shape index: {}]   ;;  %s8178_s11 = inlined_call_operand.hbm [shape: f32[2,1,32], index: 11, kind: input, shape index: {}]   ;;  %s8179_s12 = inlined_call_operand.vmem [shape: bf16[2,32,32], index: 12, kind: input, shape index: {}]   ;;  %s8180_s13 = inlined_call_operand.hbm [shape: f32[2,1,32], index: 13, kind: input, shape index: {}]   ;;  %s8181_s14 = inlined_call_operand.hbm [shape: f32[2,1,32], index: 14, kind: input, shape index: {}]   ;;  %s8182_s15 = inlined_call_operand.vmem [shape: f32[2,1,32], index: 15, kind: input, shape index: {}]   ;;  %s8183_s16 = inlined_call_operand.vmem [shape: bf16[2,32,128], index: 16, kind: input, shape index: {}]   ;;  %s8184_s17 = inlined_call_operand.vmem [shape: f32[2,1,128], index: 17, kind: input, shape index: {}]   ;;  %s8185_s18 = inlined_call_operand.vmem [shape: bf16[2,128,32], index: 18, kind: input, shape index: {}]   ;;  %s8186_s19 = inlined_call_operand.vmem [shape: f32[2,1,32], index: 19, kind: input, shape index: {}]   ;;  %s8187_s20 = inlined_call_operand.vmem [shape: f32[1,32], index: 20, kind: input, shape index: {}]   ;;  %s8188_s21 = inlined_call_operand.vmem [shape: f32[1,32], index: 21, kind: input, shape index: {}]   ;;  %s8189_s22 = inlined_call_operand.vmem [shape: bf16[32,128], index: 22, kind: input, shape index: {}]   ;;  %s8190_s23 = inlined_call_operand.vmem [shape: f32[1,128], index: 23, kind: input, shape index: {}]   ;;  %s8191_s24 = inlined_call_operand.hbm [shape: f32[32,128], index: 24, kind: output, shape index: {}]  }
   0x1   :  { %8202 = sst [smem:[#allocation26_spill]] %s8167_s0 }
   0x2   :  { %8203 = sst [smem:[#allocation27_spill]] %s8168_s1 }
   0x3   :  { %8204 = sst [smem:[#allocation28_spill]] %s8169_s2 }
   0x4   :  { %8205 = sst [smem:[#allocation29_spill]] %s8170_s3 }
   0x5   :  { %8206 = sst [smem:[#allocation30_spill]] %s8171_s4 }
   0x6   :  { %8207 = sst [smem:[#allocation31_spill]] %s8172_s5 }
   0x7   :  { %8208 = sst [smem:[#allocation32_spill]] %s8173_s6 }
   0x8   :  { %8209 = sst [smem:[#allocation33_spill]] %s8174_s7 }
   0x9   :  { %8210 = sst [smem:[#allocation34_spill]] %s8175_s8 }
   0xa   :  { %8211 = sst [smem:[#allocation35_spill]] %s8188_s21 }
   0xb   :  { %8212 = sst [smem:[#allocation36_spill]] %s8190_s23 }
   0xc   :  { %8213 = sst [smem:[#allocation37_spill]] %s8191_s24 }
   0xd   :  { %29 = vsyncpa [#allocation5], 0 }
   0xe   :  { %30 = vsyncpa [#allocation8], 0 }
   0xf   :  { %31 = vsyncpa [#allocation11], 0 }
  0x10   :  { %32 = vsyncpa [#allocation14], 0 }
  0x11   :  { %33 = vsyncpa [#allocation17], 0 }
  0x12   :  { %34 = vsyncpa [#allocation6], 0  ;;  %s6566_s5 = smov [#allocation7]   ;;  %s8214_s6 = sld [smem:[#allocation28_spill]] }
  0x13   :  { %s52_s26 = sshll.u32 %s6566_s5, 4  ;;  %s53_s26 = int_to_ptr.vmem [resolvable:$true] %s52_s26 }
  0x18   :  { %s6334_s2 = scalar_lea.hbm %s8214_s6, 256 }
  0x19   :  { %p6335_p0 = scmp.ne.s32.totalorder %s8214_s6, %s6334_s2  ;;  %p6338_p1 = scmp.lt.u32.totalorder %s6334_s2, %s8214_s6 }
  0x1b   :  { %p6340_p2 = pnand %p6338_p1, %p6335_p0 }
  0x1d   :  { %6343 = shalt.err (!%p6340_p2)
}
  0x1e   :  { %s6344_s3 = scalar_lea.vmem %s53_s26, 256  ;;  %p6349_p4 = scmp.lt.s32.totalorder %s53_s26, %s53_s26 }
  0x1f   :  { %p6345_p3 = scmp.ne.s32.totalorder %s53_s26, %s6344_s3  ;;  %p6350_p5 = scmp.lt.s32.totalorder %s6344_s3, %s6344_s3 }
  0x21   :  { %p6351_p6 = por %p6350_p5, %p6349_p4 }
  0x23   :  { %p6352_p7 = pnand %p6351_p6, %p6345_p3 }
  0x25   :  { %6355 = shalt.err (!%p6352_p7)
}
  0x26   :  { %s6567_s25 = smov 128   ;;  %s6568_s8 = smov 8  }
  0x27   :  { %58 = dma.hbm_to_vmem [thread:$0]  %s8214_s6, 256, %s53_s26, [#allocation8], %s6567_s25, %s6567_s25, %s6568_s8  }
  0x28   :  { %s6569_s5 = smov [#allocation10]   ;;  %s6570_s28 = smov [#allocation13]  }
  0x29   :  { %s78_s27 = sshll.u32 %s6569_s5, 4  ;;  %s106_s2 = sshll.u32 %s6570_s28, 4  ;;  %s79_s27 = int_to_ptr.vmem [resolvable:$true] %s78_s27  ;;  %s107_s2 = int_to_ptr.vmem [resolvable:$true] %s106_s2 }
  0x2a   :  { %s8215_s7 = sld [smem:[#allocation31_spill]] }
  0x30   :  { %s6356_s30 = scalar_lea.hbm %s8215_s7, 32 }
  0x31   :  { %p6357_p8 = scmp.ne.s32.totalorder %s8215_s7, %s6356_s30  ;;  %p6360_p9 = scmp.lt.u32.totalorder %s6356_s30, %s8215_s7 }
  0x33   :  { %p6362_p10 = pnand %p6360_p9, %p6357_p8 }
  0x35   :  { %6365 = shalt.err (!%p6362_p10)
}
  0x36   :  { %s6366_s26 = scalar_lea.vmem %s79_s27, 32  ;;  %p6371_p12 = scmp.lt.s32.totalorder %s79_s27, %s79_s27 }
  0x37   :  { %p6367_p11 = scmp.ne.s32.totalorder %s79_s27, %s6366_s26  ;;  %p6372_p13 = scmp.lt.s32.totalorder %s6366_s26, %s6366_s26 }
  0x39   :  { %p6373_p0 = por %p6372_p13, %p6371_p12 }
  0x3b   :  { %p6374_p1 = pnand %p6373_p0, %p6367_p11 }
  0x3d   :  { %6377 = shalt.err (!%p6374_p1)
}
  0x3e   :  { %s6571_s6 = smov 16   ;;  %s6572_s4 = smov 1  }
  0x3f   :  { %84 = dma.hbm_to_vmem [thread:$0]  %s8215_s7, 32, %s79_s27, [#allocation11], %s6571_s6, %s6571_s6, %s6572_s4  }
  0x40   :  { %s6378_s5 = scalar_lea.hbm %s8176_s9, 32 }
  0x41   :  { %p6379_p2 = scmp.ne.s32.totalorder %s8176_s9, %s6378_s5  ;;  %p6382_p3 = scmp.lt.u32.totalorder %s6378_s5, %s8176_s9 }
  0x43   :  { %p6384_p4 = pnand %p6382_p3, %p6379_p2 }
  0x45   :  { %6387 = shalt.err (!%p6384_p4)
}
  0x46   :  { %s6388_s3 = scalar_lea.vmem %s107_s2, 32  ;;  %p6393_p6 = scmp.lt.s32.totalorder %s107_s2, %s107_s2 }
  0x47   :  { %p6389_p5 = scmp.ne.s32.totalorder %s107_s2, %s6388_s3  ;;  %p6394_p7 = scmp.lt.s32.totalorder %s6388_s3, %s6388_s3 }
  0x49   :  { %p6395_p8 = por %p6394_p7, %p6393_p6 }
  0x4b   :  { %p6396_p9 = pnand %p6395_p8, %p6389_p5 }
  0x4d   :  { %6399 = shalt.err (!%p6396_p9)
}
  0x4e   :  { %112 = dma.hbm_to_vmem [thread:$0]  %s8176_s9, 32, %s107_s2, [#allocation14], %s6571_s6, %s6571_s6, %s6572_s4  }
  0x4f   :  { %s6573_s26 = smov [#allocation16]   ;;  %s6574_s1 = smov [#allocation4]  }
  0x50   :  { %s134_s24 = sshll.u32 %s6573_s26, 4  ;;  %s43_s21 = sshll.u32 %s6574_s1, 4  ;;  %s135_s24 = int_to_ptr.vmem [resolvable:$true] %s134_s24  ;;  %s44_s21 = int_to_ptr.vmem [resolvable:$true] %s43_s21 }
  0x51   :  { %s6400_s28 = scalar_lea.hbm %s8180_s13, 32 }
  0x52   :  { %p6401_p10 = scmp.ne.s32.totalorder %s8180_s13, %s6400_s28  ;;  %p6404_p11 = scmp.lt.u32.totalorder %s6400_s28, %s8180_s13 }
  0x54   :  { %p6406_p12 = pnand %p6404_p11, %p6401_p10 }
  0x56   :  { %6409 = shalt.err (!%p6406_p12)
}
  0x57   :  { %s6410_s9 = scalar_lea.vmem %s135_s24, 32  ;;  %p6415_p0 = scmp.lt.s32.totalorder %s135_s24, %s135_s24 }
  0x58   :  { %p6411_p13 = scmp.ne.s32.totalorder %s135_s24, %s6410_s9  ;;  %p6416_p1 = scmp.lt.s32.totalorder %s6410_s9, %s6410_s9 }
  0x5a   :  { %p6417_p2 = por %p6416_p1, %p6415_p0 }
  0x5c   :  { %p6418_p3 = pnand %p6417_p2, %p6411_p13 }
  0x5e   :  { %6421 = shalt.err (!%p6418_p3)
}
  0x5f   :  { %140 = dma.hbm_to_vmem [thread:$0]  %s8180_s13, 32, %s135_s24, [#allocation17], %s6571_s6, %s6571_s6, %s6572_s4  }
  0x60   :  { %s8216_s1 = sld [smem:[#allocation27_spill]] }
  0x66   :  { %s6422_s23 = scalar_lea.hbm %s8216_s1, 32 }
  0x67   :  { %p6423_p4 = scmp.ne.s32.totalorder %s8216_s1, %s6422_s23  ;;  %p6426_p5 = scmp.lt.u32.totalorder %s6422_s23, %s8216_s1 }
  0x69   :  { %p6428_p6 = pnand %p6426_p5, %p6423_p4 }
  0x6b   :  { %6431 = shalt.err (!%p6428_p6)
}
  0x6c   :  { %s6432_s30 = scalar_lea.vmem %s44_s21, 32  ;;  %p6437_p8 = scmp.lt.s32.totalorder %s44_s21, %s44_s21 }
  0x6d   :  { %p6433_p7 = scmp.ne.s32.totalorder %s44_s21, %s6432_s30  ;;  %p6438_p9 = scmp.lt.s32.totalorder %s6432_s30, %s6432_s30 }
  0x6f   :  { %p6439_p10 = por %p6438_p9, %p6437_p8 }
  0x71   :  { %p6440_p11 = pnand %p6439_p10, %p6433_p7 }
  0x73   :  { %6443 = shalt.err (!%p6440_p11)
}
  0x74   :  { %46 = dma.hbm_to_vmem [thread:$0]  %s8216_s1, 32, %s44_s21, [#allocation5]  }
  0x75   :  { %s6575_s3 = smov [#allocation9]   ;;  %s6576_s2 = smov [#allocation12]  }
  0x76   :  { %s66_s9 = sshll.u32 %s6575_s3, 4  ;;  %s92_s27 = sshll.u32 %s6576_s2, 4  ;;  %s67_s9 = int_to_ptr.vmem [resolvable:$true] %s66_s9  ;;  %s93_s27 = int_to_ptr.vmem [resolvable:$true] %s92_s27 }
  0x77   :  { %s8217_s23 = sld [smem:[#allocation30_spill]] }
  0x7d   :  { %s6444_s5 = scalar_lea.hbm %s8217_s23, 32 }
  0x7e   :  { %p6445_p12 = scmp.ne.s32.totalorder %s8217_s23, %s6444_s5  ;;  %p6448_p13 = scmp.lt.u32.totalorder %s6444_s5, %s8217_s23 }
  0x80   :  { %p6450_p0 = pnand %p6448_p13, %p6445_p12 }
  0x82   :  { %6453 = shalt.err (!%p6450_p0)
}
  0x83   :  { %s6454_s21 = scalar_lea.vmem %s67_s9, 32  ;;  %p6459_p2 = scmp.lt.s32.totalorder %s67_s9, %s67_s9 }
  0x84   :  { %p6455_p1 = scmp.ne.s32.totalorder %s67_s9, %s6454_s21  ;;  %p6460_p3 = scmp.lt.s32.totalorder %s6454_s21, %s6454_s21 }
  0x86   :  { %p6461_p4 = por %p6460_p3, %p6459_p2 }
  0x88   :  { %p6462_p5 = pnand %p6461_p4, %p6455_p1 }
  0x8a   :  { %6465 = shalt.err (!%p6462_p5)
}
  0x8b   :  { %72 = dma.hbm_to_vmem [thread:$0]  %s8217_s23, 32, %s67_s9, [#allocation8], %s6571_s6, %s6571_s6, %s6572_s4  }
  0x8c   :  { %s8218_s2 = sld [smem:[#allocation33_spill]] }
  0x92   :  { %s6466_s7 = scalar_lea.hbm %s8218_s2, 32 }
  0x93   :  { %p6467_p6 = scmp.ne.s32.totalorder %s8218_s2, %s6466_s7  ;;  %p6470_p7 = scmp.lt.u32.totalorder %s6466_s7, %s8218_s2 }
  0x95   :  { %p6472_p8 = pnand %p6470_p7, %p6467_p6 }
  0x97   :  { %6475 = shalt.err (!%p6472_p8)
}
  0x98   :  { %s6476_s0 = scalar_lea.vmem %s93_s27, 32  ;;  %p6481_p10 = scmp.lt.s32.totalorder %s93_s27, %s93_s27 }
  0x99   :  { %p6477_p9 = scmp.ne.s32.totalorder %s93_s27, %s6476_s0  ;;  %p6482_p11 = scmp.lt.s32.totalorder %s6476_s0, %s6476_s0 }
  0x9b   :  { %p6483_p12 = por %p6482_p11, %p6481_p10 }
  0x9d   :  { %p6484_p13 = pnand %p6483_p12, %p6477_p9 }
  0x9f   :  { %6487 = shalt.err (!%p6484_p13)
}
  0xa0   :  { %98 = dma.hbm_to_vmem [thread:$0]  %s8218_s2, 32, %s93_s27, [#allocation11], %s6571_s6, %s6571_s6, %s6572_s4  }
  0xa1   :  { %s6577_s30 = smov [#allocation15]   ;;  %s6578_s1 = smov [#allocation18]  }
  0xa2   :  { %s120_s21 = sshll.u32 %s6577_s30, 4  ;;  %s146_s13 = sshll.u32 %s6578_s1, 4  ;;  %s121_s21 = int_to_ptr.vmem [resolvable:$true] %s120_s21  ;;  %s147_s13 = int_to_ptr.vmem [resolvable:$true] %s146_s13 }
  0xa3   :  { %s6488_s7 = scalar_lea.hbm %s8178_s11, 32 }
  0xa4   :  { %p6489_p0 = scmp.ne.s32.totalorder %s8178_s11, %s6488_s7  ;;  %p6492_p1 = scmp.lt.u32.totalorder %s6488_s7, %s8178_s11 }
  0xa6   :  { %p6494_p2 = pnand %p6492_p1, %p6489_p0 }
  0xa8   :  { %6497 = shalt.err (!%p6494_p2)
}
  0xa9   :  { %s6498_s27 = scalar_lea.vmem %s121_s21, 32  ;;  %p6503_p4 = scmp.lt.s32.totalorder %s121_s21, %s121_s21 }
  0xaa   :  { %p6499_p3 = scmp.ne.s32.totalorder %s121_s21, %s6498_s27  ;;  %p6504_p5 = scmp.lt.s32.totalorder %s6498_s27, %s6498_s27 }
  0xac   :  { %p6505_p6 = por %p6504_p5, %p6503_p4 }
  0xae   :  { %p6506_p7 = pnand %p6505_p6, %p6499_p3 }
  0xb0   :  { %6509 = shalt.err (!%p6506_p7)
}
  0xb1   :  { %126 = dma.hbm_to_vmem [thread:$0]  %s8178_s11, 32, %s121_s21, [#allocation14], %s6571_s6, %s6571_s6, %s6572_s4  }
  0xb2   :  { %s6510_s30 = scalar_lea.hbm %s8181_s14, 32 }
  0xb3   :  { %p6511_p8 = scmp.ne.s32.totalorder %s8181_s14, %s6510_s30  ;;  %p6514_p9 = scmp.lt.u32.totalorder %s6510_s30, %s8181_s14 }
  0xb5   :  { %p6516_p10 = pnand %p6514_p9, %p6511_p8 }
  0xb7   :  { %6519 = shalt.err (!%p6516_p10)
}
  0xb8   :  { %s6520_s26 = scalar_lea.vmem %s147_s13, 32  ;;  %p6525_p12 = scmp.lt.s32.totalorder %s147_s13, %s147_s13 }
  0xb9   :  { %p6521_p11 = scmp.ne.s32.totalorder %s147_s13, %s6520_s26  ;;  %p6526_p13 = scmp.lt.s32.totalorder %s6520_s26, %s6520_s26 }
  0xbb   :  { %p6527_p0 = por %p6526_p13, %p6525_p12 }
  0xbd   :  { %p6528_p1 = pnand %p6527_p0, %p6521_p11 }
  0xbf   :  { %6531 = shalt.err (!%p6528_p1)
}
  0xc0   :  { %152 = dma.hbm_to_vmem [thread:$0]  %s8181_s14, 32, %s147_s13, [#allocation17], %s6571_s6, %s6571_s6, %s6572_s4  }
  0xc1   :  { %6554 = dma.done.wait [#allocation5], 32  }
  0xc2   :  { %6555 = vsyncadd [#allocation5], 4294967264 }
  0xc3   :  { %6556 = dma.done.wait [#allocation8], 288  }
  0xc4   :  { %6557 = vsyncadd [#allocation8], 4294967008 }
  0xc5   :  { %6558 = dma.done.wait [#allocation11], 64  }
  0xc6   :  { %6559 = vsyncadd [#allocation11], 4294967232 }
  0xc7   :  { %6560 = dma.done.wait [#allocation14], 64  }
  0xc8   :  { %6561 = vsyncadd [#allocation14], 4294967232 }
  0xc9   :  { %6562 = dma.done.wait [#allocation17], 64  }
  0xca   :  { %6563 = vsyncadd [#allocation17], 4294967232  ;;  %v6579_v0 = vmov 0.0   ;;  %vm6580_vm0 = vmmov 0   ;;  %vm207_vm1 = vcmask 1041408   ;;  %s8219_s13 = sld [smem:[#allocation26_spill]] }
  0xcb   :  { %5452 = vmatprep.subr.bf16.mxu0 %v6579_v0  ;;  %5454 = vmatprep.mubr.msk.bf16.mxu0 %vm6580_vm0, %v6579_v0  ;;  %v202_v1 = vld [vmem:[#allocation4] sm:$0x3]  ;;  %vm203_vm2 = vcmask 31744   ;;  %s8220_s2 = sld [smem:[#allocation29_spill]]  ;;  %v256_v7 = vld [vmem:[#allocation7 + $0x8] sm:$0xff]  ;;  %vm260_vm3 = vcmask 261120  }
  0xcc   :  { %5458 = vmatprep.subr.bf16.mxu1 %v6579_v0  ;;  %5462 = vmatprep.mubr.msk.bf16.mxu1 %vm6580_vm0, %v6579_v0  ;;  %v209_v4 = vsel %vm207_vm1, %v202_v1, 0  ;;  %v255_v10 = vld [vmem:[#allocation7] sm:$0xff]  ;;  %s8221_s3 = sld [smem:[#allocation32_spill]]  ;;  %s8222_s11 = sld [smem:[#allocation34_spill]]  ;;  %vm640_vm4 = vcmask 64512   ;;  %vm743_vm5 = vcmask 1043456  }
  0xcd   :  { %5453 = vmatpush3.bf16.msra.mxu0 %v209_v4  ;;  %vm701_vm6 = vcmask 195584   ;;  %s6582_s0 = smov 112   ;;  %s6583_s9 = smov 104   ;;  %vm981_vm7 = vcmask 130112   ;;  %vm1162_vm8 = vcmask 195712   ;;  %vm1343_vm9 = vcmask 261312  }
  0xce   :  { %5474 = vmatprep.subr.bf16.mxu0 %v6579_v0  ;;  %s6584_s23 = smov 24   ;;  %s8223_s7 = sld [smem:[#allocation35_spill]] }
  0xcf   :  { %s6585_s21 = smov [#allocation19]  }
  0xd0   :  { %v199_v2 = vld [vmem:[%s8219_s13] sm:$0xff]  ;;  %v200_v3 = vld [vmem:[%s8219_s13 + $0x8] sm:$0xff]  ;;  %s5031_s14 = sshll.u32 %s6585_s21, 4  ;;  %s5032_s14 = int_to_ptr.vmem [resolvable:$true] %s5031_s14 }
  0xd1   :  { %v201_v5 = vpack.c.bf16 %v200_v3, %v199_v2  ;;  %v254_v6 = vld [vmem:[%s8220_s2 + $0x10] sm:$0xff]  ;;  %v253_v9 = vld [vmem:[%s8220_s2 + $0x8] sm:$0xff]  ;;  %v252_v14 = vld [vmem:[%s8220_s2] sm:$0xff]  ;;  %s6581_s2 = smov 120   ;;  %s6532_s4 = scalar_lea.vmem %s5032_s14, 512 }
  0xd2   :  { %v258_v8 = vadd.f32 %v256_v7, %v254_v6  ;;  %v257_v11 = vadd.f32 %v255_v10, %v253_v9  ;;  %v6014_v51 = vld [vmem:[%s8221_s3] sm:$0xff]   ;;  %v6016_v53 = vld [vmem:[%s8221_s3 + $0x8] sm:$0xff]   ;;  %p6533_p2 = scmp.ne.s32.totalorder %s5032_s14, %s6532_s4  ;;  %p6537_p3 = scmp.lt.s32.totalorder %s5032_s14, %s5032_s14 }
  0xd3   :  { %5455 = vmatmul.mubr.msk.bf16.vlgmr.msra.gmra.mrb[0].mxu0 %vm203_vm2, %v201_v5  ;;  %v6015_v52 = vld [vmem:[%s8222_s11] sm:$0xff]   ;;  %5459 = vmatpush3.bf16.msra.mxu1 %v6014_v51  ;;  %v6017_v54 = vld [vmem:[%s8222_s11 + $0x8] sm:$0xff]   ;;  %v6940_v51 = vld [vmem:[#allocation12] ss:$0 sm:$0xff]  ;;  %p6538_p4 = scmp.lt.s32.totalorder %s6532_s4, %s6532_s4 }
  0xd4   :  { %5478 = vmatprep.mubr.msk.bf16.mxu0 %vm6580_vm0, %v6579_v0  ;;  %263 = vst.msk [vmem:[#allocation2 + $0x10] sm:$0xff] %vm260_vm3, %v258_v8  ;;  %267 = vst.msk [vmem:[#allocation2 + $0x28] sm:$0xff] %vm260_vm3, %v258_v8  ;;  %5475 = vmatpush3.bf16.msra.mxu0 %v6015_v52 }
  0xd5   :  { %262 = vst.msk [vmem:[#allocation2 + $0x8] sm:$0xff] %vm260_vm3, %v257_v11  ;;  %266 = vst.msk [vmem:[#allocation2 + $0x20] sm:$0xff] %vm260_vm3, %v257_v11  ;;  %5460 = vmatprep.subr.bf16.mxu1 %v6579_v0  ;;  %5476 = vmatprep.subr.bf16.mxu0 %v6579_v0  ;;  %p6539_p5 = por %p6538_p4, %p6537_p3 }
  0xd7   :  { %5461 = vmatpush3.bf16.msra.mxu1 %v6016_v53  ;;  %v6942_v53 = vld [vmem:[#allocation13] ss:$0 sm:$0xff]  ;;  %p6540_p6 = pnand %p6539_p5, %p6533_p2 }
  0xd8   :  { %5477 = vmatpush3.bf16.msra.mxu0 %v6017_v54  ;;  %5490 = vmatprep.subr.bf16.mxu1 %v6579_v0 }
  0xdb   :  { %v270_v12 = vld [vmem:[#allocation2 + $0x10] sm:$0xff]  ;;  %v273_v48 = vld [vmem:[#allocation2 + $0x28] sm:$0xff] }
  0xdc   :  { %v282_v13 = vsel %vm260_vm3, %v270_v12, 0.0  ;;  %v269_v22 = vld [vmem:[#allocation2 + $0x8] sm:$0xff]  ;;  %v272_v44 = vld [vmem:[#allocation2 + $0x20] sm:$0xff]  ;;  %v291_v50 = vsel %vm260_vm3, %v273_v48, 0.0 }
  0xdd   :  { %283 = vadd.xlane.f32.xlu1 %v282_v13  ;;  %v279_v26 = vsel %vm260_vm3, %v269_v22, 0.0  ;;  %v288_v47 = vsel %vm260_vm3, %v272_v44, 0.0 }
 0x16a   :  { %v284_v27 = vpop.xlane.xlu1 %283 }
 0x16b   :  { %v297_v28 = vmul.f32 0.03125, %v284_v27 }
 0x16d   :  { %v6877_v30 = vsub.f32 %v270_v12, %v297_v28 }
 0x16f   :  { %v309_v38 = vmul.f32 %v6877_v30, %v6877_v30 }
 0x171   :  { %v319_v42 = vsel %vm260_vm3, %v309_v38, 0.0 }
 0x1a6   :  { %v245_v15 = vpop.f32.mrb[0].mxu0 }
 0x1a7   :  { %v259_v16 = vadd.f32 %v252_v14, %v245_v15  ;;  %v5456_v17 = vpop.f32.mrb[1].mxu0  ;;  %v5048_v15 = vld [vmem:[#allocation9] ss:$0 sm:$0xff] }
 0x1a8   :  { %v248_v18 = vpop.f32.mrb[2].mxu0 }
 0x1a9   :  { %261 = vst.msk [vmem:[#allocation2] sm:$0xff] %vm260_vm3, %v259_v16  ;;  %v264_v19 = vadd.f32 %v252_v14, %v248_v18  ;;  %v5457_v20 = vpop.f32.mrb[3].mxu0 }
 0x1ab   :  { %265 = vst.msk [vmem:[#allocation2 + $0x18] sm:$0xff] %vm260_vm3, %v264_v19 }
 0x1b0   :  { %v268_v21 = vld [vmem:[#allocation2] sm:$0xff] }
 0x1b1   :  { %v276_v23 = vsel %vm260_vm3, %v268_v21, 0.0 }
 0x1b2   :  { %277 = vadd.xlane.f32.xlu0 %v276_v23  ;;  %v271_v24 = vld [vmem:[#allocation2 + $0x18] sm:$0xff] }
 0x1b3   :  { %v285_v25 = vsel %vm260_vm3, %v271_v24, 0.0 }
 0x1b4   :  { %286 = vadd.xlane.f32.xlu1 %v285_v25 }
 0x1b6   :  { %280 = vadd.xlane.f32.xlu0 %v279_v26 }
 0x23f   :  { %v278_v29 = vpop.xlane.xlu0 %277 }
 0x240   :  { %v295_v31 = vmul.f32 0.03125, %v278_v29 }
 0x241   :  { %v287_v32 = vpop.xlane.xlu1 %286 }
 0x242   :  { %v301_v33 = vsub.f32 %v268_v21, %v295_v31  ;;  %v298_v34 = vmul.f32 0.03125, %v287_v32  ;;  %v5049_v21 = vld [vmem:[#allocation10] ss:$0 sm:$0xff] }
 0x243   :  { %v281_v35 = vpop.xlane.xlu0 %280 }
 0x244   :  { %v296_v36 = vmul.f32 0.03125, %v281_v35  ;;  %v307_v37 = vmul.f32 %v301_v33, %v301_v33  ;;  %v6881_v39 = vsub.f32 %v271_v24, %v298_v34  ;;  %v6019_v35 = vld [vmem:[%s8177_s10 + $0x8] sm:$0xff]  }
 0x246   :  { %v302_v40 = vsub.f32 %v269_v22, %v296_v36  ;;  %v313_v41 = vsel %vm260_vm3, %v307_v37, 0.0  ;;  %v310_v46 = vmul.f32 %v6881_v39, %v6881_v39 }
 0x247   :  { %314 = vadd.xlane.f32.xlu0 %v313_v41 }
 0x248   :  { %v308_v43 = vmul.f32 %v302_v40, %v302_v40  ;;  %v322_v49 = vsel %vm260_vm3, %v310_v46, 0.0 }
 0x24a   :  { %v316_v45 = vsel %vm260_vm3, %v308_v43, 0.0 }
 0x24b   :  { %320 = vadd.xlane.f32.xlu0 %v319_v42  ;;  %317 = vadd.xlane.f32.xlu1 %v316_v45 }
 0x24f   :  { %323 = vadd.xlane.f32.xlu1 %v322_v49  ;;  %289 = vadd.xlane.f32.xlu0 %v288_v47 }
 0x253   :  { %292 = vadd.xlane.f32.xlu1 %v291_v50 }
 0x2d4   :  { %v315_v55 = vpop.xlane.xlu0 %314 }
 0x2d5   :  { %v331_v56 = vmul.f32 0.03125, %v315_v55 }
 0x2d7   :  { %v337_v57 = vadd.f32 1e-05, %v331_v56 }
 0x2d8   :  { %v321_v58 = vpop.xlane.xlu0 %320  ;;  %v318_v59 = vpop.xlane.xlu1 %317 }
 0x2d9   :  { %6052 = vrsqrt.f32 %v337_v57  ;;  %v333_v60 = vmul.f32 0.03125, %v321_v58  ;;  %v332_v61 = vmul.f32 0.03125, %v318_v59 }
 0x2db   :  { %v338_v62 = vadd.f32 1e-05, %v332_v61  ;;  %v339_v63 = vadd.f32 1e-05, %v333_v60 }
 0x2dc   :  { %v324_v1 = vpop.xlane.xlu1 %323  ;;  %v290_v2 = vpop.xlane.xlu0 %289 }
 0x2dd   :  { %v334_v3 = vmul.f32 0.03125, %v324_v1  ;;  %v299_v4 = vmul.f32 0.03125, %v290_v2  ;;  %6054 = vrsqrt.f32 %v338_v62 }
 0x2de   :  { %6056 = vrsqrt.f32 %v339_v63 }
 0x2df   :  { %v340_v5 = vadd.f32 1e-05, %v334_v3  ;;  %v305_v6 = vsub.f32 %v272_v44, %v299_v4 }
 0x2e0   :  { %v293_v7 = vpop.xlane.xlu1 %292 }
 0x2e1   :  { %6058 = vrsqrt.f32 %v340_v5  ;;  %v300_v8 = vmul.f32 0.03125, %v293_v7  ;;  %v311_v9 = vmul.f32 %v305_v6, %v305_v6 }
 0x2e3   :  { %v6053_v10 = vpop.eup %6052  ;;  %v306_v11 = vsub.f32 %v273_v48, %v300_v8  ;;  %v325_v12 = vsel %vm260_vm3, %v311_v9, 0.0 }
 0x2e4   :  { %326 = vadd.xlane.f32.xlu0 %v325_v12  ;;  %v349_v14 = vmul.f32 %v6053_v10, %v301_v33 }
 0x2e5   :  { %v312_v13 = vmul.f32 %v306_v11, %v306_v11 }
 0x2e6   :  { %v361_v19 = vmul.f32 %v5048_v15, %v349_v14 }
 0x2e7   :  { %v328_v16 = vsel %vm260_vm3, %v312_v13, 0.0  ;;  %v6055_v17 = vpop.eup %6054 }
 0x2e8   :  { %329 = vadd.xlane.f32.xlu1 %v328_v16  ;;  %v350_v18 = vmul.f32 %v6055_v17, %v302_v40  ;;  %v6057_v20 = vpop.eup %6056  ;;  %v373_v25 = vadd.f32 %v5049_v21, %v361_v19 }
 0x2e9   :  { %v351_v27 = vmul.f32 %v6057_v20, %v6877_v30  ;;  %v6018_v30 = vld [vmem:[%s8177_s10] sm:$0xff]  }
 0x2ea   :  { %v362_v23 = vmul.f32 %v5048_v15, %v350_v18 }
 0x2eb   :  { %v6059_v22 = vpop.eup %6058  ;;  %v363_v31 = vmul.f32 %v5048_v15, %v351_v27 }
 0x2ec   :  { %v352_v24 = vmul.f32 %v6059_v22, %v6881_v39  ;;  %v374_v26 = vadd.f32 %v5049_v21, %v362_v23 }
 0x2ed   :  { %v375_v33 = vadd.f32 %v5049_v21, %v363_v31 }
 0x2ee   :  { %v379_v28 = vpack.c.bf16 %v374_v26, %v373_v25  ;;  %v364_v29 = vmul.f32 %v5048_v15, %v352_v24 }
 0x2f0   :  { %5463 = vmatmul.mubr.msk.bf16.vlgmr.msra.gmra.mrb[0].mxu1 %vm260_vm3, %v379_v28  ;;  %5479 = vmatmul.mubr.msk.bf16.vlgmr.msra.gmra.mrb[4].mxu0 %vm260_vm3, %v379_v28  ;;  %v376_v32 = vadd.f32 %v5049_v21, %v364_v29 }
 0x2f1   :  { %5466 = vmatprep.mubr.msk.bf16.mxu1 %vm6580_vm0, %v6579_v0  ;;  %5482 = vmatprep.mubr.msk.bf16.mxu0 %vm6580_vm0, %v6579_v0 }
 0x2f2   :  { %v380_v34 = vpack.c.bf16 %v376_v32, %v375_v33  ;;  %5491 = vmatpush3.bf16.msra.mxu1 %v6018_v30 }
 0x2f3   :  { %5492 = vmatprep.subr.bf16.mxu1 %v6579_v0 }
 0x2f6   :  { %5493 = vmatpush3.bf16.msra.mxu1 %v6019_v35 }
 0x2f8   :  { %5467 = vmatmul.mubr.msk.bf16.gmra.mrb[4].mxu1 %vm260_vm3, %v380_v34  ;;  %5483 = vmatmul.mubr.msk.bf16.gmra.mrb[8].mxu0 %vm260_vm3, %v380_v34 }
 0x2f9   :  { %5470 = vmatprep.mubr.msk.bf16.mxu1 %vm6580_vm0, %v6579_v0  ;;  %5486 = vmatprep.mubr.msk.bf16.mxu0 %vm6580_vm0, %v6579_v0 }
 0x371   :  { %v327_v36 = vpop.xlane.xlu0 %326 }
 0x372   :  { %v335_v37 = vmul.f32 0.03125, %v327_v36 }
 0x374   :  { %v341_v38 = vadd.f32 1e-05, %v335_v37 }
 0x375   :  { %v330_v39 = vpop.xlane.xlu1 %329 }
 0x376   :  { %6060 = vrsqrt.f32 %v341_v38  ;;  %v336_v40 = vmul.f32 0.03125, %v330_v39 }
 0x378   :  { %v342_v41 = vadd.f32 1e-05, %v336_v40  ;;  %v5062_v40 = vld [vmem:[#allocation15] ss:$0 sm:$0xff] }
 0x37a   :  { %6062 = vrsqrt.f32 %v342_v41 }
 0x380   :  { %v6061_v42 = vpop.eup %6060 }
 0x381   :  { %v353_v43 = vmul.f32 %v6061_v42, %v305_v6 }
 0x383   :  { %v365_v44 = vmul.f32 %v5048_v15, %v353_v43 }
 0x384   :  { %v6063_v45 = vpop.eup %6062 }
 0x385   :  { %v354_v46 = vmul.f32 %v6063_v45, %v306_v11  ;;  %v377_v48 = vadd.f32 %v5049_v21, %v365_v44 }
 0x387   :  { %v366_v47 = vmul.f32 %v5048_v15, %v354_v46 }
 0x389   :  { %v378_v49 = vadd.f32 %v5049_v21, %v366_v47 }
 0x38b   :  { %v381_v50 = vpack.c.bf16 %v378_v49, %v377_v48 }
 0x38d   :  { %5471 = vmatmul.mubr.msk.bf16.gmra.mrb[8].mxu1 %vm260_vm3, %v381_v50  ;;  %5487 = vmatmul.mubr.msk.bf16.gmra.mrb[12].mxu0 %vm260_vm3, %v381_v50 }
 0x38e   :  { %5494 = vmatprep.mubr.msk.bf16.mxu1 %vm6580_vm0, %v6579_v0 }
 0x395   :  { %5495 = vmatmul.mubr.msk.bf16.vlgmr.msra.gmra.mrb[12].mxu1 %vm260_vm3, %v379_v28 }
 0x396   :  { %5498 = vmatprep.mubr.msk.bf16.mxu1 %vm6580_vm0, %v6579_v0 }
 0x39d   :  { %5499 = vmatmul.mubr.msk.bf16.gmra.mrb[16].mxu1 %vm260_vm3, %v380_v34 }
 0x39e   :  { %5502 = vmatprep.mubr.msk.bf16.mxu1 %vm6580_vm0, %v6579_v0 }
 0x3a5   :  { %5503 = vmatmul.mubr.msk.bf16.gmra.mrb[20].mxu1 %vm260_vm3, %v381_v50 }
 0x3c3   :  { %v448_v52 = vpop.f32.mrb[0].mxu1  ;;  %v528_v54 = vpop.f32.mrb[4].mxu0 }
 0x3c4   :  { %v5464_v55 = vpop.f32.mrb[1].mxu1  ;;  %v5480_v56 = vpop.f32.mrb[5].mxu0  ;;  %v449_v59 = vadd.f32 %v6940_v51, %v448_v52  ;;  %v529_v60 = vadd.f32 %v6942_v53, %v528_v54 }
 0x3c5   :  { %v451_v57 = vpop.f32.mrb[2].mxu1  ;;  %v531_v58 = vpop.f32.mrb[6].mxu0 }
 0x3c6   :  { %v452_v61 = vadd.f32 %v6940_v51, %v451_v57  ;;  %v532_v62 = vadd.f32 %v6942_v53, %v531_v58  ;;  %v5465_v63 = vpop.f32.mrb[3].mxu1  ;;  %v5481_v1 = vpop.f32.mrb[7].mxu0 }
 0x3c8   :  { %v6948_v2 = vpack.c.bf16 %v452_v61, %v449_v59  ;;  %v6950_v3 = vpack.c.bf16 %v532_v62, %v529_v60 }
 0x3ca   :  { %5510 = vmatprep.mubr.msk.bf16.mxu0 %vm640_vm4, %v6948_v2  ;;  %806 = vrot.lane.b32.xlu0 %v6950_v3, %s6581_s2  ;;  %v648_v4 = vsel %vm640_vm4, %v6950_v3, 0 }
 0x3cb   :  { %5946 = vmatprep.subr.msk.bf16.mxu0 %vm640_vm4, %v6950_v3  ;;  %v456_v5 = vpop.f32.mrb[4].mxu1  ;;  %v536_v6 = vpop.f32.mrb[8].mxu0 }
 0x3cc   :  { %5507 = vmatpush3.bf16.xpose.msra.mxu0 %v648_v4  ;;  %v5468_v7 = vpop.f32.mrb[5].mxu1  ;;  %v5484_v8 = vpop.f32.mrb[9].mxu0  ;;  %v457_v11 = vadd.f32 %v6940_v51, %v456_v5  ;;  %v537_v12 = vadd.f32 %v6942_v53, %v536_v6 }
 0x3cd   :  { %v459_v9 = vpop.f32.mrb[6].mxu1  ;;  %v539_v10 = vpop.f32.mrb[10].mxu0 }
 0x3ce   :  { %v460_v13 = vadd.f32 %v6940_v51, %v459_v9  ;;  %v540_v14 = vadd.f32 %v6942_v53, %v539_v10  ;;  %v5469_v15 = vpop.f32.mrb[7].mxu1  ;;  %v5485_v16 = vpop.f32.mrb[11].mxu0 }
 0x3d0   :  { %v6964_v17 = vpack.c.bf16 %v460_v13, %v457_v11  ;;  %v6966_v18 = vpack.c.bf16 %v540_v14, %v537_v12 }
 0x3d2   :  { %808 = vrot.lane.b32.xlu1 %v6966_v18, %s6581_s2  ;;  %5947 = vmatprep.subr.msk.bf16.mxu0 %vm640_vm4, %v6966_v18  ;;  %v651_v19 = vsel %vm640_vm4, %v6966_v18, 0 }
 0x3d4   :  { %5509 = vmatpush3.bf16.xpose.msra.mxu0 %v651_v19 }
 0x3d6   :  { %800 = vrot.lane.b32.xlu1 %v6948_v2, %s6581_s2 }
 0x3da   :  { %802 = vrot.lane.b32.xlu1 %v6964_v17, %s6581_s2 }
 0x3db   :  { %5511 = vmatmul.mubr.msk.bf16.vlgmr.msra.gmra.mrb[16].mxu0 %vm640_vm4, %v6964_v17 }
 0x43c   :  { %v807_v20 = vpop.permute.xlu0 %806 }
 0x43d   :  { %5949 = vmatprep.subr.msk.bf16.mxu1 %vm640_vm4, %v807_v20  ;;  %v817_v21 = vsel %vm640_vm4, %v807_v20, 0 }
 0x43e   :  { %5523 = vmatpush3.bf16.xpose.msra.mxu1 %v817_v21 }
 0x444   :  { %v809_v22 = vpop.permute.xlu1 %808 }
 0x445   :  { %5950 = vmatprep.subr.msk.bf16.mxu1 %vm640_vm4, %v809_v22  ;;  %v820_v23 = vsel %vm640_vm4, %v809_v22, 0 }
 0x446   :  { %5525 = vmatpush3.bf16.xpose.msra.mxu1 %v820_v23 }
 0x448   :  { %v801_v24 = vpop.permute.xlu1 %800 }
 0x449   :  { %5526 = vmatprep.mubr.msk.bf16.mxu1 %vm640_vm4, %v801_v24 }
 0x44c   :  { %v803_v25 = vpop.permute.xlu1 %802 }
 0x44d   :  { %5527 = vmatmul.mubr.msk.bf16.vlgmr.msra.gmra.mrb[24].mxu1 %vm640_vm4, %v803_v25 }
 0x460   :  { %v464_v26 = vpop.f32.mrb[8].mxu1  ;;  %v544_v27 = vpop.f32.mrb[12].mxu0 }
 0x461   :  { %v5472_v28 = vpop.f32.mrb[9].mxu1  ;;  %v5488_v29 = vpop.f32.mrb[13].mxu0  ;;  %v6987_v33 = vadd.f32 %v6940_v51, %v464_v26  ;;  %v6990_v34 = vadd.f32 %v6942_v53, %v544_v27 }
 0x462   :  { %v467_v31 = vpop.f32.mrb[10].mxu1  ;;  %v547_v32 = vpop.f32.mrb[14].mxu0 }
 0x463   :  { %v6993_v30 = vadd.f32 %v6940_v51, %v467_v31  ;;  %v6996_v35 = vadd.f32 %v6942_v53, %v547_v32  ;;  %v5473_v36 = vpop.f32.mrb[11].mxu1  ;;  %v5489_v37 = vpop.f32.mrb[15].mxu0 }
 0x465   :  { %v633_v38 = vpack.c.bf16 %v6993_v30, %v6987_v33  ;;  %v636_v39 = vpack.c.bf16 %v6996_v35, %v6990_v34 }
 0x468   :  { %v608_v41 = vpop.f32.mrb[12].mxu1 }
 0x469   :  { %v5496_v42 = vpop.f32.mrb[13].mxu1  ;;  %v609_v44 = vadd.f32 %v5062_v40, %v608_v41 }
 0x46a   :  { %v611_v43 = vpop.f32.mrb[14].mxu1 }
 0x46b   :  { %v612_v45 = vadd.f32 %v5062_v40, %v611_v43  ;;  %v5497_v46 = vpop.f32.mrb[15].mxu1 }
 0x46d   :  { %v7002_v47 = vpack.c.bf16 %v612_v45, %v609_v44 }
 0x46f   :  { %5514 = vmatprep.subr.bf16.mxu0 %v7002_v47 }
 0x470   :  { %v616_v48 = vpop.f32.mrb[16].mxu1  ;;  %5515 = vmatpush3.bf16.msra.mxu0 %v7002_v47 }
 0x471   :  { %v5500_v49 = vpop.f32.mrb[17].mxu1  ;;  %v617_v51 = vadd.f32 %v5062_v40, %v616_v48 }
 0x472   :  { %v619_v50 = vpop.f32.mrb[18].mxu1 }
 0x473   :  { %v620_v52 = vadd.f32 %v5062_v40, %v619_v50  ;;  %v5501_v53 = vpop.f32.mrb[19].mxu1 }
 0x475   :  { %v7006_v54 = vpack.c.bf16 %v620_v52, %v617_v51 }
 0x477   :  { %5948 = vmatprep.subr.msk.bf16.mxu0 %vm743_vm5, %v7006_v54  ;;  %v745_v55 = vsel %vm743_vm5, %v7006_v54, 0 }
 0x478   :  { %v624_v56 = vpop.f32.mrb[20].mxu1  ;;  %5517 = vmatpush3.bf16.msra.mxu0 %v745_v55 }
 0x479   :  { %v7012_v57 = vadd.f32 %v5062_v40, %v624_v56  ;;  %v5504_v58 = vpop.f32.mrb[21].mxu1 }
 0x47a   :  { %v627_v59 = vpop.f32.mrb[22].mxu1 }
 0x47b   :  { %v7014_v60 = vadd.f32 %v5062_v40, %v627_v59  ;;  %v5505_v61 = vpop.f32.mrb[23].mxu1 }
 0x47d   :  { %v639_v62 = vpack.c.bf16 %v7014_v60, %v7012_v57 }
 0x4ae   :  { %v5512_v63 = vpop.f32.mrb[16].mxu0 }
 0x4af   :  { %v687_v1 = vpop.f32.mrb[17].mxu0  ;;  %v708_v8 = vsel %vm701_vm6, %v5512_v63, -inf }
 0x4b0   :  { %v5513_v4 = vpop.f32.mrb[18].mxu0  ;;  %v702_v5 = vsel %vm701_vm6, %v687_v1, -inf }
 0x4b1   :  { %703 = vmax.xlane.f32.xlu0 %v702_v5  ;;  %v690_v6 = vpop.f32.mrb[19].mxu0 }
 0x4b2   :  { %v705_v7 = vsel %vm701_vm6, %v690_v6, -inf }
 0x4b3   :  { %706 = vmax.xlane.f32.xlu1 %v705_v7 }
 0x4b5   :  { %709 = vmax.xlane.f32.xlu0 %v708_v8 }
 0x520   :  { %v5528_v9 = vpop.f32.mrb[24].mxu1 }
 0x521   :  { %v856_v10 = vpop.f32.mrb[25].mxu1  ;;  %v876_v11 = vsel %vm701_vm6, %v5528_v9, -inf }
 0x522   :  { %v5529_v12 = vpop.f32.mrb[26].mxu1  ;;  %877 = vmax.xlane.f32.xlu1 %v876_v11  ;;  %v870_v13 = vsel %vm701_vm6, %v856_v10, -inf }
 0x523   :  { %v859_v14 = vpop.f32.mrb[27].mxu1  ;;  %871 = vmax.xlane.f32.xlu0 %v870_v13 }
 0x524   :  { %v873_v15 = vsel %vm701_vm6, %v859_v14, -inf }
 0x527   :  { %874 = vmax.xlane.f32.xlu0 %v873_v15 }
 0x53e   :  { %v704_v16 = vpop.xlane.xlu0 %703 }
 0x53f   :  { %v711_v20 = vsub.f32 %v687_v1, %v704_v16 }
 0x540   :  { %v707_v19 = vpop.xlane.xlu1 %706 }
 0x541   :  { %v712_v21 = vsub.f32 %v690_v6, %v707_v19  ;;  %v714_v25 = vmul.f32 1.442695, %v711_v20 }
 0x542   :  { %v710_v22 = vpop.xlane.xlu0 %709 }
 0x543   :  { %v716_v23 = vmul.f32 1.442695, %v712_v21  ;;  %v713_v24 = vsub.f32 %v5512_v63, %v710_v22 }
 0x545   :  { %6064 = vpow2.f32 %v716_v23  ;;  %v718_v26 = vmul.f32 1.442695, %v713_v24 }
 0x547   :  { %6066 = vpow2.f32 %v718_v26 }
 0x548   :  { %6068 = vpow2.f32 %v714_v25 }
 0x54f   :  { %v6065_v27 = vpop.eup %6064 }
 0x550   :  { %v723_v28 = vsel %vm701_vm6, %v6065_v27, 0.0 }
 0x551   :  { %v6067_v29 = vpop.eup %6066  ;;  %724 = vadd.xlane.f32.xlu1 %v723_v28 }
 0x552   :  { %v726_v31 = vsel %vm701_vm6, %v6067_v29, 0.0  ;;  %v6069_v32 = vpop.eup %6068 }
 0x553   :  { %727 = vadd.xlane.f32.xlu0 %v726_v31  ;;  %v720_v36 = vsel %vm701_vm6, %v6069_v32, 0.0 }
 0x557   :  { %721 = vadd.xlane.f32.xlu0 %v720_v36 }
 0x5af   :  { %v878_v37 = vpop.xlane.xlu1 %877 }
 0x5b0   :  { %v881_v40 = vsub.f32 %v5528_v9, %v878_v37  ;;  %v872_v41 = vpop.xlane.xlu0 %871 }
 0x5b1   :  { %v879_v42 = vsub.f32 %v856_v10, %v872_v41 }
 0x5b2   :  { %v886_v43 = vmul.f32 1.442695, %v881_v40 }
 0x5b3   :  { %v882_v44 = vmul.f32 1.442695, %v879_v42 }
 0x5b4   :  { %6070 = vpow2.f32 %v886_v43  ;;  %v875_v45 = vpop.xlane.xlu0 %874 }
 0x5b5   :  { %v880_v46 = vsub.f32 %v859_v14, %v875_v45  ;;  %6072 = vpow2.f32 %v882_v44 }
 0x5b7   :  { %v884_v48 = vmul.f32 1.442695, %v880_v46 }
 0x5b9   :  { %6074 = vpow2.f32 %v884_v48 }
 0x5be   :  { %v6071_v49 = vpop.eup %6070 }
 0x5bf   :  { %v894_v50 = vsel %vm701_vm6, %v6071_v49, 0.0  ;;  %v6073_v51 = vpop.eup %6072 }
 0x5c0   :  { %895 = vadd.xlane.f32.xlu1 %v894_v50  ;;  %v888_v53 = vsel %vm701_vm6, %v6073_v51, 0.0 }
 0x5c3   :  { %v6075_v52 = vpop.eup %6074 }
 0x5c4   :  { %889 = vadd.xlane.f32.xlu1 %v888_v53  ;;  %v891_v55 = vsel %vm701_vm6, %v6075_v52, 0.0 }
 0x5c5   :  { %892 = vadd.xlane.f32.xlu0 %v891_v55 }
 0x5d5   :  { %909 = vrot.lane.b32.xlu1 %v7006_v54, %s6581_s2 }
 0x5d9   :  { %989 = vrot.lane.b32.xlu1 %v6950_v3, %s6582_s0 }
 0x5db   :  { %907 = vrot.lane.b32.xlu0 %v7002_v47, %s6581_s2 }
 0x5dd   :  { %991 = vrot.lane.b32.xlu1 %v6966_v18, %s6582_s0 }
 0x5de   :  { %v725_v56 = vpop.xlane.xlu1 %724 }
 0x5df   :  { %985 = vrot.lane.b32.xlu0 %v6948_v2, %s6582_s0 }
 0x5e0   :  { %v728_v58 = vpop.xlane.xlu0 %727 }
 0x5e1   :  { %987 = vrot.lane.b32.xlu1 %v6964_v17, %s6582_s0  ;;  %6076 = vrcp.f32 %v728_v58 }
 0x5e2   :  { %6078 = vrcp.f32 %v725_v56 }
 0x5e4   :  { %v722_v59 = vpop.xlane.xlu0 %721 }
 0x5e5   :  { %6080 = vrcp.f32 %v722_v59 }
 0x5eb   :  { %v6077_v61 = vpop.eup %6076 }
 0x5ec   :  { %v6079_v63 = vpop.eup %6078  ;;  %v734_v4 = vmul.f32 %v6077_v61, %v6067_v29 }
 0x5ed   :  { %v733_v6 = vmul.f32 %v6079_v63, %v6065_v27 }
 0x5ee   :  { %v736_v8 = vpack.c.bf16 %v734_v4, %v734_v4 }
 0x5ef   :  { %v6081_v1 = vpop.eup %6080 }
 0x5f0   :  { %v732_v5 = vmul.f32 %v6081_v1, %v6069_v32 }
 0x5f2   :  { %v735_v7 = vpack.c.bf16 %v733_v6, %v732_v5 }
 0x5f4   :  { %5518 = vmatprep.mubr.msk.bf16.mxu0 %vm701_vm6, %v735_v7 }
 0x5f5   :  { %5519 = vmatmul.mubr.msk.bf16.vlgmr.msra.gmra.mrb[20].mxu0 %vm701_vm6, %v736_v8 }
 0x64d   :  { %v896_v9 = vpop.xlane.xlu1 %895 }
 0x64e   :  { %6082 = vrcp.f32 %v896_v9 }
 0x651   :  { %v890_v10 = vpop.xlane.xlu1 %889 }
 0x652   :  { %6084 = vrcp.f32 %v890_v10  ;;  %v893_v11 = vpop.xlane.xlu0 %892 }
 0x653   :  { %6086 = vrcp.f32 %v893_v11 }
 0x655   :  { %v910_v12 = vpop.permute.xlu1 %909 }
 0x656   :  { %v908_v13 = vpop.permute.xlu0 %907  ;;  %v919_v15 = vsel %vm743_vm5, %v910_v12, 0 }
 0x657   :  { %5530 = vmatprep.subr.bf16.mxu0 %v908_v13 }
 0x658   :  { %5531 = vmatpush3.bf16.msra.mxu0 %v908_v13  ;;  %v6083_v14 = vpop.eup %6082 }
 0x659   :  { %5951 = vmatprep.subr.msk.bf16.mxu0 %vm743_vm5, %v910_v12  ;;  %v990_v19 = vpop.permute.xlu1 %989  ;;  %v902_v22 = vmul.f32 %v6083_v14, %v6071_v49 }
 0x65a   :  { %v986_v26 = vpop.permute.xlu0 %985  ;;  %v1000_v27 = vsel %vm640_vm4, %v990_v19, 0 }
 0x65b   :  { %v904_v25 = vpack.c.bf16 %v902_v22, %v902_v22 }
 0x65c   :  { %v6085_v16 = vpop.eup %6084  ;;  %5533 = vmatpush3.bf16.msra.mxu0 %v919_v15 }
 0x65d   :  { %v6087_v20 = vpop.eup %6086  ;;  %5952 = vmatprep.subr.msk.bf16.mxu0 %vm640_vm4, %v990_v19  ;;  %v900_v21 = vmul.f32 %v6085_v16, %v6073_v51  ;;  %v992_v28 = vpop.permute.xlu1 %991 }
 0x65e   :  { %v901_v23 = vmul.f32 %v6087_v20, %v6075_v52  ;;  %v1003_v29 = vsel %vm640_vm4, %v992_v28, 0 }
 0x660   :  { %v903_v24 = vpack.c.bf16 %v901_v23, %v900_v21 }
 0x661   :  { %v988_v31 = vpop.permute.xlu1 %987 }
 0x662   :  { %5534 = vmatprep.mubr.msk.bf16.mxu0 %vm701_vm6, %v903_v24 }
 0x663   :  { %5535 = vmatmul.mubr.msk.bf16.vlgmr.msra.gmra.mrb[24].mxu0 %vm701_vm6, %v904_v25 }
 0x664   :  { %5542 = vmatprep.mubr.msk.bf16.mxu0 %vm640_vm4, %v986_v26 }
 0x665   :  { %5539 = vmatpush3.bf16.xpose.msra.mxu0 %v1000_v27 }
 0x666   :  { %5953 = vmatprep.subr.msk.bf16.mxu0 %vm640_vm4, %v992_v28 }
 0x66d   :  { %5541 = vmatpush3.bf16.xpose.msra.mxu0 %v1003_v29  ;;  %v7092_v29 = vrot.slane %v639_v62, 4 }
 0x66f   :  { %v1463_v57 = vsel %vm743_vm5, %v7092_v29, 0 }
 0x674   :  { %5543 = vmatmul.mubr.msk.bf16.vlgmr.msra.gmra.mrb[28].mxu0 %vm640_vm4, %v988_v31  ;;  %v1452_v31 = vrot.slane %v7006_v54, 4 }
 0x6c8   :  { %v5520_v32 = vpop.f32.mrb[20].mxu0 }
 0x6c9   :  { %797 = vst.msk [vmem:[#allocation3 + $0x10] sm:$0xff] %vm640_vm4, %v5520_v32  ;;  %v781_v36 = vpop.f32.mrb[21].mxu0 }
 0x6ca   :  { %795 = vst.msk [vmem:[#allocation3] sm:$0xff] %vm640_vm4, %v781_v36  ;;  %v5521_v37 = vpop.f32.mrb[22].mxu0  ;;  %v7098_v36 = vsel %vm743_vm5, %v1452_v31, %v7092_v29 }
 0x6cb   :  { %v784_v40 = vpop.f32.mrb[23].mxu0 }
 0x6cc   :  { %796 = vst.msk [vmem:[#allocation3 + $0x8] sm:$0xff] %vm640_vm4, %v784_v40 }
 0x736   :  { %v7057_v41 = vpop.f32.mrb[24].mxu0 }
 0x737   :  { %v7059_v42 = vpop.f32.mrb[25].mxu0 }
 0x738   :  { %v5537_v43 = vpop.f32.mrb[26].mxu0 }
 0x739   :  { %v7061_v44 = vpop.f32.mrb[27].mxu0 }
 0x747   :  { %v5544_v45 = vpop.f32.mrb[28].mxu0 }
 0x748   :  { %v1039_v46 = vpop.f32.mrb[29].mxu0  ;;  %v1059_v52 = vsel %vm701_vm6, %v5544_v45, -inf }
 0x749   :  { %v5545_v48 = vpop.f32.mrb[30].mxu0  ;;  %v1053_v49 = vsel %vm701_vm6, %v1039_v46, -inf }
 0x74a   :  { %1054 = vmax.xlane.f32.xlu0 %v1053_v49  ;;  %v1042_v50 = vpop.f32.mrb[31].mxu0 }
 0x74b   :  { %v1056_v51 = vsel %vm701_vm6, %v1042_v50, -inf }
 0x74c   :  { %1057 = vmax.xlane.f32.xlu1 %v1056_v51 }
 0x74e   :  { %1060 = vmax.xlane.f32.xlu0 %v1059_v52 }
 0x7d7   :  { %v1055_v53 = vpop.xlane.xlu0 %1054 }
 0x7d8   :  { %v1062_v55 = vsub.f32 %v1039_v46, %v1055_v53 }
 0x7d9   :  { %v1058_v56 = vpop.xlane.xlu1 %1057 }
 0x7da   :  { %v1065_v58 = vmul.f32 1.442695, %v1062_v55  ;;  %v1063_v59 = vsub.f32 %v1042_v50, %v1058_v56 }
 0x7db   :  { %v1061_v61 = vpop.xlane.xlu0 %1060 }
 0x7dc   :  { %6088 = vpow2.f32 %v1065_v58  ;;  %v1067_v63 = vmul.f32 1.442695, %v1063_v59  ;;  %v1064_v1 = vsub.f32 %v5544_v45, %v1061_v61 }
 0x7de   :  { %6090 = vpow2.f32 %v1067_v63  ;;  %v1069_v4 = vmul.f32 1.442695, %v1064_v1 }
 0x7e0   :  { %6092 = vpow2.f32 %v1069_v4 }
 0x7e6   :  { %v6089_v5 = vpop.eup %6088 }
 0x7e7   :  { %v1071_v6 = vsel %vm701_vm6, %v6089_v5, 0.0 }
 0x7e8   :  { %v6091_v7 = vpop.eup %6090  ;;  %1072 = vadd.xlane.f32.xlu0 %v1071_v6 }
 0x7e9   :  { %v1074_v10 = vsel %vm701_vm6, %v6091_v7, 0.0 }
 0x7ea   :  { %v6093_v8 = vpop.eup %6092 }
 0x7eb   :  { %v1077_v9 = vsel %vm701_vm6, %v6093_v8, 0.0 }
 0x7ec   :  { %1078 = vadd.xlane.f32.xlu1 %v1077_v9  ;;  %1075 = vadd.xlane.f32.xlu0 %v1074_v10 }
 0x7fd   :  { %1090 = vrot.lane.b32.xlu1 %v7006_v54, %s6582_s0 }
 0x801   :  { %1170 = vrot.lane.b32.xlu1 %v6950_v3, %s6583_s9 }
 0x802   :  { %1088 = vrot.lane.b32.xlu0 %v7002_v47, %s6582_s0 }
 0x805   :  { %1172 = vrot.lane.b32.xlu1 %v6966_v18, %s6583_s9 }
 0x806   :  { %1166 = vrot.lane.b32.xlu0 %v6948_v2, %s6583_s9 }
 0x809   :  { %1168 = vrot.lane.b32.xlu1 %v6964_v17, %s6583_s9 }
 0x875   :  { %v1073_v11 = vpop.xlane.xlu0 %1072 }
 0x876   :  { %6094 = vrcp.f32 %v1073_v11 }
 0x879   :  { %v1076_v12 = vpop.xlane.xlu0 %1075  ;;  %v1079_v13 = vpop.xlane.xlu1 %1078 }
 0x87a   :  { %6096 = vrcp.f32 %v1076_v12 }
 0x87b   :  { %6098 = vrcp.f32 %v1079_v13 }
 0x87d   :  { %v1089_v14 = vpop.permute.xlu0 %1088  ;;  %v1091_v3 = vpop.permute.xlu1 %1090 }
 0x87e   :  { %5546 = vmatprep.subr.bf16.mxu1 %v1089_v14  ;;  %v1100_v16 = vsel %vm743_vm5, %v1091_v3, 0 }
 0x87f   :  { %5547 = vmatpush3.bf16.msra.mxu1 %v1089_v14 }
 0x880   :  { %5954 = vmatprep.subr.msk.bf16.mxu1 %vm743_vm5, %v1091_v3  ;;  %v6095_v15 = vpop.eup %6094  ;;  %v7126_v3 = vrot.slane %v636_v39, 4 }
 0x881   :  { %v1171_v19 = vpop.permute.xlu1 %1170  ;;  %v1083_v21 = vmul.f32 %v6095_v15, %v6089_v5  ;;  %v1167_v26 = vpop.permute.xlu0 %1166 }
 0x882   :  { %v1181_v27 = vsel %vm640_vm4, %v1171_v19, 0 }
 0x883   :  { %5549 = vmatpush3.bf16.msra.mxu1 %v1100_v16 }
 0x884   :  { %v6097_v2 = vpop.eup %6096  ;;  %5955 = vmatprep.subr.msk.bf16.mxu1 %vm640_vm4, %v1171_v19 }
 0x885   :  { %v6099_v20 = vpop.eup %6098  ;;  %v1084_v22 = vmul.f32 %v6097_v2, %v6091_v7  ;;  %v1173_v28 = vpop.permute.xlu1 %1172 }
 0x886   :  { %v1085_v23 = vmul.f32 %v6099_v20, %v6093_v8  ;;  %v1184_v32 = vsel %vm640_vm4, %v1173_v28, 0  ;;  %v7140_v20 = vrot.slane %v633_v38, 4 }
 0x887   :  { %v1086_v24 = vpack.c.bf16 %v1084_v22, %v1083_v21 }
 0x888   :  { %v1087_v25 = vpack.c.bf16 %v1085_v23, %v1085_v23  ;;  %v1349_v23 = vrot.slane %v6964_v17, 4  ;;  %v1366_v17 = vsel %vm640_vm4, %v7126_v3, 0 }
 0x889   :  { %5550 = vmatprep.mubr.msk.bf16.mxu1 %vm701_vm6, %v1086_v24  ;;  %v1169_v37 = vpop.permute.xlu1 %1168 }
 0x88a   :  { %5551 = vmatmul.mubr.msk.bf16.vlgmr.msra.gmra.mrb[28].mxu1 %vm701_vm6, %v1087_v25  ;;  %v7147_v24 = vsel %vm743_vm5, %v1349_v23, %v7140_v20 }
 0x88b   :  { %5558 = vmatprep.mubr.msk.bf16.mxu1 %vm640_vm4, %v1167_v26 }
 0x88c   :  { %5555 = vmatpush3.bf16.xpose.msra.mxu1 %v1181_v27 }
 0x88d   :  { %5956 = vmatprep.subr.msk.bf16.mxu1 %vm640_vm4, %v1173_v28 }
 0x894   :  { %5557 = vmatpush3.bf16.xpose.msra.mxu1 %v1184_v32 }
 0x895   :  { %5578 = vmatprep.subr.bf16.mxu1 %v7098_v36 }
 0x89b   :  { %5559 = vmatmul.mubr.msk.bf16.vlgmr.msra.gmra.mrb[32].mxu1 %vm640_vm4, %v1169_v37 }
 0x89c   :  { %5579 = vmatpush3.bf16.msra.mxu1 %v7098_v36 }
 0x89d   :  { %5960 = vmatprep.subr.msk.bf16.mxu1 %vm743_vm5, %v7092_v29 }
 0x8a0   :  { %5581 = vmatpush3.bf16.msra.mxu1 %v1463_v57 }
 0x95d   :  { %v7107_v60 = vpop.f32.mrb[28].mxu1 }
 0x95e   :  { %v7109_v62 = vpop.f32.mrb[29].mxu1 }
 0x95f   :  { %v5553_v40 = vpop.f32.mrb[30].mxu1 }
 0x960   :  { %v7111_v43 = vpop.f32.mrb[31].mxu1 }
 0x96e   :  { %v5560_v45 = vpop.f32.mrb[32].mxu1 }
 0x96f   :  { %v1220_v46 = vpop.f32.mrb[33].mxu1  ;;  %v1240_v52 = vsel %vm701_vm6, %v5560_v45, -inf }
 0x970   :  { %v5561_v48 = vpop.f32.mrb[34].mxu1  ;;  %v1234_v49 = vsel %vm701_vm6, %v1220_v46, -inf }
 0x971   :  { %1235 = vmax.xlane.f32.xlu0 %v1234_v49  ;;  %v1223_v50 = vpop.f32.mrb[35].mxu1 }
 0x972   :  { %v1237_v51 = vsel %vm701_vm6, %v1223_v50, -inf }
 0x973   :  { %1238 = vmax.xlane.f32.xlu1 %v1237_v51 }
 0x975   :  { %1241 = vmax.xlane.f32.xlu0 %v1240_v52 }
 0x9fe   :  { %v1236_v53 = vpop.xlane.xlu0 %1235 }
 0x9ff   :  { %v1243_v55 = vsub.f32 %v1220_v46, %v1236_v53 }
 0xa00   :  { %v1239_v56 = vpop.xlane.xlu1 %1238 }
 0xa01   :  { %v1246_v58 = vmul.f32 1.442695, %v1243_v55  ;;  %v1244_v59 = vsub.f32 %v1223_v50, %v1239_v56 }
 0xa02   :  { %v1242_v61 = vpop.xlane.xlu0 %1241 }
 0xa03   :  { %6100 = vpow2.f32 %v1246_v58  ;;  %v1248_v63 = vmul.f32 1.442695, %v1244_v59  ;;  %v1245_v1 = vsub.f32 %v5560_v45, %v1242_v61 }
 0xa05   :  { %6102 = vpow2.f32 %v1248_v63  ;;  %v1250_v4 = vmul.f32 1.442695, %v1245_v1 }
 0xa07   :  { %6104 = vpow2.f32 %v1250_v4 }
 0xa0d   :  { %v6101_v5 = vpop.eup %6100 }
 0xa0e   :  { %v1252_v6 = vsel %vm701_vm6, %v6101_v5, 0.0 }
 0xa0f   :  { %v6103_v7 = vpop.eup %6102  ;;  %1253 = vadd.xlane.f32.xlu0 %v1252_v6 }
 0xa10   :  { %v1255_v10 = vsel %vm701_vm6, %v6103_v7, 0.0 }
 0xa11   :  { %v6105_v8 = vpop.eup %6104 }
 0xa12   :  { %v1258_v9 = vsel %vm701_vm6, %v6105_v8, 0.0 }
 0xa13   :  { %1259 = vadd.xlane.f32.xlu1 %v1258_v9  ;;  %1256 = vadd.xlane.f32.xlu0 %v1255_v10 }
 0xa24   :  { %1271 = vrot.lane.b32.xlu1 %v7006_v54, %s6583_s9  ;;  %v1353_v54 = vrot.slane %v6966_v18, 4 }
 0xa26   :  { %v7133_v19 = vsel %vm743_vm5, %v1353_v54, %v7126_v3 }
 0xa27   :  { %v1363_v33 = vsel %vm640_vm4, %v7133_v19, 0 }
 0xa29   :  { %1269 = vrot.lane.b32.xlu0 %v7002_v47, %s6583_s9 }
 0xa9c   :  { %v1254_v11 = vpop.xlane.xlu0 %1253 }
 0xa9d   :  { %6106 = vrcp.f32 %v1254_v11 }
 0xaa0   :  { %v1257_v12 = vpop.xlane.xlu0 %1256  ;;  %v1260_v13 = vpop.xlane.xlu1 %1259 }
 0xaa1   :  { %6108 = vrcp.f32 %v1257_v12 }
 0xaa2   :  { %6110 = vrcp.f32 %v1260_v13 }
 0xaa4   :  { %v1270_v14 = vpop.permute.xlu0 %1269  ;;  %v1272_v15 = vpop.permute.xlu1 %1271 }
 0xaa5   :  { %5562 = vmatprep.subr.bf16.mxu0 %v1270_v14  ;;  %v1281_v16 = vsel %vm743_vm5, %v1272_v15, 0 }
 0xaa6   :  { %5563 = vmatpush3.bf16.msra.mxu0 %v1270_v14 }
 0xaa7   :  { %5957 = vmatprep.subr.msk.bf16.mxu0 %vm743_vm5, %v1272_v15  ;;  %v6107_v47 = vpop.eup %6106 }
 0xaa8   :  { %v1264_v35 = vmul.f32 %v6107_v47, %v6101_v5 }
 0xaaa   :  { %5565 = vmatpush3.bf16.msra.mxu0 %v1281_v16 }
 0xaab   :  { %v6109_v2 = vpop.eup %6108  ;;  %5958 = vmatprep.subr.msk.bf16.mxu0 %vm640_vm4, %v7133_v19 }
 0xaac   :  { %v6111_v34 = vpop.eup %6110  ;;  %v1265_v39 = vmul.f32 %v6109_v2, %v6103_v7 }
 0xaad   :  { %v1266_v18 = vmul.f32 %v6111_v34, %v6105_v8 }
 0xaae   :  { %v1267_v21 = vpack.c.bf16 %v1265_v39, %v1264_v35 }
 0xaaf   :  { %v1268_v22 = vpack.c.bf16 %v1266_v18, %v1266_v18 }
 0xab0   :  { %5566 = vmatprep.mubr.msk.bf16.mxu0 %vm701_vm6, %v1267_v21 }
 0xab1   :  { %5567 = vmatmul.mubr.msk.bf16.vlgmr.msra.gmra.mrb[32].mxu0 %vm701_vm6, %v1268_v22 }
 0xab2   :  { %5574 = vmatprep.mubr.msk.bf16.mxu0 %vm640_vm4, %v7147_v24 }
 0xab3   :  { %5571 = vmatpush3.bf16.xpose.msra.mxu0 %v1363_v33 }
 0xab4   :  { %5959 = vmatprep.subr.msk.bf16.mxu0 %vm640_vm4, %v7126_v3 }
 0xabb   :  { %5573 = vmatpush3.bf16.xpose.msra.mxu0 %v1366_v17 }
 0xac2   :  { %5575 = vmatmul.mubr.msk.bf16.vlgmr.msra.gmra.mrb[36].mxu0 %vm640_vm4, %v7140_v20 }
 0xb84   :  { %v7159_v30 = vpop.f32.mrb[32].mxu0 }
 0xb85   :  { %v7161_v38 = vpop.f32.mrb[33].mxu0 }
 0xb86   :  { %v5569_v25 = vpop.f32.mrb[34].mxu0 }
 0xb87   :  { %v7163_v26 = vpop.f32.mrb[35].mxu0 }
 0xb95   :  { %v5576_v27 = vpop.f32.mrb[36].mxu0 }
 0xb96   :  { %v1402_v28 = vpop.f32.mrb[37].mxu0  ;;  %v1422_v40 = vsel %vm701_vm6, %v5576_v27, -inf }
 0xb97   :  { %v5577_v31 = vpop.f32.mrb[38].mxu0  ;;  %v1416_v32 = vsel %vm701_vm6, %v1402_v28, -inf }
 0xb98   :  { %1417 = vmax.xlane.f32.xlu1 %v1416_v32  ;;  %v1405_v37 = vpop.f32.mrb[39].mxu0 }
 0xb99   :  { %v1419_v57 = vsel %vm701_vm6, %v1405_v37, -inf }
 0xb9a   :  { %1420 = vmax.xlane.f32.xlu0 %v1419_v57 }
 0xb9e   :  { %1423 = vmax.xlane.f32.xlu0 %v1422_v40 }
 0xc25   :  { %v1418_v45 = vpop.xlane.xlu1 %1417 }
 0xc26   :  { %v1425_v46 = vsub.f32 %v1402_v28, %v1418_v45 }
 0xc27   :  { %v1421_v48 = vpop.xlane.xlu0 %1420 }
 0xc28   :  { %v1428_v49 = vmul.f32 1.442695, %v1425_v46  ;;  %v1426_v50 = vsub.f32 %v1405_v37, %v1421_v48 }
 0xc2a   :  { %6112 = vpow2.f32 %v1428_v49  ;;  %v1430_v51 = vmul.f32 1.442695, %v1426_v50 }
 0xc2b   :  { %v1424_v52 = vpop.xlane.xlu0 %1423 }
 0xc2c   :  { %6114 = vpow2.f32 %v1430_v51  ;;  %v1427_v53 = vsub.f32 %v5576_v27, %v1424_v52 }
 0xc2e   :  { %v1432_v55 = vmul.f32 1.442695, %v1427_v53 }
 0xc30   :  { %6116 = vpow2.f32 %v1432_v55 }
 0xc34   :  { %v6113_v56 = vpop.eup %6112 }
 0xc35   :  { %v1434_v58 = vsel %vm701_vm6, %v6113_v56, 0.0 }
 0xc36   :  { %v6115_v59 = vpop.eup %6114  ;;  %1435 = vadd.xlane.f32.xlu1 %v1434_v58 }
 0xc37   :  { %v1437_v61 = vsel %vm701_vm6, %v6115_v59, 0.0 }
 0xc38   :  { %1438 = vadd.xlane.f32.xlu0 %v1437_v61 }
 0xc3a   :  { %v6117_v63 = vpop.eup %6116 }
 0xc3b   :  { %v1440_v1 = vsel %vm701_vm6, %v6117_v63, 0.0 }
 0xc3c   :  { %1441 = vadd.xlane.f32.xlu1 %v1440_v1 }
 0xc4d   :  { %1522 = vrot.lane.b32.xlu1 %v7126_v3, %s6581_s2 }
 0xc4e   :  { %1520 = vrot.lane.b32.xlu0 %v7133_v19, %s6581_s2 }
 0xc51   :  { %1516 = vrot.lane.b32.xlu1 %v7147_v24, %s6581_s2 }
 0xc55   :  { %1518 = vrot.lane.b32.xlu1 %v7140_v20, %s6581_s2 }
 0xcc3   :  { %v1436_v4 = vpop.xlane.xlu1 %1435 }
 0xcc4   :  { %6118 = vrcp.f32 %v1436_v4 }
 0xcc5   :  { %v1439_v5 = vpop.xlane.xlu0 %1438 }
 0xcc6   :  { %6120 = vrcp.f32 %v1439_v5 }
 0xcc9   :  { %v1442_v6 = vpop.xlane.xlu1 %1441  ;;  %v1521_v7 = vpop.permute.xlu0 %1520 }
 0xcca   :  { %6122 = vrcp.f32 %v1442_v6  ;;  %5961 = vmatprep.subr.msk.bf16.mxu1 %vm640_vm4, %v1521_v7  ;;  %v1531_v16 = vsel %vm640_vm4, %v1521_v7, 0 }
 0xccd   :  { %v1523_v12 = vpop.permute.xlu1 %1522 }
 0xcce   :  { %v6119_v8 = vpop.eup %6118  ;;  %v1534_v2 = vsel %vm640_vm4, %v1523_v12, 0 }
 0xccf   :  { %v1446_v10 = vmul.f32 %v6119_v8, %v6113_v56 }
 0xcd0   :  { %v6121_v9 = vpop.eup %6120 }
 0xcd1   :  { %v1447_v11 = vmul.f32 %v6121_v9, %v6115_v59  ;;  %v1517_v47 = vpop.permute.xlu1 %1516 }
 0xcd3   :  { %v1449_v13 = vpack.c.bf16 %v1447_v11, %v1446_v10 }
 0xcd4   :  { %v6123_v14 = vpop.eup %6122 }
 0xcd5   :  { %5582 = vmatprep.mubr.msk.bf16.mxu1 %vm701_vm6, %v1449_v13  ;;  %v1448_v15 = vmul.f32 %v6123_v14, %v6117_v63  ;;  %v1519_v34 = vpop.permute.xlu1 %1518 }
 0xcd7   :  { %v1450_v54 = vpack.c.bf16 %v1448_v15, %v1448_v15 }
 0xcd9   :  { %5583 = vmatmul.mubr.msk.bf16.vlgmr.msra.gmra.mrb[36].mxu1 %vm701_vm6, %v1450_v54 }
 0xcda   :  { %5587 = vmatpush3.bf16.xpose.msra.mxu1 %v1531_v16  ;;  %5590 = vmatprep.mubr.msk.bf16.mxu1 %vm640_vm4, %v1517_v47 }
 0xcdb   :  { %5962 = vmatprep.subr.msk.bf16.mxu1 %vm640_vm4, %v1523_v12 }
 0xce2   :  { %5589 = vmatpush3.bf16.xpose.msra.mxu1 %v1534_v2 }
 0xce9   :  { %5591 = vmatmul.mubr.msk.bf16.vlgmr.msra.gmra.mrb[40].mxu1 %vm640_vm4, %v1519_v34 }
 0xdac   :  { %v5584_v35 = vpop.f32.mrb[36].mxu1 }
 0xdad   :  { %1515 = vst.msk [vmem:[#allocation3 + $0x28] sm:$0xff] %vm640_vm4, %v5584_v35  ;;  %v1499_v39 = vpop.f32.mrb[37].mxu1 }
 0xdae   :  { %1513 = vst.msk [vmem:[#allocation3 + $0x18] sm:$0xff] %vm640_vm4, %v1499_v39  ;;  %v5585_v18 = vpop.f32.mrb[38].mxu1 }
 0xdaf   :  { %v1502_v21 = vpop.f32.mrb[39].mxu1 }
 0xdb0   :  { %1514 = vst.msk [vmem:[#allocation3 + $0x20] sm:$0xff] %vm640_vm4, %v1502_v21 }
 0xdbc   :  { %v5592_v22 = vpop.f32.mrb[40].mxu1 }
 0xdbd   :  { %v1570_v23 = vpop.f32.mrb[41].mxu1  ;;  %v1590_v28 = vsel %vm701_vm6, %v5592_v22, -inf }
 0xdbe   :  { %v5593_v33 = vpop.f32.mrb[42].mxu1  ;;  %v1584_v17 = vsel %vm701_vm6, %v1570_v23, -inf }
 0xdbf   :  { %1585 = vmax.xlane.f32.xlu0 %v1584_v17  ;;  %v1573_v25 = vpop.f32.mrb[43].mxu1 }
 0xdc0   :  { %v1587_v27 = vsel %vm701_vm6, %v1573_v25, -inf }
 0xdc1   :  { %1588 = vmax.xlane.f32.xlu1 %v1587_v27 }
 0xdc3   :  { %1591 = vmax.xlane.f32.xlu0 %v1590_v28 }
 0xe4c   :  { %v1586_v31 = vpop.xlane.xlu0 %1585 }
 0xe4d   :  { %v1593_v32 = vsub.f32 %v1570_v23, %v1586_v31 }
 0xe4e   :  { %v1589_v37 = vpop.xlane.xlu1 %1588 }
 0xe4f   :  { %v1596_v57 = vmul.f32 1.442695, %v1593_v32  ;;  %v1594_v40 = vsub.f32 %v1573_v25, %v1589_v37 }
 0xe50   :  { %v1592_v45 = vpop.xlane.xlu0 %1591 }
 0xe51   :  { %6124 = vpow2.f32 %v1596_v57  ;;  %v1598_v46 = vmul.f32 1.442695, %v1594_v40  ;;  %v1595_v48 = vsub.f32 %v5592_v22, %v1592_v45 }
 0xe53   :  { %6126 = vpow2.f32 %v1598_v46  ;;  %v1600_v49 = vmul.f32 1.442695, %v1595_v48 }
 0xe55   :  { %6128 = vpow2.f32 %v1600_v49 }
 0xe5b   :  { %v6125_v50 = vpop.eup %6124 }
 0xe5c   :  { %v1602_v51 = vsel %vm701_vm6, %v6125_v50, 0.0 }
 0xe5d   :  { %v6127_v52 = vpop.eup %6126  ;;  %1603 = vadd.xlane.f32.xlu0 %v1602_v51 }
 0xe5e   :  { %v1605_v56 = vsel %vm701_vm6, %v6127_v52, 0.0 }
 0xe5f   :  { %v6129_v53 = vpop.eup %6128 }
 0xe60   :  { %v1608_v55 = vsel %vm701_vm6, %v6129_v53, 0.0 }
 0xe61   :  { %1609 = vadd.xlane.f32.xlu1 %v1608_v55  ;;  %1606 = vadd.xlane.f32.xlu0 %v1605_v56 }
 0xe72   :  { %1621 = vrot.lane.b32.xlu1 %v7092_v29, %s6581_s2 }
 0xe76   :  { %1700 = vrot.lane.b32.xlu1 %v7133_v19, %s6582_s0 }
 0xe77   :  { %1619 = vrot.lane.b32.xlu0 %v7098_v36, %s6581_s2 }
 0xe7a   :  { %1702 = vrot.lane.b32.xlu1 %v7126_v3, %s6582_s0 }
 0xe7b   :  { %1696 = vrot.lane.b32.xlu0 %v7147_v24, %s6582_s0 }
 0xe7e   :  { %1698 = vrot.lane.b32.xlu1 %v7140_v20, %s6582_s0 }
 0xeea   :  { %v1604_v58 = vpop.xlane.xlu0 %1603 }
 0xeeb   :  { %6130 = vrcp.f32 %v1604_v58 }
 0xeee   :  { %v1607_v59 = vpop.xlane.xlu0 %1606  ;;  %v1610_v61 = vpop.xlane.xlu1 %1609 }
 0xeef   :  { %6132 = vrcp.f32 %v1607_v59 }
 0xef0   :  { %6134 = vrcp.f32 %v1610_v61 }
 0xef2   :  { %v1620_v63 = vpop.permute.xlu0 %1619  ;;  %v1622_v1 = vpop.permute.xlu1 %1621 }
 0xef3   :  { %5594 = vmatprep.subr.bf16.mxu0 %v1620_v63  ;;  %v1631_v5 = vsel %vm743_vm5, %v1622_v1, 0 }
 0xef4   :  { %5595 = vmatpush3.bf16.msra.mxu0 %v1620_v63 }
 0xef5   :  { %5963 = vmatprep.subr.msk.bf16.mxu0 %vm743_vm5, %v1622_v1  ;;  %v6131_v4 = vpop.eup %6130 }
 0xef6   :  { %v1701_v6 = vpop.permute.xlu1 %1700  ;;  %v1614_v9 = vmul.f32 %v6131_v4, %v6125_v50  ;;  %v1697_v14 = vpop.permute.xlu0 %1696 }
 0xef7   :  { %v1711_v15 = vsel %vm640_vm4, %v1701_v6, 0 }
 0xef8   :  { %5597 = vmatpush3.bf16.msra.mxu0 %v1631_v5 }
 0xef9   :  { %v6133_v7 = vpop.eup %6132  ;;  %5964 = vmatprep.subr.msk.bf16.mxu0 %vm640_vm4, %v1701_v6 }
 0xefa   :  { %v6135_v8 = vpop.eup %6134  ;;  %v1615_v10 = vmul.f32 %v6133_v7, %v6127_v52  ;;  %v1703_v54 = vpop.permute.xlu1 %1702 }
 0xefb   :  { %v1616_v11 = vmul.f32 %v6135_v8, %v6129_v53  ;;  %v1714_v47 = vsel %vm640_vm4, %v1703_v54, 0 }
 0xefc   :  { %v1617_v12 = vpack.c.bf16 %v1615_v10, %v1614_v9 }
 0xefd   :  { %v1618_v13 = vpack.c.bf16 %v1616_v11, %v1616_v11 }
 0xefe   :  { %5598 = vmatprep.mubr.msk.bf16.mxu0 %vm701_vm6, %v1617_v12  ;;  %v1699_v16 = vpop.permute.xlu1 %1698 }
 0xeff   :  { %5599 = vmatmul.mubr.msk.bf16.vlgmr.msra.gmra.mrb[40].mxu0 %vm701_vm6, %v1618_v13 }
 0xf00   :  { %5606 = vmatprep.mubr.msk.bf16.mxu0 %vm640_vm4, %v1697_v14 }
 0xf01   :  { %5603 = vmatpush3.bf16.xpose.msra.mxu0 %v1711_v15 }
 0xf02   :  { %5965 = vmatprep.subr.msk.bf16.mxu0 %vm640_vm4, %v1703_v54 }
 0xf09   :  { %5605 = vmatpush3.bf16.xpose.msra.mxu0 %v1714_v47 }
 0xf10   :  { %5607 = vmatmul.mubr.msk.bf16.vlgmr.msra.gmra.mrb[44].mxu0 %vm640_vm4, %v1699_v16 }
 0xfd2   :  { %v7218_v2 = vpop.f32.mrb[40].mxu0 }
 0xfd3   :  { %v7220_v34 = vpop.f32.mrb[41].mxu0 }
 0xfd4   :  { %v5601_v35 = vpop.f32.mrb[42].mxu0 }
 0xfd5   :  { %v7222_v39 = vpop.f32.mrb[43].mxu0 }
 0xfe3   :  { %v5608_v18 = vpop.f32.mrb[44].mxu0 }
 0xfe4   :  { %v1750_v21 = vpop.f32.mrb[45].mxu0  ;;  %v1770_v25 = vsel %vm701_vm6, %v5608_v18, -inf }
 0xfe5   :  { %v5609_v22 = vpop.f32.mrb[46].mxu0  ;;  %v1764_v23 = vsel %vm701_vm6, %v1750_v21, -inf }
 0xfe6   :  { %1765 = vmax.xlane.f32.xlu0 %v1764_v23  ;;  %v1753_v33 = vpop.f32.mrb[47].mxu0 }
 0xfe7   :  { %v1767_v17 = vsel %vm701_vm6, %v1753_v33, -inf }
 0xfe8   :  { %1768 = vmax.xlane.f32.xlu1 %v1767_v17 }
 0xfea   :  { %1771 = vmax.xlane.f32.xlu0 %v1770_v25 }
0x1073   :  { %v1766_v27 = vpop.xlane.xlu0 %1765 }
0x1074   :  { %v1773_v28 = vsub.f32 %v1750_v21, %v1766_v27 }
0x1075   :  { %v1769_v31 = vpop.xlane.xlu1 %1768 }
0x1076   :  { %v1776_v32 = vmul.f32 1.442695, %v1773_v28  ;;  %v1774_v37 = vsub.f32 %v1753_v33, %v1769_v31 }
0x1077   :  { %v1772_v57 = vpop.xlane.xlu0 %1771 }
0x1078   :  { %6136 = vpow2.f32 %v1776_v32  ;;  %v1778_v40 = vmul.f32 1.442695, %v1774_v37  ;;  %v1775_v45 = vsub.f32 %v5608_v18, %v1772_v57 }
0x107a   :  { %6138 = vpow2.f32 %v1778_v40  ;;  %v1780_v46 = vmul.f32 1.442695, %v1775_v45 }
0x107c   :  { %6140 = vpow2.f32 %v1780_v46 }
0x1082   :  { %v6137_v48 = vpop.eup %6136 }
0x1083   :  { %v1782_v49 = vsel %vm701_vm6, %v6137_v48, 0.0 }
0x1084   :  { %v6139_v50 = vpop.eup %6138  ;;  %1783 = vadd.xlane.f32.xlu0 %v1782_v49 }
0x1085   :  { %v1785_v53 = vsel %vm701_vm6, %v6139_v50, 0.0 }
0x1086   :  { %v6141_v51 = vpop.eup %6140 }
0x1087   :  { %v1788_v52 = vsel %vm701_vm6, %v6141_v51, 0.0 }
0x1088   :  { %1789 = vadd.xlane.f32.xlu1 %v1788_v52  ;;  %1786 = vadd.xlane.f32.xlu0 %v1785_v53 }
0x1099   :  { %1801 = vrot.lane.b32.xlu1 %v7092_v29, %s6582_s0 }
0x109d   :  { %1880 = vrot.lane.b32.xlu1 %v7133_v19, %s6583_s9 }
0x109e   :  { %1799 = vrot.lane.b32.xlu0 %v7098_v36, %s6582_s0 }
0x10a1   :  { %1882 = vrot.lane.b32.xlu1 %v7126_v3, %s6583_s9 }
0x10a2   :  { %1876 = vrot.lane.b32.xlu0 %v7147_v24, %s6583_s9 }
0x10a5   :  { %1878 = vrot.lane.b32.xlu1 %v7140_v20, %s6583_s9 }
0x1111   :  { %v1784_v55 = vpop.xlane.xlu0 %1783 }
0x1112   :  { %6142 = vrcp.f32 %v1784_v55  ;;  %v6020_v55 = vld [vmem:[%s8179_s12] sm:$0xff]  }
0x1115   :  { %v1787_v56 = vpop.xlane.xlu0 %1786  ;;  %v1790_v58 = vpop.xlane.xlu1 %1789 }
0x1116   :  { %6144 = vrcp.f32 %v1787_v56 }
0x1117   :  { %6146 = vrcp.f32 %v1790_v58 }
0x1119   :  { %v1800_v59 = vpop.permute.xlu0 %1799  ;;  %v1802_v19 = vpop.permute.xlu1 %1801 }
0x111a   :  { %5610 = vmatprep.subr.bf16.mxu1 %v1800_v59  ;;  %v1811_v3 = vsel %vm743_vm5, %v1802_v19, 0 }
0x111b   :  { %5611 = vmatpush3.bf16.msra.mxu1 %v1800_v59 }
0x111c   :  { %5966 = vmatprep.subr.msk.bf16.mxu1 %vm743_vm5, %v1802_v19  ;;  %v6143_v61 = vpop.eup %6142  ;;  %v6021_v19 = vld [vmem:[%s8179_s12 + $0x8] sm:$0xff]  }
0x111d   :  { %v1881_v63 = vpop.permute.xlu1 %1880  ;;  %v1794_v1 = vmul.f32 %v6143_v61, %v6137_v48  ;;  %v1877_v8 = vpop.permute.xlu0 %1876 }
0x111e   :  { %v1891_v9 = vsel %vm640_vm4, %v1881_v63, 0 }
0x111f   :  { %5613 = vmatpush3.bf16.msra.mxu1 %v1811_v3 }
0x1120   :  { %v6145_v24 = vpop.eup %6144  ;;  %5967 = vmatprep.subr.msk.bf16.mxu1 %vm640_vm4, %v1881_v63 }
0x1121   :  { %v6147_v20 = vpop.eup %6146  ;;  %v1795_v4 = vmul.f32 %v6145_v24, %v6139_v50  ;;  %v1883_v10 = vpop.permute.xlu1 %1882 }
0x1122   :  { %v1796_v5 = vmul.f32 %v6147_v20, %v6141_v51  ;;  %v1894_v11 = vsel %vm640_vm4, %v1883_v10, 0 }
0x1123   :  { %v1797_v6 = vpack.c.bf16 %v1795_v4, %v1794_v1 }
0x1124   :  { %v1798_v7 = vpack.c.bf16 %v1796_v5, %v1796_v5 }
0x1125   :  { %5614 = vmatprep.mubr.msk.bf16.mxu1 %vm701_vm6, %v1797_v6  ;;  %v1879_v12 = vpop.permute.xlu1 %1878 }
0x1126   :  { %5615 = vmatmul.mubr.msk.bf16.vlgmr.msra.gmra.mrb[44].mxu1 %vm701_vm6, %v1798_v7 }
0x1127   :  { %5622 = vmatprep.mubr.msk.bf16.mxu1 %vm640_vm4, %v1877_v8 }
0x1128   :  { %5619 = vmatpush3.bf16.xpose.msra.mxu1 %v1891_v9 }
0x1129   :  { %5968 = vmatprep.subr.msk.bf16.mxu1 %vm640_vm4, %v1883_v10 }
0x1130   :  { %5621 = vmatpush3.bf16.xpose.msra.mxu1 %v1894_v11 }
0x1131   :  { %5650 = vmatprep.subr.bf16.mxu1 %v6579_v0 }
0x1137   :  { %5623 = vmatmul.mubr.msk.bf16.vlgmr.msra.gmra.mrb[48].mxu1 %vm640_vm4, %v1879_v12 }
0x1138   :  { %5654 = vmatprep.mubr.msk.bf16.mxu1 %vm6580_vm0, %v6579_v0 }
0x11f9   :  { %v7255_v13 = vpop.f32.mrb[44].mxu1 }
0x11fa   :  { %v1847_v14 = vpop.f32.mrb[45].mxu1 }
0x11fb   :  { %v5617_v15 = vpop.f32.mrb[46].mxu1 }
0x11fc   :  { %v1850_v54 = vpop.f32.mrb[47].mxu1 }
0x120a   :  { %v5624_v47 = vpop.f32.mrb[48].mxu1 }
0x120b   :  { %v1930_v16 = vpop.f32.mrb[49].mxu1  ;;  %v1950_v23 = vsel %vm701_vm6, %v5624_v47, -inf }
0x120c   :  { %v5625_v35 = vpop.f32.mrb[50].mxu1  ;;  %v1944_v18 = vsel %vm701_vm6, %v1930_v16, -inf }
0x120d   :  { %1945 = vmax.xlane.f32.xlu0 %v1944_v18  ;;  %v1933_v21 = vpop.f32.mrb[51].mxu1  ;;  %v6328_v18 = vld [vmem:[#allocation2] sm:$0xff] }
0x120e   :  { %v1947_v22 = vsel %vm701_vm6, %v1933_v21, -inf }
0x120f   :  { %1948 = vmax.xlane.f32.xlu1 %v1947_v22 }
0x1211   :  { %1951 = vmax.xlane.f32.xlu0 %v1950_v23 }
0x129a   :  { %v1946_v33 = vpop.xlane.xlu0 %1945 }
0x129b   :  { %v1953_v17 = vsub.f32 %v1930_v16, %v1946_v33  ;;  %v5100_v16 = vld [vmem:[#allocation16] ss:$0 sm:$0xff]  ;;  %v6329_v33 = vld [vmem:[#allocation2 + $0x8] sm:$0xff] }
0x129c   :  { %v1949_v25 = vpop.xlane.xlu1 %1948 }
0x129d   :  { %v1956_v27 = vmul.f32 1.442695, %v1953_v17  ;;  %v1954_v28 = vsub.f32 %v1933_v21, %v1949_v25 }
0x129e   :  { %v1952_v31 = vpop.xlane.xlu0 %1951 }
0x129f   :  { %6148 = vpow2.f32 %v1956_v27  ;;  %v1958_v32 = vmul.f32 1.442695, %v1954_v28  ;;  %v1955_v37 = vsub.f32 %v5624_v47, %v1952_v31 }
0x12a1   :  { %6150 = vpow2.f32 %v1958_v32  ;;  %v1960_v57 = vmul.f32 1.442695, %v1955_v37 }
0x12a3   :  { %6152 = vpow2.f32 %v1960_v57 }
0x12a9   :  { %v6149_v40 = vpop.eup %6148 }
0x12aa   :  { %v1962_v45 = vsel %vm701_vm6, %v6149_v40, 0.0 }
0x12ab   :  { %v6151_v46 = vpop.eup %6150  ;;  %1963 = vadd.xlane.f32.xlu0 %v1962_v45 }
0x12ac   :  { %v1965_v50 = vsel %vm701_vm6, %v6151_v46, 0.0 }
0x12ad   :  { %v6153_v48 = vpop.eup %6152 }
0x12ae   :  { %v1968_v49 = vsel %vm701_vm6, %v6153_v48, 0.0 }
0x12af   :  { %1969 = vadd.xlane.f32.xlu1 %v1968_v49  ;;  %1966 = vadd.xlane.f32.xlu0 %v1965_v50 }
0x12c0   :  { %1981 = vrot.lane.b32.xlu1 %v7092_v29, %s6583_s9 }
0x12c4   :  { %972 = vrot.lane.b32.xlu1 %v7059_v42, %s6568_s8 }
0x12c5   :  { %1979 = vrot.lane.b32.xlu0 %v7098_v36, %s6583_s9 }
0x12c8   :  { %974 = vrot.lane.b32.xlu1 %v7061_v44, %s6568_s8 }
0x12c9   :  { %1153 = vrot.lane.b32.xlu0 %v7109_v62, %s6571_s6 }
0x12cc   :  { %1155 = vrot.lane.b32.xlu1 %v7111_v43, %s6571_s6 }
0x12cd   :  { %1334 = vrot.lane.b32.xlu0 %v7161_v38, %s6584_s23 }
0x12d0   :  { %1336 = vrot.lane.b32.xlu1 %v7163_v26, %s6584_s23 }
0x12d1   :  { %976 = vrot.lane.b32.xlu0 %v7057_v41, %s6568_s8 }
0x12d4   :  { %1684 = vrot.lane.b32.xlu1 %v7220_v34, %s6568_s8 }
0x12d5   :  { %1157 = vrot.lane.b32.xlu0 %v7107_v60, %s6571_s6 }
0x12d8   :  { %1864 = vrot.lane.b32.xlu1 %v1847_v14, %s6571_s6 }
0x12d9   :  { %1338 = vrot.lane.b32.xlu0 %v7159_v30, %s6584_s23 }
0x12dc   :  { %1688 = vrot.lane.b32.xlu1 %v7218_v2, %s6568_s8 }
0x12dd   :  { %1686 = vrot.lane.b32.xlu0 %v7222_v39, %s6568_s8 }
0x12e1   :  { %1866 = vrot.lane.b32.xlu0 %v1850_v54, %s6571_s6 }
0x1338   :  { %v1964_v41 = vpop.xlane.xlu0 %1963 }
0x1339   :  { %6154 = vrcp.f32 %v1964_v41 }
0x133c   :  { %v1967_v42 = vpop.xlane.xlu0 %1966  ;;  %v1970_v44 = vpop.xlane.xlu1 %1969 }
0x133d   :  { %6156 = vrcp.f32 %v1967_v42 }
0x133e   :  { %6158 = vrcp.f32 %v1970_v44  ;;  %v6330_v44 = vld [vmem:[#allocation2 + $0x10] sm:$0xff] }
0x1340   :  { %v1980_v29 = vpop.permute.xlu0 %1979  ;;  %v1982_v36 = vpop.permute.xlu1 %1981 }
0x1341   :  { %5626 = vmatprep.subr.bf16.mxu0 %v1980_v29  ;;  %v1991_v30 = vsel %vm743_vm5, %v1982_v36, 0 }
0x1342   :  { %5627 = vmatpush3.bf16.msra.mxu0 %v1980_v29 }
0x1343   :  { %5969 = vmatprep.subr.msk.bf16.mxu0 %vm743_vm5, %v1982_v36  ;;  %v6155_v43 = vpop.eup %6154 }
0x1344   :  { %v1154_v60 = vpop.permute.xlu0 %1153  ;;  %v973_v62 = vpop.permute.xlu1 %972  ;;  %v1974_v39 = vmul.f32 %v6155_v43, %v6149_v40 }
0x1345   :  { %982 = vst.msk [vmem:[#allocation3] sm:$0xff] %vm981_vm7, %v973_v62 }
0x1346   :  { %5629 = vmatpush3.bf16.msra.mxu0 %v1991_v30  ;;  %1163 = vst.msk [vmem:[#allocation3] sm:$0xff] %vm1162_vm8, %v1154_v60  ;;  %v6331_v30 = vld [vmem:[#allocation2 + $0x18] sm:$0xff] }
0x1347   :  { %v6157_v38 = vpop.eup %6156  ;;  %5634 = vmatprep.subr.bf16.mxu0 %v6579_v0 }
0x1348   :  { %v6159_v26 = vpop.eup %6158  ;;  %v1335_v2 = vpop.permute.xlu0 %1334  ;;  %v1975_v51 = vmul.f32 %v6157_v38, %v6151_v46 }
0x1349   :  { %v975_v34 = vpop.permute.xlu1 %974  ;;  %1344 = vst.msk [vmem:[#allocation3] sm:$0xff] %vm1343_vm9, %v1335_v2  ;;  %v1976_v52 = vmul.f32 %v6159_v26, %v6153_v48 }
0x134a   :  { %983 = vst.msk [vmem:[#allocation3 + $0x8] sm:$0xff] %vm981_vm7, %v975_v34  ;;  %v1977_v53 = vpack.c.bf16 %v1975_v51, %v1974_v39 }
0x134b   :  { %v1978_v56 = vpack.c.bf16 %v1976_v52, %v1976_v52 }
0x134c   :  { %5630 = vmatprep.mubr.msk.bf16.mxu0 %vm701_vm6, %v1977_v53  ;;  %v977_v58 = vpop.permute.xlu0 %976 }
0x134d   :  { %v1156_v59 = vpop.permute.xlu1 %1155  ;;  %984 = vst.msk [vmem:[#allocation3 + $0x10] sm:$0xff] %vm981_vm7, %v977_v58  ;;  %5631 = vmatmul.mubr.msk.bf16.vlgmr.msra.gmra.mrb[48].mxu0 %vm701_vm6, %v1978_v56  ;;  %v6332_v58 = vld [vmem:[#allocation2 + $0x20] sm:$0xff] }
0x134e   :  { %1164 = vst.msk [vmem:[#allocation3 + $0x8] sm:$0xff] %vm1162_vm8, %v1156_v59  ;;  %5635 = vmatpush3.bf16.msra.mxu0 %v6020_v55  ;;  %5638 = vmatprep.mubr.msk.bf16.mxu0 %vm6580_vm0, %v6579_v0 }
0x134f   :  { %5636 = vmatprep.subr.bf16.mxu0 %v6579_v0 }
0x1350   :  { %v1158_v61 = vpop.permute.xlu0 %1157  ;;  %v2056_v4 = vld [vmem:[#allocation3] sm:$0xff] }
0x1351   :  { %v1337_v3 = vpop.permute.xlu1 %1336  ;;  %1165 = vst.msk [vmem:[#allocation3 + $0x10] sm:$0xff] %vm1162_vm8, %v1158_v61 }
0x1352   :  { %1345 = vst.msk [vmem:[#allocation3 + $0x8] sm:$0xff] %vm1343_vm9, %v1337_v3  ;;  %5637 = vmatpush3.bf16.msra.mxu0 %v6021_v19  ;;  %v6333_v3 = vld [vmem:[#allocation2 + $0x28] sm:$0xff] }
0x1353   :  { %5666 = vmatprep.subr.bf16.mxu0 %v6579_v0 }
0x1354   :  { %v1339_v63 = vpop.permute.xlu0 %1338 }
0x1355   :  { %v1685_v24 = vpop.permute.xlu1 %1684  ;;  %1346 = vst.msk [vmem:[#allocation3 + $0x10] sm:$0xff] %vm1343_vm9, %v1339_v63 }
0x1356   :  { %1693 = vst.msk [vmem:[#allocation3 + $0x18] sm:$0xff] %vm981_vm7, %v1685_v24 }
0x1358   :  { %v1687_v20 = vpop.permute.xlu0 %1686 }
0x1359   :  { %v1865_v1 = vpop.permute.xlu1 %1864  ;;  %v2057_v5 = vld [vmem:[#allocation3 + $0x8] sm:$0xff]  ;;  %1694 = vst.msk [vmem:[#allocation3 + $0x20] sm:$0xff] %vm981_vm7, %v1687_v20 }
0x135a   :  { %1873 = vst.msk [vmem:[#allocation3 + $0x18] sm:$0xff] %vm1162_vm8, %v1865_v1  ;;  %v2062_v6 = vpack.c.bf16 %v2057_v5, %v2056_v4 }
0x135c   :  { %5639 = vmatmul.mubr.msk.bf16.vlgmr.msra.gmra.mrb[52].mxu0 %vm260_vm3, %v2062_v6  ;;  %v1867_v7 = vpop.permute.xlu0 %1866  ;;  %v2058_v32 = vld [vmem:[#allocation3 + $0x10] sm:$0xff] }
0x135d   :  { %v1689_v8 = vpop.permute.xlu1 %1688  ;;  %5642 = vmatprep.mubr.msk.bf16.mxu0 %vm6580_vm0, %v6579_v0  ;;  %1874 = vst.msk [vmem:[#allocation3 + $0x20] sm:$0xff] %vm1162_vm8, %v1867_v7  ;;  %v6022_v7 = vld [vmem:[%s8183_s16] sm:$0xff]  }
0x135e   :  { %1695 = vst.msk [vmem:[#allocation3 + $0x28] sm:$0xff] %vm981_vm7, %v1689_v8  ;;  %5651 = vmatpush3.bf16.msra.mxu1 %v6022_v7  ;;  %v6023_v8 = vld [vmem:[%s8183_s16 + $0x8] sm:$0xff]  }
0x135f   :  { %5652 = vmatprep.subr.bf16.mxu1 %v6579_v0 }
0x1362   :  { %5653 = vmatpush3.bf16.msra.mxu1 %v6023_v8 }
0x1363   :  { %5694 = vmatprep.subr.bf16.mxu1 %v6579_v0 }
0x1420   :  { %v5632_v9 = vpop.f32.mrb[48].mxu0 }
0x1421   :  { %v2027_v10 = vpop.f32.mrb[49].mxu0 }
0x1422   :  { %2044 = vrot.lane.b32.xlu1 %v2027_v10, %s6584_s23  ;;  %v5633_v11 = vpop.f32.mrb[50].mxu0 }
0x1423   :  { %v2030_v12 = vpop.f32.mrb[51].mxu0 }
0x1424   :  { %2046 = vrot.lane.b32.xlu0 %v2030_v12, %s6584_s23 }
0x1426   :  { %1868 = vrot.lane.b32.xlu1 %v7255_v13, %s6571_s6 }
0x142a   :  { %2048 = vrot.lane.b32.xlu1 %v5632_v9, %s6584_s23 }
0x142f   :  { %v2131_v14 = vpop.f32.mrb[52].mxu0 }
0x1430   :  { %v5640_v15 = vpop.f32.mrb[53].mxu0  ;;  %v2132_v35 = vadd.f32 %v5100_v16, %v2131_v14 }
0x1431   :  { %v2134_v54 = vpop.f32.mrb[54].mxu0 }
0x1432   :  { %v5641_v47 = vpop.f32.mrb[55].mxu0  ;;  %v7330_v21 = vadd.f32 %v6328_v18, %v2132_v35  ;;  %v2135_v23 = vadd.f32 %v5100_v16, %v2134_v54 }
0x1434   :  { %v2162_v22 = vsel %vm260_vm3, %v7330_v21, 0.0  ;;  %v7334_v17 = vadd.f32 %v6329_v33, %v2135_v23 }
0x1436   :  { %v2165_v13 = vsel %vm260_vm3, %v7334_v17, 0.0 }
0x1443   :  { %2163 = vadd.xlane.f32.xlu0 %v2162_v22 }
0x144e   :  { %2166 = vadd.xlane.f32.xlu1 %v2165_v13 }
0x1494   :  { %v2045_v25 = vpop.permute.xlu1 %2044 }
0x1495   :  { %2053 = vst.msk [vmem:[#allocation3 + $0x18] sm:$0xff] %vm1343_vm9, %v2045_v25 }
0x1496   :  { %v2047_v27 = vpop.permute.xlu0 %2046 }
0x1497   :  { %2054 = vst.msk [vmem:[#allocation3 + $0x20] sm:$0xff] %vm1343_vm9, %v2047_v27 }
0x1498   :  { %v1869_v28 = vpop.permute.xlu1 %1868 }
0x1499   :  { %1875 = vst.msk [vmem:[#allocation3 + $0x28] sm:$0xff] %vm1162_vm8, %v1869_v28 }
0x149c   :  { %v2049_v31 = vpop.permute.xlu1 %2048  ;;  %v2059_v37 = vld [vmem:[#allocation3 + $0x18] sm:$0xff] }
0x149d   :  { %2055 = vst.msk [vmem:[#allocation3 + $0x28] sm:$0xff] %vm1343_vm9, %v2049_v31  ;;  %v2063_v57 = vpack.c.bf16 %v2059_v37, %v2058_v32 }
0x149e   :  { %v2060_v40 = vld [vmem:[#allocation3 + $0x20] sm:$0xff] }
0x149f   :  { %5643 = vmatmul.mubr.msk.bf16.gmra.mrb[56].mxu0 %vm260_vm3, %v2063_v57 }
0x14a0   :  { %5646 = vmatprep.mubr.msk.bf16.mxu0 %vm6580_vm0, %v6579_v0 }
0x14a4   :  { %v2061_v45 = vld [vmem:[#allocation3 + $0x28] sm:$0xff] }
0x14a5   :  { %v2064_v46 = vpack.c.bf16 %v2061_v45, %v2060_v40 }
0x14a7   :  { %5647 = vmatmul.mubr.msk.bf16.gmra.mrb[60].mxu0 %vm260_vm3, %v2064_v46 }
0x14a8   :  { %5682 = vmatprep.mubr.msk.bf16.mxu0 %vm6580_vm0, %v6579_v0 }
0x14d0   :  { %v2164_v41 = vpop.xlane.xlu0 %2163 }
0x14d1   :  { %v2180_v43 = vmul.f32 0.03125, %v2164_v41 }
0x14d3   :  { %v7355_v39 = vsub.f32 %v7330_v21, %v2180_v43 }
0x14d5   :  { %v2192_v20 = vmul.f32 %v7355_v39, %v7355_v39 }
0x14d7   :  { %v2198_v5 = vsel %vm260_vm3, %v2192_v20, 0.0 }
0x14db   :  { %v2167_v62 = vpop.xlane.xlu1 %2166 }
0x14dc   :  { %v2181_v2 = vmul.f32 0.03125, %v2167_v62 }
0x14de   :  { %v2187_v56 = vsub.f32 %v7334_v17, %v2181_v2  ;;  %v6024_v2 = vld [vmem:[%s8185_s18] sm:$0xff]  }
0x14df   :  { %5667 = vmatpush3.bf16.msra.mxu0 %v6024_v2 }
0x14e0   :  { %v2193_v4 = vmul.f32 %v2187_v56, %v2187_v56  ;;  %5668 = vmatprep.subr.bf16.mxu0 %v6579_v0 }
0x14e2   :  { %v2201_v6 = vsel %vm260_vm3, %v2193_v4, 0.0 }
0x1572   :  { %v2139_v48 = vpop.f32.mrb[56].mxu0 }
0x1573   :  { %v2140_v49 = vadd.f32 %v5100_v16, %v2139_v48  ;;  %v5644_v50 = vpop.f32.mrb[57].mxu0 }
0x1574   :  { %v2142_v42 = vpop.f32.mrb[58].mxu0  ;;  %v7404_v50 = vld [vmem:[#allocation18] ss:$0 sm:$0xff] }
0x1575   :  { %v7348_v29 = vadd.f32 %v6330_v44, %v2140_v49  ;;  %v2143_v36 = vadd.f32 %v5100_v16, %v2142_v42  ;;  %v5645_v60 = vpop.f32.mrb[59].mxu0 }
0x1576   :  { %v7411_v60 = vld [vmem:[%s8182_s15] ss:$0 sm:$0xff] }
0x1577   :  { %v7350_v38 = vadd.f32 %v6331_v30, %v2143_v36  ;;  %v2168_v26 = vsel %vm260_vm3, %v7348_v29, 0.0 }
0x1578   :  { %2169 = vadd.xlane.f32.xlu0 %v2168_v26 }
0x1579   :  { %v2171_v53 = vsel %vm260_vm3, %v7350_v38, 0.0 }
0x157a   :  { %v2147_v34 = vpop.f32.mrb[60].mxu0 }
0x157b   :  { %v2148_v51 = vadd.f32 %v5100_v16, %v2147_v34  ;;  %v5648_v52 = vpop.f32.mrb[61].mxu0  ;;  %v6025_v34 = vld [vmem:[%s8185_s18 + $0x8] sm:$0xff]  }
0x157c   :  { %2172 = vadd.xlane.f32.xlu0 %v2171_v53  ;;  %v2150_v55 = vpop.f32.mrb[62].mxu0  ;;  %5669 = vmatpush3.bf16.msra.mxu0 %v6025_v34  ;;  %v6028_v52 = vld [vmem:[%s8185_s18 + $0x20] sm:$0xff]   ;;  %v6029_v53 = vld [vmem:[%s8185_s18 + $0x28] sm:$0xff]  }
0x157d   :  { %v7360_v59 = vadd.f32 %v6332_v58, %v2148_v51  ;;  %v2151_v19 = vadd.f32 %v5100_v16, %v2150_v55  ;;  %v5649_v61 = vpop.f32.mrb[63].mxu0  ;;  %5670 = vmatprep.subr.bf16.mxu0 %v6579_v0  ;;  %v6027_v51 = vld [vmem:[%s8185_s18 + $0x18] sm:$0xff]   ;;  %v6030_v55 = vld [vmem:[%s8185_s18 + $0x30] sm:$0xff]  }
0x157f   :  { %v7362_v63 = vadd.f32 %v6333_v3, %v2151_v19  ;;  %v2174_v24 = vsel %vm260_vm3, %v7360_v59, 0.0 }
0x1580   :  { %2175 = vadd.xlane.f32.xlu0 %v2174_v24 }
0x1581   :  { %v2177_v1 = vsel %vm260_vm3, %v7362_v63, 0.0 }
0x1582   :  { %2178 = vadd.xlane.f32.xlu1 %v2177_v1 }
0x1584   :  { %2199 = vadd.xlane.f32.xlu0 %v2198_v5 }
0x1586   :  { %2202 = vadd.xlane.f32.xlu1 %v2201_v6 }
0x1605   :  { %v2170_v9 = vpop.xlane.xlu0 %2169 }
0x1606   :  { %v2182_v10 = vmul.f32 0.03125, %v2170_v9 }
0x1608   :  { %v7381_v11 = vsub.f32 %v7348_v29, %v2182_v10 }
0x1609   :  { %v2173_v12 = vpop.xlane.xlu0 %2172 }
0x160a   :  { %v2183_v14 = vmul.f32 0.03125, %v2173_v12  ;;  %v2194_v15 = vmul.f32 %v7381_v11, %v7381_v11 }
0x160c   :  { %v7386_v54 = vsub.f32 %v7350_v38, %v2183_v14  ;;  %v2204_v47 = vsel %vm260_vm3, %v2194_v15, 0.0 }
0x160d   :  { %2205 = vadd.xlane.f32.xlu0 %v2204_v47  ;;  %v2176_v16 = vpop.xlane.xlu0 %2175 }
0x160e   :  { %v2184_v35 = vmul.f32 0.03125, %v2176_v16  ;;  %v2195_v18 = vmul.f32 %v7386_v54, %v7386_v54 }
0x160f   :  { %v2179_v22 = vpop.xlane.xlu1 %2178 }
0x1610   :  { %v7392_v23 = vsub.f32 %v7360_v59, %v2184_v35  ;;  %v2185_v33 = vmul.f32 0.03125, %v2179_v22  ;;  %v2207_v13 = vsel %vm260_vm3, %v2195_v18, 0.0 }
0x1611   :  { %v2200_v25 = vpop.xlane.xlu0 %2199  ;;  %2208 = vadd.xlane.f32.xlu1 %v2207_v13 }
0x1612   :  { %v7396_v27 = vsub.f32 %v7362_v63, %v2185_v33  ;;  %v2216_v28 = vmul.f32 0.03125, %v2200_v25  ;;  %v2196_v31 = vmul.f32 %v7392_v23, %v7392_v23 }
0x1613   :  { %v2203_v32 = vpop.xlane.xlu1 %2202 }
0x1614   :  { %v2222_v37 = vadd.f32 1e-05, %v2216_v28  ;;  %v2217_v57 = vmul.f32 0.03125, %v2203_v32  ;;  %v2210_v40 = vsel %vm260_vm3, %v2196_v31, 0.0  ;;  %v2197_v45 = vmul.f32 %v7396_v27, %v7396_v27 }
0x1615   :  { %2211 = vadd.xlane.f32.xlu0 %v2210_v40 }
0x1616   :  { %6160 = vrsqrt.f32 %v2222_v37  ;;  %v2223_v46 = vadd.f32 1e-05, %v2217_v57  ;;  %v2213_v48 = vsel %vm260_vm3, %v2197_v45, 0.0 }
0x1617   :  { %2214 = vadd.xlane.f32.xlu1 %v2213_v48 }
0x1618   :  { %6162 = vrsqrt.f32 %v2223_v46 }
0x1620   :  { %v6161_v49 = vpop.eup %6160 }
0x1621   :  { %v2234_v41 = vmul.f32 %v6161_v49, %v7355_v39  ;;  %v6026_v39 = vld [vmem:[%s8185_s18 + $0x10] sm:$0xff]  }
0x1622   :  { %v6163_v42 = vpop.eup %6162  ;;  %5671 = vmatpush3.bf16.msra.mxu0 %v6026_v39 }
0x1623   :  { %v2246_v44 = vmul.f32 %v7404_v50, %v2234_v41  ;;  %v2235_v36 = vmul.f32 %v6163_v42, %v2187_v56  ;;  %5672 = vmatprep.subr.bf16.mxu0 %v6579_v0  ;;  %v6031_v56 = vld [vmem:[%s8185_s18 + $0x38] sm:$0xff]  }
0x1625   :  { %v2247_v62 = vmul.f32 %v7404_v50, %v2235_v36  ;;  %v2258_v43 = vadd.f32 %v7411_v60, %v2246_v44 }
0x1626   :  { %5673 = vmatpush3.bf16.msra.mxu0 %v6027_v51 }
0x1627   :  { %v2259_v30 = vadd.f32 %v7411_v60, %v2247_v62  ;;  %5674 = vmatprep.subr.bf16.mxu0 %v6579_v0 }
0x1629   :  { %v2264_v26 = vpack.c.bf16 %v2259_v30, %v2258_v43 }
0x162a   :  { %5675 = vmatpush3.bf16.msra.mxu0 %v6028_v52 }
0x162b   :  { %5655 = vmatmul.mubr.msk.bf16.vlgmr.msra.gmra.mrb[52].mxu1 %vm260_vm3, %v2264_v26  ;;  %5676 = vmatprep.subr.bf16.mxu0 %v6579_v0 }
0x162c   :  { %5658 = vmatprep.mubr.msk.bf16.mxu1 %vm6580_vm0, %v6579_v0 }
0x162e   :  { %5677 = vmatpush3.bf16.msra.mxu0 %v6029_v53 }
0x162f   :  { %5678 = vmatprep.subr.bf16.mxu0 %v6579_v0 }
0x1632   :  { %5679 = vmatpush3.bf16.msra.mxu0 %v6030_v55 }
0x1633   :  { %5680 = vmatprep.subr.bf16.mxu0 %v6579_v0 }
0x1636   :  { %5681 = vmatpush3.bf16.msra.mxu0 %v6031_v56 }
0x1637   :  { %5726 = vmatprep.subr.bf16.mxu0 %v6579_v0 }
0x169a   :  { %v2206_v58 = vpop.xlane.xlu0 %2205 }
0x169b   :  { %v2218_v19 = vmul.f32 0.03125, %v2206_v58 }
0x169d   :  { %v2224_v61 = vadd.f32 1e-05, %v2218_v19 }
0x169e   :  { %v2209_v3 = vpop.xlane.xlu1 %2208 }
0x169f   :  { %6164 = vrsqrt.f32 %v2224_v61  ;;  %v2219_v24 = vmul.f32 0.03125, %v2209_v3 }
0x16a1   :  { %v2225_v20 = vadd.f32 1e-05, %v2219_v24 }
0x16a2   :  { %v2212_v1 = vpop.xlane.xlu0 %2211 }
0x16a3   :  { %6166 = vrsqrt.f32 %v2225_v20  ;;  %v2220_v4 = vmul.f32 0.03125, %v2212_v1 }
0x16a4   :  { %v2215_v5 = vpop.xlane.xlu1 %2214 }
0x16a5   :  { %v2226_v6 = vadd.f32 1e-05, %v2220_v4  ;;  %v2221_v7 = vmul.f32 0.03125, %v2215_v5 }
0x16a7   :  { %6168 = vrsqrt.f32 %v2226_v6  ;;  %v2227_v8 = vadd.f32 1e-05, %v2221_v7 }
0x16a9   :  { %v6165_v9 = vpop.eup %6164  ;;  %6170 = vrsqrt.f32 %v2227_v8 }
0x16aa   :  { %v2236_v10 = vmul.f32 %v6165_v9, %v7381_v11 }
0x16ac   :  { %v2248_v15 = vmul.f32 %v7404_v50, %v2236_v10 }
0x16ad   :  { %v6167_v12 = vpop.eup %6166 }
0x16ae   :  { %v2237_v14 = vmul.f32 %v6167_v12, %v7386_v54  ;;  %v2260_v35 = vadd.f32 %v7411_v60, %v2248_v15 }
0x16b0   :  { %v2249_v47 = vmul.f32 %v7404_v50, %v2237_v14 }
0x16b1   :  { %v6169_v16 = vpop.eup %6168 }
0x16b2   :  { %v2261_v18 = vadd.f32 %v7411_v60, %v2249_v47  ;;  %v2238_v22 = vmul.f32 %v6169_v16, %v7392_v23  ;;  %v5108_v23 = vld [vmem:[%s8184_s17] ss:$0 sm:$0xff] }
0x16b3   :  { %v6171_v33 = vpop.eup %6170 }
0x16b4   :  { %v2265_v13 = vpack.c.bf16 %v2261_v18, %v2260_v35  ;;  %v2239_v25 = vmul.f32 %v6171_v33, %v7396_v27  ;;  %v2250_v11 = vmul.f32 %v7404_v50, %v2238_v22 }
0x16b6   :  { %5659 = vmatmul.mubr.msk.bf16.gmra.mrb[56].mxu1 %vm260_vm3, %v2265_v13  ;;  %v2251_v54 = vmul.f32 %v7404_v50, %v2239_v25  ;;  %v2262_v31 = vadd.f32 %v7411_v60, %v2250_v11 }
0x16b7   :  { %5662 = vmatprep.mubr.msk.bf16.mxu1 %vm6580_vm0, %v6579_v0 }
0x16b8   :  { %v2263_v28 = vadd.f32 %v7411_v60, %v2251_v54 }
0x16ba   :  { %v2266_v32 = vpack.c.bf16 %v2263_v28, %v2262_v31 }
0x16be   :  { %5663 = vmatmul.mubr.msk.bf16.gmra.mrb[60].mxu1 %vm260_vm3, %v2266_v32 }
0x16bf   :  { %5698 = vmatprep.mubr.msk.bf16.mxu1 %vm6580_vm0, %v6579_v0 }
0x16fe   :  { %v2333_v27 = vpop.f32.mrb[52].mxu1 }
0x16ff   :  { %v2334_v37 = vadd.f32 %v5108_v23, %v2333_v27  ;;  %v5656_v57 = vpop.f32.mrb[53].mxu1 }
0x1700   :  { %v2336_v40 = vpop.f32.mrb[54].mxu1 }
0x1701   :  { %v2362_v45 = vmul.f32 0.044715, %v2334_v37  ;;  %v2337_v46 = vadd.f32 %v5108_v23, %v2336_v40  ;;  %v5657_v48 = vpop.f32.mrb[55].mxu1  ;;  %v2356_v34 = vmul.f32 0.5, %v2334_v37 }
0x1703   :  { %v2368_v49 = vmul.f32 %v2362_v45, %v2334_v37  ;;  %v2363_v50 = vmul.f32 0.044715, %v2337_v46  ;;  %v2357_v39 = vmul.f32 0.5, %v2337_v46 }
0x1705   :  { %v2374_v41 = vmul.f32 %v2368_v49, %v2334_v37  ;;  %v2369_v42 = vmul.f32 %v2363_v50, %v2337_v46 }
0x1707   :  { %v2380_v44 = vadd.f32 %v2374_v41, %v2334_v37  ;;  %v2375_v36 = vmul.f32 %v2369_v42, %v2337_v46 }
0x1709   :  { %v2386_v60 = vmul.f32 0.7978846, %v2380_v44  ;;  %v2381_v62 = vadd.f32 %v2375_v36, %v2337_v46 }
0x170b   :  { %6172 = vtanh.f32 %v2386_v60  ;;  %v2387_v43 = vmul.f32 0.7978846, %v2381_v62 }
0x170d   :  { %6174 = vtanh.f32 %v2387_v43 }
0x1715   :  { %v6173_v30 = vpop.eup %6172 }
0x1716   :  { %v2398_v26 = vadd.f32 1.0, %v6173_v30 }
0x1717   :  { %v6175_v2 = vpop.eup %6174 }
0x1718   :  { %v2399_v51 = vadd.f32 1.0, %v6175_v2  ;;  %v2404_v52 = vmul.f32 %v2398_v26, %v2356_v34  ;;  %v5114_v2 = vld [vmem:[%s8186_s19] ss:$0 sm:$0xff] }
0x171a   :  { %v2405_v53 = vmul.f32 %v2399_v51, %v2357_v39 }
0x171c   :  { %v2410_v55 = vpack.c.bf16 %v2405_v53, %v2404_v52 }
0x171e   :  { %5683 = vmatmul.mubr.bf16.vlgmr.msra.gmra.mrb[64].mxu0 %v2410_v55 }
0x171f   :  { %5686 = vmatprep.mubr.msk.bf16.mxu0 %vm6580_vm0, %v6579_v0 }
0x1789   :  { %v2341_v56 = vpop.f32.mrb[56].mxu1 }
0x178a   :  { %v2342_v58 = vadd.f32 %v5108_v23, %v2341_v56  ;;  %v5660_v19 = vpop.f32.mrb[57].mxu1 }
0x178b   :  { %v2344_v61 = vpop.f32.mrb[58].mxu1 }
0x178c   :  { %v2364_v3 = vmul.f32 0.044715, %v2342_v58  ;;  %v2345_v24 = vadd.f32 %v5108_v23, %v2344_v61  ;;  %v5661_v20 = vpop.f32.mrb[59].mxu1  ;;  %v2358_v40 = vmul.f32 0.5, %v2342_v58 }
0x178e   :  { %v2370_v1 = vmul.f32 %v2364_v3, %v2342_v58  ;;  %v2365_v4 = vmul.f32 0.044715, %v2345_v24  ;;  %v2359_v45 = vmul.f32 0.5, %v2345_v24 }
0x1790   :  { %v2376_v5 = vmul.f32 %v2370_v1, %v2342_v58  ;;  %v2371_v6 = vmul.f32 %v2365_v4, %v2345_v24 }
0x1791   :  { %v2349_v7 = vpop.f32.mrb[60].mxu1 }
0x1792   :  { %v2377_v8 = vmul.f32 %v2371_v6, %v2345_v24  ;;  %v2350_v9 = vadd.f32 %v5108_v23, %v2349_v7  ;;  %v5664_v10 = vpop.f32.mrb[61].mxu1  ;;  %v2382_v12 = vadd.f32 %v2376_v5, %v2342_v58 }
0x1793   :  { %v2352_v14 = vpop.f32.mrb[62].mxu1 }
0x1794   :  { %v2366_v15 = vmul.f32 0.044715, %v2350_v9  ;;  %v2353_v47 = vadd.f32 %v5108_v23, %v2352_v14  ;;  %v5665_v16 = vpop.f32.mrb[63].mxu1  ;;  %v2383_v35 = vadd.f32 %v2377_v8, %v2345_v24  ;;  %v2388_v18 = vmul.f32 0.7978846, %v2382_v12 }
0x1795   :  { %v2360_v36 = vmul.f32 0.5, %v2350_v9 }
0x1796   :  { %v2372_v22 = vmul.f32 %v2366_v15, %v2350_v9  ;;  %v2367_v33 = vmul.f32 0.044715, %v2353_v47  ;;  %v2389_v13 = vmul.f32 0.7978846, %v2383_v35  ;;  %6176 = vtanh.f32 %v2388_v18 }
0x1797   :  { %v2361_v60 = vmul.f32 0.5, %v2353_v47 }
0x1798   :  { %v2378_v25 = vmul.f32 %v2372_v22, %v2350_v9  ;;  %v2373_v11 = vmul.f32 %v2367_v33, %v2353_v47  ;;  %6178 = vtanh.f32 %v2389_v13 }
0x179a   :  { %v2379_v54 = vmul.f32 %v2373_v11, %v2353_v47  ;;  %v2384_v28 = vadd.f32 %v2378_v25, %v2350_v9 }
0x179c   :  { %v2385_v31 = vadd.f32 %v2379_v54, %v2353_v47  ;;  %v2390_v32 = vmul.f32 0.7978846, %v2384_v28 }
0x179e   :  { %v2391_v27 = vmul.f32 0.7978846, %v2385_v31  ;;  %6180 = vtanh.f32 %v2390_v32  ;;  %v6033_v31 = vld [vmem:[%s8177_s10 + $0x10] sm:$0xff]   ;;  %v6034_v32 = vld [vmem:[%s8221_s3 + $0x18] sm:$0xff]  }
0x179f   :  { %5727 = vmatpush3.bf16.msra.mxu0 %v6033_v31 }
0x17a0   :  { %v6177_v37 = vpop.eup %6176  ;;  %6182 = vtanh.f32 %v2391_v27  ;;  %5728 = vmatprep.subr.bf16.mxu0 %v6579_v0  ;;  %v6035_v27 = vld [vmem:[%s8177_s10 + $0x18] sm:$0xff]  }
0x17a1   :  { %v2400_v57 = vadd.f32 1.0, %v6177_v37 }
0x17a2   :  { %v6179_v23 = vpop.eup %6178 }
0x17a3   :  { %v2401_v46 = vadd.f32 1.0, %v6179_v23  ;;  %v2406_v48 = vmul.f32 %v2400_v57, %v2358_v40  ;;  %5729 = vmatpush3.bf16.msra.mxu0 %v6035_v27 }
0x17a5   :  { %v2407_v49 = vmul.f32 %v2401_v46, %v2359_v45 }
0x17a7   :  { %v2411_v50 = vpack.c.bf16 %v2407_v49, %v2406_v48 }
0x17a8   :  { %v6181_v41 = vpop.eup %6180 }
0x17a9   :  { %5687 = vmatmul.mubr.bf16.gmra.mrb[68].mxu0 %v2411_v50  ;;  %v2402_v42 = vadd.f32 1.0, %v6181_v41 }
0x17aa   :  { %v6183_v44 = vpop.eup %6182  ;;  %5690 = vmatprep.mubr.msk.bf16.mxu0 %vm6580_vm0, %v6579_v0 }
0x17ab   :  { %v2403_v62 = vadd.f32 1.0, %v6183_v44  ;;  %v2408_v43 = vmul.f32 %v2402_v42, %v2360_v36 }
0x17ad   :  { %v2409_v30 = vmul.f32 %v2403_v62, %v2361_v60 }
0x17af   :  { %v2412_v26 = vpack.c.bf16 %v2409_v30, %v2408_v43 }
0x17b1   :  { %5691 = vmatmul.mubr.bf16.gmra.mrb[72].mxu0 %v2412_v26 }
0x17b2   :  { %5730 = vmatprep.mubr.msk.bf16.mxu0 %vm6580_vm0, %v6579_v0 }
0x17f1   :  { %v2518_v34 = vpop.f32.mrb[64].mxu0 }
0x17f2   :  { %v2519_v39 = vadd.f32 %v5114_v2, %v2518_v34  ;;  %v5684_v51 = vpop.f32.mrb[65].mxu0 }
0x17f3   :  { %v2521_v52 = vpop.f32.mrb[66].mxu0 }
0x17f4   :  { %v7482_v53 = vadd.f32 %v2519_v39, %v7330_v21  ;;  %v2522_v55 = vadd.f32 %v5114_v2, %v2521_v52  ;;  %v5685_v56 = vpop.f32.mrb[67].mxu0 }
0x17f6   :  { %v7485_v58 = vadd.f32 %v2522_v55, %v7334_v17  ;;  %v2551_v19 = vsel %vm260_vm3, %v7482_v53, 0.0 }
0x17f7   :  { %2552 = vadd.xlane.f32.xlu0 %v2551_v19 }
0x17f8   :  { %v2554_v61 = vsel %vm260_vm3, %v7485_v58, 0.0 }
0x17f9   :  { %2555 = vadd.xlane.f32.xlu1 %v2554_v61 }
0x187c   :  { %v2526_v3 = vpop.f32.mrb[68].mxu0 }
0x187d   :  { %v2527_v24 = vadd.f32 %v5114_v2, %v2526_v3  ;;  %v5688_v20 = vpop.f32.mrb[69].mxu0  ;;  %v5123_v3 = vld [vmem:[#allocation9 + $0x1] ss:$0 sm:$0xff] }
0x187e   :  { %v2529_v1 = vpop.f32.mrb[70].mxu0 }
0x187f   :  { %v7492_v21 = vadd.f32 %v2527_v24, %v7348_v29  ;;  %v2530_v4 = vadd.f32 %v5114_v2, %v2529_v1  ;;  %v5689_v5 = vpop.f32.mrb[71].mxu0 }
0x1880   :  { %v5124_v5 = vld [vmem:[#allocation10 + $0x1] ss:$0 sm:$0xff] }
0x1881   :  { %v7495_v17 = vadd.f32 %v2530_v4, %v7350_v38  ;;  %v2557_v6 = vsel %vm260_vm3, %v7492_v21, 0.0 }
0x1882   :  { %2558 = vadd.xlane.f32.xlu0 %v2557_v6 }
0x1883   :  { %v2560_v7 = vsel %vm260_vm3, %v7495_v17, 0.0 }
0x1884   :  { %v2553_v8 = vpop.xlane.xlu0 %2552  ;;  %2561 = vadd.xlane.f32.xlu1 %v2560_v7  ;;  %v2534_v9 = vpop.f32.mrb[72].mxu0 }
0x1885   :  { %v2569_v10 = vmul.f32 0.03125, %v2553_v8  ;;  %v2535_v12 = vadd.f32 %v5114_v2, %v2534_v9  ;;  %v5692_v14 = vpop.f32.mrb[73].mxu0 }
0x1886   :  { %v2537_v29 = vpop.f32.mrb[74].mxu0  ;;  %v2556_v15 = vpop.xlane.xlu1 %2555 }
0x1887   :  { %v2575_v47 = vsub.f32 %v7482_v53, %v2569_v10  ;;  %v7503_v38 = vadd.f32 %v2535_v12, %v7360_v59  ;;  %v2538_v16 = vadd.f32 %v5114_v2, %v2537_v29  ;;  %v2570_v35 = vmul.f32 0.03125, %v2556_v15  ;;  %v5693_v18 = vpop.f32.mrb[75].mxu0  ;;  %v6036_v10 = vld [vmem:[%s8222_s11 + $0x10] sm:$0xff]   ;;  %v6037_v12 = vld [vmem:[%s8222_s11 + $0x18] sm:$0xff]  }
0x1889   :  { %v7506_v22 = vadd.f32 %v2538_v16, %v7362_v63  ;;  %v2576_v33 = vsub.f32 %v7485_v58, %v2570_v35  ;;  %v2563_v13 = vsel %vm260_vm3, %v7503_v38, 0.0  ;;  %v2581_v25 = vmul.f32 %v2575_v47, %v2575_v47  ;;  %v6032_v63 = vld [vmem:[%s8221_s3 + $0x10] sm:$0xff]  }
0x188a   :  { %2564 = vadd.xlane.f32.xlu0 %v2563_v13  ;;  %5695 = vmatpush3.bf16.msra.mxu1 %v6032_v63 }
0x188b   :  { %v2566_v11 = vsel %vm260_vm3, %v7506_v22, 0.0  ;;  %v2582_v54 = vmul.f32 %v2576_v33, %v2576_v33  ;;  %v2587_v59 = vsel %vm260_vm3, %v2581_v25, 0.0  ;;  %5696 = vmatprep.subr.bf16.mxu1 %v6579_v0 }
0x188c   :  { %2567 = vadd.xlane.f32.xlu1 %v2566_v11 }
0x188d   :  { %v2590_v28 = vsel %vm260_vm3, %v2582_v54, 0.0 }
0x188e   :  { %2588 = vadd.xlane.f32.xlu0 %v2587_v59  ;;  %5697 = vmatpush3.bf16.msra.mxu1 %v6034_v32 }
0x188f   :  { %5710 = vmatprep.subr.bf16.mxu1 %v6579_v0 }
0x1890   :  { %2591 = vadd.xlane.f32.xlu1 %v2590_v28 }
0x190f   :  { %v2559_v37 = vpop.xlane.xlu0 %2558 }
0x1910   :  { %v2571_v57 = vmul.f32 0.03125, %v2559_v37 }
0x1911   :  { %v2562_v23 = vpop.xlane.xlu1 %2561 }
0x1912   :  { %v7531_v40 = vsub.f32 %v7492_v21, %v2571_v57  ;;  %v2572_v45 = vmul.f32 0.03125, %v2562_v23 }
0x1914   :  { %v7534_v46 = vsub.f32 %v7495_v17, %v2572_v45  ;;  %v2583_v48 = vmul.f32 %v7531_v40, %v7531_v40 }
0x1916   :  { %v2593_v49 = vsel %vm260_vm3, %v2583_v48, 0.0  ;;  %v2584_v50 = vmul.f32 %v7534_v46, %v7534_v46 }
0x1917   :  { %2594 = vadd.xlane.f32.xlu0 %v2593_v49  ;;  %v2565_v41 = vpop.xlane.xlu0 %2564 }
0x1918   :  { %v2573_v42 = vmul.f32 0.03125, %v2565_v41  ;;  %v2596_v44 = vsel %vm260_vm3, %v2584_v50, 0.0 }
0x1919   :  { %2597 = vadd.xlane.f32.xlu1 %v2596_v44  ;;  %v2568_v36 = vpop.xlane.xlu1 %2567 }
0x191a   :  { %v7543_v60 = vsub.f32 %v7503_v38, %v2573_v42  ;;  %v2574_v62 = vmul.f32 0.03125, %v2568_v36  ;;  %v5129_v36 = vld [vmem:[#allocation12 + $0x1] ss:$0 sm:$0xff] }
0x191b   :  { %v2589_v43 = vpop.xlane.xlu0 %2588 }
0x191c   :  { %v7546_v30 = vsub.f32 %v7506_v22, %v2574_v62  ;;  %v2605_v26 = vmul.f32 0.03125, %v2589_v43  ;;  %v2585_v2 = vmul.f32 %v7543_v60, %v7543_v60  ;;  %v5149_v62 = vld [vmem:[#allocation15 + $0x1] ss:$0 sm:$0xff] }
0x191d   :  { %v2592_v34 = vpop.xlane.xlu1 %2591 }
0x191e   :  { %v2611_v39 = vadd.f32 1e-05, %v2605_v26  ;;  %v2606_v51 = vmul.f32 0.03125, %v2592_v34  ;;  %v2599_v52 = vsel %vm260_vm3, %v2585_v2, 0.0  ;;  %v2586_v55 = vmul.f32 %v7546_v30, %v7546_v30 }
0x191f   :  { %2600 = vadd.xlane.f32.xlu0 %v2599_v52 }
0x1920   :  { %6184 = vrsqrt.f32 %v2611_v39  ;;  %v2612_v56 = vadd.f32 1e-05, %v2606_v51  ;;  %v2602_v19 = vsel %vm260_vm3, %v2586_v55, 0.0 }
0x1921   :  { %2603 = vadd.xlane.f32.xlu1 %v2602_v19 }
0x1922   :  { %6186 = vrsqrt.f32 %v2612_v56 }
0x192a   :  { %v6185_v61 = vpop.eup %6184 }
0x192b   :  { %v2623_v24 = vmul.f32 %v6185_v61, %v2575_v47 }
0x192c   :  { %v6187_v20 = vpop.eup %6186 }
0x192d   :  { %v2635_v1 = vmul.f32 %v5123_v3, %v2623_v24  ;;  %v2624_v4 = vmul.f32 %v6187_v20, %v2576_v33 }
0x192f   :  { %v2636_v6 = vmul.f32 %v5123_v3, %v2624_v4  ;;  %v2647_v7 = vadd.f32 %v5124_v5, %v2635_v1 }
0x1931   :  { %v2648_v8 = vadd.f32 %v5124_v5, %v2636_v6 }
0x1933   :  { %v2653_v9 = vpack.c.bf16 %v2648_v8, %v2647_v7 }
0x1935   :  { %5699 = vmatmul.mubr.msk.bf16.vlgmr.msra.gmra.mrb[64].mxu1 %vm260_vm3, %v2653_v9  ;;  %5731 = vmatmul.mubr.msk.bf16.vlgmr.msra.gmra.mrb[76].mxu0 %vm260_vm3, %v2653_v9 }
0x1936   :  { %5702 = vmatprep.mubr.msk.bf16.mxu1 %vm6580_vm0, %v6579_v0  ;;  %5734 = vmatprep.mubr.msk.bf16.mxu0 %vm6580_vm0, %v6579_v0 }
0x1937   :  { %5711 = vmatpush3.bf16.msra.mxu1 %v6036_v10 }
0x1938   :  { %5712 = vmatprep.subr.bf16.mxu1 %v6579_v0 }
0x193b   :  { %5713 = vmatpush3.bf16.msra.mxu1 %v6037_v12 }
0x19a4   :  { %v2595_v14 = vpop.xlane.xlu0 %2594 }
0x19a5   :  { %v2607_v29 = vmul.f32 0.03125, %v2595_v14 }
0x19a6   :  { %v2598_v15 = vpop.xlane.xlu1 %2597 }
0x19a7   :  { %v2613_v47 = vadd.f32 1e-05, %v2607_v29  ;;  %v2608_v16 = vmul.f32 0.03125, %v2598_v15 }
0x19a9   :  { %6188 = vrsqrt.f32 %v2613_v47  ;;  %v2614_v35 = vadd.f32 1e-05, %v2608_v16 }
0x19ab   :  { %6190 = vrsqrt.f32 %v2614_v35 }
0x19ac   :  { %v2601_v18 = vpop.xlane.xlu0 %2600 }
0x19ad   :  { %v2609_v33 = vmul.f32 0.03125, %v2601_v18 }
0x19ae   :  { %v2604_v13 = vpop.xlane.xlu1 %2603 }
0x19af   :  { %v2615_v25 = vadd.f32 1e-05, %v2609_v33  ;;  %v2610_v11 = vmul.f32 0.03125, %v2604_v13 }
0x19b1   :  { %6192 = vrsqrt.f32 %v2615_v25  ;;  %v2616_v54 = vadd.f32 1e-05, %v2610_v11 }
0x19b3   :  { %v6189_v59 = vpop.eup %6188  ;;  %6194 = vrsqrt.f32 %v2616_v54 }
0x19b4   :  { %v2625_v28 = vmul.f32 %v6189_v59, %v7531_v40 }
0x19b5   :  { %v6191_v63 = vpop.eup %6190 }
0x19b6   :  { %v2626_v31 = vmul.f32 %v6191_v63, %v7534_v46  ;;  %v2637_v32 = vmul.f32 %v5123_v3, %v2625_v28 }
0x19b8   :  { %v2638_v27 = vmul.f32 %v5123_v3, %v2626_v31  ;;  %v2649_v37 = vadd.f32 %v5124_v5, %v2637_v32 }
0x19ba   :  { %v2650_v57 = vadd.f32 %v5124_v5, %v2638_v27 }
0x19bb   :  { %v6193_v23 = vpop.eup %6192 }
0x19bc   :  { %v2654_v45 = vpack.c.bf16 %v2650_v57, %v2649_v37  ;;  %v2627_v48 = vmul.f32 %v6193_v23, %v7543_v60  ;;  %v5139_v37 = vld [vmem:[#allocation13 + $0x1] ss:$0 sm:$0xff] }
0x19bd   :  { %v6195_v49 = vpop.eup %6194 }
0x19be   :  { %5703 = vmatmul.mubr.msk.bf16.gmra.mrb[68].mxu1 %vm260_vm3, %v2654_v45  ;;  %5735 = vmatmul.mubr.msk.bf16.gmra.mrb[80].mxu0 %vm260_vm3, %v2654_v45  ;;  %v2628_v50 = vmul.f32 %v6195_v49, %v7546_v30  ;;  %v2639_v41 = vmul.f32 %v5123_v3, %v2627_v48 }
0x19bf   :  { %5706 = vmatprep.mubr.msk.bf16.mxu1 %vm6580_vm0, %v6579_v0  ;;  %5738 = vmatprep.mubr.msk.bf16.mxu0 %vm6580_vm0, %v6579_v0 }
0x19c0   :  { %v2640_v40 = vmul.f32 %v5123_v3, %v2628_v50  ;;  %v2651_v46 = vadd.f32 %v5124_v5, %v2639_v41 }
0x19c2   :  { %v2652_v42 = vadd.f32 %v5124_v5, %v2640_v40 }
0x19c4   :  { %v2655_v44 = vpack.c.bf16 %v2652_v42, %v2651_v46 }
0x19c6   :  { %5707 = vmatmul.mubr.msk.bf16.gmra.mrb[72].mxu1 %vm260_vm3, %v2655_v44  ;;  %5739 = vmatmul.mubr.msk.bf16.gmra.mrb[84].mxu0 %vm260_vm3, %v2655_v44 }
0x19c7   :  { %5714 = vmatprep.mubr.msk.bf16.mxu1 %vm6580_vm0, %v6579_v0 }
0x19ce   :  { %5715 = vmatmul.mubr.msk.bf16.vlgmr.msra.gmra.mrb[76].mxu1 %vm260_vm3, %v2653_v9 }
0x19cf   :  { %5718 = vmatprep.mubr.msk.bf16.mxu1 %vm6580_vm0, %v6579_v0 }
0x19d6   :  { %5719 = vmatmul.mubr.msk.bf16.gmra.mrb[80].mxu1 %vm260_vm3, %v2654_v45 }
0x19d7   :  { %5722 = vmatprep.mubr.msk.bf16.mxu1 %vm6580_vm0, %v6579_v0 }
0x19de   :  { %5723 = vmatmul.mubr.msk.bf16.gmra.mrb[84].mxu1 %vm260_vm3, %v2655_v44 }
0x1a08   :  { %v2724_v60 = vpop.f32.mrb[64].mxu1  ;;  %v2888_v43 = vpop.f32.mrb[76].mxu0 }
0x1a09   :  { %v5700_v30 = vpop.f32.mrb[65].mxu1  ;;  %v5732_v26 = vpop.f32.mrb[77].mxu0  ;;  %v2725_v39 = vadd.f32 %v5129_v36, %v2724_v60  ;;  %v2889_v51 = vadd.f32 %v5149_v62, %v2888_v43 }
0x1a0a   :  { %v2727_v2 = vpop.f32.mrb[66].mxu1  ;;  %v2891_v34 = vpop.f32.mrb[78].mxu0 }
0x1a0b   :  { %v2728_v52 = vadd.f32 %v5129_v36, %v2727_v2  ;;  %v2892_v55 = vadd.f32 %v5149_v62, %v2891_v34  ;;  %v5701_v56 = vpop.f32.mrb[67].mxu1  ;;  %v5733_v19 = vpop.f32.mrb[79].mxu0 }
0x1a0d   :  { %v7588_v61 = vpack.c.bf16 %v2728_v52, %v2725_v39  ;;  %v7590_v3 = vpack.c.bf16 %v2892_v55, %v2889_v51 }
0x1a0f   :  { %5746 = vmatprep.mubr.msk.bf16.mxu1 %vm640_vm4, %v7588_v61  ;;  %5750 = vmatprep.subr.bf16.mxu0 %v7590_v3 }
0x1a10   :  { %5751 = vmatpush3.bf16.msra.mxu0 %v7590_v3 }
0x1a91   :  { %v2732_v24 = vpop.f32.mrb[68].mxu1  ;;  %v2896_v20 = vpop.f32.mrb[80].mxu0 }
0x1a92   :  { %v5704_v1 = vpop.f32.mrb[69].mxu1  ;;  %v5736_v4 = vpop.f32.mrb[81].mxu0  ;;  %v2733_v7 = vadd.f32 %v5129_v36, %v2732_v24  ;;  %v2897_v8 = vadd.f32 %v5149_v62, %v2896_v20 }
0x1a93   :  { %v2735_v5 = vpop.f32.mrb[70].mxu1  ;;  %v2899_v6 = vpop.f32.mrb[82].mxu0 }
0x1a94   :  { %v2736_v9 = vadd.f32 %v5129_v36, %v2735_v5  ;;  %v2900_v10 = vadd.f32 %v5149_v62, %v2899_v6  ;;  %v5705_v12 = vpop.f32.mrb[71].mxu1  ;;  %v5737_v14 = vpop.f32.mrb[83].mxu0 }
0x1a96   :  { %v7596_v29 = vpack.c.bf16 %v2736_v9, %v2733_v7  ;;  %v7598_v15 = vpack.c.bf16 %v2900_v10, %v2897_v8 }
0x1a98   :  { %5972 = vmatprep.subr.msk.bf16.mxu0 %vm743_vm5, %v7598_v15  ;;  %v3022_v47 = vsel %vm743_vm5, %v7598_v15, 0 }
0x1a99   :  { %v2740_v16 = vpop.f32.mrb[72].mxu1  ;;  %v2904_v35 = vpop.f32.mrb[84].mxu0  ;;  %5753 = vmatpush3.bf16.msra.mxu0 %v3022_v47 }
0x1a9a   :  { %v5708_v18 = vpop.f32.mrb[73].mxu1  ;;  %v5740_v33 = vpop.f32.mrb[85].mxu0  ;;  %v7604_v11 = vadd.f32 %v5129_v36, %v2740_v16  ;;  %v7606_v54 = vadd.f32 %v5149_v62, %v2904_v35 }
0x1a9b   :  { %v2743_v13 = vpop.f32.mrb[74].mxu1  ;;  %v2907_v25 = vpop.f32.mrb[86].mxu0 }
0x1a9c   :  { %v7608_v59 = vadd.f32 %v5129_v36, %v2743_v13  ;;  %v7610_v28 = vadd.f32 %v5149_v62, %v2907_v25  ;;  %v5709_v63 = vpop.f32.mrb[75].mxu1  ;;  %v5741_v31 = vpop.f32.mrb[87].mxu0 }
0x1a9e   :  { %v2913_v32 = vpack.c.bf16 %v7608_v59, %v7604_v11  ;;  %v2919_v27 = vpack.c.bf16 %v7610_v28, %v7606_v54 }
0x1aa1   :  { %v2806_v57 = vpop.f32.mrb[76].mxu1 }
0x1aa2   :  { %v5716_v23 = vpop.f32.mrb[77].mxu1  ;;  %v2807_v48 = vadd.f32 %v5139_v37, %v2806_v57 }
0x1aa3   :  { %v2809_v45 = vpop.f32.mrb[78].mxu1 }
0x1aa4   :  { %v2810_v49 = vadd.f32 %v5139_v37, %v2809_v45  ;;  %v5717_v50 = vpop.f32.mrb[79].mxu1 }
0x1aa6   :  { %v7616_v41 = vpack.c.bf16 %v2810_v49, %v2807_v48 }
0x1aa8   :  { %3083 = vrot.lane.b32.xlu0 %v7616_v41, %s6581_s2  ;;  %5970 = vmatprep.subr.msk.bf16.mxu1 %vm640_vm4, %v7616_v41  ;;  %v2927_v40 = vsel %vm640_vm4, %v7616_v41, 0 }
0x1aa9   :  { %v2814_v46 = vpop.f32.mrb[80].mxu1  ;;  %5743 = vmatpush3.bf16.xpose.msra.mxu1 %v2927_v40 }
0x1aaa   :  { %v5720_v42 = vpop.f32.mrb[81].mxu1  ;;  %v2815_v36 = vadd.f32 %v5139_v37, %v2814_v46 }
0x1aab   :  { %v2817_v44 = vpop.f32.mrb[82].mxu1 }
0x1aac   :  { %v2818_v60 = vadd.f32 %v5139_v37, %v2817_v44  ;;  %v5721_v62 = vpop.f32.mrb[83].mxu1 }
0x1aae   :  { %v7624_v43 = vpack.c.bf16 %v2818_v60, %v2815_v36 }
0x1ab0   :  { %3085 = vrot.lane.b32.xlu1 %v7624_v43, %s6581_s2  ;;  %5971 = vmatprep.subr.msk.bf16.mxu1 %vm640_vm4, %v7624_v43  ;;  %v2930_v30 = vsel %vm640_vm4, %v7624_v43, 0 }
0x1ab1   :  { %v2822_v26 = vpop.f32.mrb[84].mxu1  ;;  %5745 = vmatpush3.bf16.xpose.msra.mxu1 %v2930_v30 }
0x1ab2   :  { %v7632_v2 = vadd.f32 %v5139_v37, %v2822_v26  ;;  %v5724_v34 = vpop.f32.mrb[85].mxu1 }
0x1ab3   :  { %v2825_v39 = vpop.f32.mrb[86].mxu1 }
0x1ab4   :  { %v7634_v51 = vadd.f32 %v5139_v37, %v2825_v39  ;;  %3077 = vrot.lane.b32.xlu1 %v7588_v61, %s6581_s2  ;;  %v5725_v52 = vpop.f32.mrb[87].mxu1 }
0x1ab6   :  { %v2916_v55 = vpack.c.bf16 %v7634_v51, %v7632_v2 }
0x1ab8   :  { %3079 = vrot.lane.b32.xlu1 %v7596_v29, %s6581_s2  ;;  %5747 = vmatmul.mubr.msk.bf16.vlgmr.msra.gmra.mrb[88].mxu1 %vm640_vm4, %v7596_v29 }
0x1b1a   :  { %v3084_v56 = vpop.permute.xlu0 %3083 }
0x1b1b   :  { %5973 = vmatprep.subr.msk.bf16.mxu1 %vm640_vm4, %v3084_v56  ;;  %v3094_v19 = vsel %vm640_vm4, %v3084_v56, 0 }
0x1b1c   :  { %5759 = vmatpush3.bf16.xpose.msra.mxu1 %v3094_v19 }
0x1b22   :  { %v3086_v24 = vpop.permute.xlu1 %3085 }
0x1b23   :  { %5974 = vmatprep.subr.msk.bf16.mxu1 %vm640_vm4, %v3086_v24  ;;  %v3097_v20 = vsel %vm640_vm4, %v3086_v24, 0 }
0x1b24   :  { %5761 = vmatpush3.bf16.xpose.msra.mxu1 %v3097_v20 }
0x1b26   :  { %v3078_v1 = vpop.permute.xlu1 %3077 }
0x1b27   :  { %5762 = vmatprep.mubr.msk.bf16.mxu1 %vm640_vm4, %v3078_v1 }
0x1b2a   :  { %v3080_v4 = vpop.permute.xlu1 %3079 }
0x1b2b   :  { %5763 = vmatmul.mubr.msk.bf16.vlgmr.msra.gmra.mrb[92].mxu1 %vm640_vm4, %v3080_v4 }
0x1b8b   :  { %v5748_v5 = vpop.f32.mrb[88].mxu1 }
0x1b8c   :  { %v2966_v6 = vpop.f32.mrb[89].mxu1  ;;  %v2986_v12 = vsel %vm701_vm6, %v5748_v5, -inf }
0x1b8d   :  { %v5749_v7 = vpop.f32.mrb[90].mxu1  ;;  %v2980_v8 = vsel %vm701_vm6, %v2966_v6, -inf }
0x1b8e   :  { %2981 = vmax.xlane.f32.xlu0 %v2980_v8  ;;  %v2969_v9 = vpop.f32.mrb[91].mxu1 }
0x1b8f   :  { %v2983_v10 = vsel %vm701_vm6, %v2969_v9, -inf }
0x1b90   :  { %2984 = vmax.xlane.f32.xlu1 %v2983_v10 }
0x1b92   :  { %2987 = vmax.xlane.f32.xlu0 %v2986_v12 }
0x1bfe   :  { %v5764_v14 = vpop.f32.mrb[92].mxu1 }
0x1bff   :  { %v3133_v47 = vpop.f32.mrb[93].mxu1  ;;  %v3153_v16 = vsel %vm701_vm6, %v5764_v14, -inf }
0x1c00   :  { %v5765_v35 = vpop.f32.mrb[94].mxu1  ;;  %3154 = vmax.xlane.f32.xlu1 %v3153_v16  ;;  %v3147_v18 = vsel %vm701_vm6, %v3133_v47, -inf }
0x1c01   :  { %3148 = vmax.xlane.f32.xlu0 %v3147_v18  ;;  %v3136_v33 = vpop.f32.mrb[95].mxu1 }
0x1c02   :  { %v3150_v13 = vsel %vm701_vm6, %v3136_v33, -inf }
0x1c05   :  { %3151 = vmax.xlane.f32.xlu0 %v3150_v13 }
0x1c1b   :  { %v2982_v25 = vpop.xlane.xlu0 %2981 }
0x1c1c   :  { %v2989_v31 = vsub.f32 %v2966_v6, %v2982_v25 }
0x1c1d   :  { %v2985_v63 = vpop.xlane.xlu1 %2984 }
0x1c1e   :  { %v2990_v37 = vsub.f32 %v2969_v9, %v2985_v63  ;;  %v2992_v48 = vmul.f32 1.442695, %v2989_v31 }
0x1c1f   :  { %v2988_v57 = vpop.xlane.xlu0 %2987 }
0x1c20   :  { %v2994_v23 = vmul.f32 1.442695, %v2990_v37  ;;  %v2991_v45 = vsub.f32 %v5748_v5, %v2988_v57 }
0x1c22   :  { %6196 = vpow2.f32 %v2994_v23  ;;  %v2996_v49 = vmul.f32 1.442695, %v2991_v45 }
0x1c24   :  { %6198 = vpow2.f32 %v2996_v49 }
0x1c25   :  { %6200 = vpow2.f32 %v2992_v48 }
0x1c2c   :  { %v6197_v50 = vpop.eup %6196 }
0x1c2d   :  { %v3001_v40 = vsel %vm701_vm6, %v6197_v50, 0.0 }
0x1c2e   :  { %v6199_v46 = vpop.eup %6198  ;;  %3002 = vadd.xlane.f32.xlu1 %v3001_v40 }
0x1c2f   :  { %v3004_v42 = vsel %vm701_vm6, %v6199_v46, 0.0  ;;  %v6201_v44 = vpop.eup %6200 }
0x1c30   :  { %3005 = vadd.xlane.f32.xlu0 %v3004_v42  ;;  %v2998_v36 = vsel %vm701_vm6, %v6201_v44, 0.0 }
0x1c34   :  { %2999 = vadd.xlane.f32.xlu0 %v2998_v36 }
0x1c8d   :  { %v3155_v60 = vpop.xlane.xlu1 %3154 }
0x1c8e   :  { %v3158_v62 = vsub.f32 %v5764_v14, %v3155_v60  ;;  %v3149_v30 = vpop.xlane.xlu0 %3148 }
0x1c8f   :  { %v3156_v26 = vsub.f32 %v3133_v47, %v3149_v30 }
0x1c90   :  { %v3163_v34 = vmul.f32 1.442695, %v3158_v62 }
0x1c91   :  { %v3159_v39 = vmul.f32 1.442695, %v3156_v26 }
0x1c92   :  { %6202 = vpow2.f32 %v3163_v34  ;;  %v3152_v52 = vpop.xlane.xlu0 %3151 }
0x1c93   :  { %v3157_v56 = vsub.f32 %v3136_v33, %v3152_v52  ;;  %6204 = vpow2.f32 %v3159_v39 }
0x1c95   :  { %v3161_v19 = vmul.f32 1.442695, %v3157_v56 }
0x1c97   :  { %6206 = vpow2.f32 %v3161_v19 }
0x1c9c   :  { %v6203_v24 = vpop.eup %6202 }
0x1c9d   :  { %v3171_v20 = vsel %vm701_vm6, %v6203_v24, 0.0  ;;  %v6205_v1 = vpop.eup %6204 }
0x1c9e   :  { %3172 = vadd.xlane.f32.xlu1 %v3171_v20  ;;  %v3165_v5 = vsel %vm701_vm6, %v6205_v1, 0.0 }
0x1ca1   :  { %v6207_v4 = vpop.eup %6206 }
0x1ca2   :  { %3166 = vadd.xlane.f32.xlu1 %v3165_v5  ;;  %v3168_v6 = vsel %vm701_vm6, %v6207_v4, 0.0 }
0x1ca3   :  { %3169 = vadd.xlane.f32.xlu0 %v3168_v6 }
0x1cb3   :  { %3186 = vrot.lane.b32.xlu1 %v7598_v15, %s6581_s2 }
0x1cb7   :  { %3265 = vrot.lane.b32.xlu1 %v7616_v41, %s6582_s0 }
0x1cb9   :  { %3184 = vrot.lane.b32.xlu0 %v7590_v3, %s6581_s2 }
0x1cbb   :  { %3267 = vrot.lane.b32.xlu1 %v7624_v43, %s6582_s0  ;;  %v3003_v7 = vpop.xlane.xlu1 %3002 }
0x1cbd   :  { %3261 = vrot.lane.b32.xlu0 %v7588_v61, %s6582_s0  ;;  %v3006_v8 = vpop.xlane.xlu0 %3005 }
0x1cbe   :  { %6208 = vrcp.f32 %v3006_v8 }
0x1cbf   :  { %3263 = vrot.lane.b32.xlu1 %v7596_v29, %s6582_s0  ;;  %6210 = vrcp.f32 %v3003_v7 }
0x1cc1   :  { %v3000_v9 = vpop.xlane.xlu0 %2999 }
0x1cc2   :  { %6212 = vrcp.f32 %v3000_v9 }
0x1cc8   :  { %v6209_v10 = vpop.eup %6208 }
0x1cc9   :  { %v6211_v12 = vpop.eup %6210  ;;  %v3012_v47 = vmul.f32 %v6209_v10, %v6199_v46 }
0x1cca   :  { %v3011_v35 = vmul.f32 %v6211_v12, %v6197_v50 }
0x1ccb   :  { %v3014_v33 = vpack.c.bf16 %v3012_v47, %v3012_v47 }
0x1ccc   :  { %v6213_v14 = vpop.eup %6212 }
0x1ccd   :  { %v3010_v16 = vmul.f32 %v6213_v14, %v6201_v44 }
0x1ccf   :  { %v3013_v18 = vpack.c.bf16 %v3011_v35, %v3010_v16 }
0x1cd1   :  { %5754 = vmatprep.mubr.msk.bf16.mxu0 %vm701_vm6, %v3013_v18 }
0x1cd2   :  { %5755 = vmatmul.mubr.msk.bf16.vlgmr.msra.gmra.mrb[88].mxu0 %vm701_vm6, %v3014_v33 }
0x1d2b   :  { %v3173_v13 = vpop.xlane.xlu1 %3172 }
0x1d2c   :  { %6214 = vrcp.f32 %v3173_v13 }
0x1d2f   :  { %v3167_v25 = vpop.xlane.xlu1 %3166 }
0x1d30   :  { %6216 = vrcp.f32 %v3167_v25  ;;  %v3170_v63 = vpop.xlane.xlu0 %3169 }
0x1d31   :  { %6218 = vrcp.f32 %v3170_v63 }
0x1d33   :  { %v3187_v31 = vpop.permute.xlu1 %3186 }
0x1d34   :  { %v3185_v37 = vpop.permute.xlu0 %3184  ;;  %v3196_v23 = vsel %vm743_vm5, %v3187_v31, 0 }
0x1d35   :  { %5766 = vmatprep.subr.bf16.mxu0 %v3185_v37 }
0x1d36   :  { %5767 = vmatpush3.bf16.msra.mxu0 %v3185_v37  ;;  %v6215_v57 = vpop.eup %6214 }
0x1d37   :  { %5975 = vmatprep.subr.msk.bf16.mxu0 %vm743_vm5, %v3187_v31  ;;  %v3266_v48 = vpop.permute.xlu1 %3265  ;;  %v3179_v40 = vmul.f32 %v6215_v57, %v6203_v24 }
0x1d38   :  { %v3262_v36 = vpop.permute.xlu0 %3261  ;;  %v3276_v60 = vsel %vm640_vm4, %v3266_v48, 0 }
0x1d39   :  { %v3181_v44 = vpack.c.bf16 %v3179_v40, %v3179_v40 }
0x1d3a   :  { %v6217_v45 = vpop.eup %6216  ;;  %5769 = vmatpush3.bf16.msra.mxu0 %v3196_v23 }
0x1d3b   :  { %v6219_v49 = vpop.eup %6218  ;;  %5976 = vmatprep.subr.msk.bf16.mxu0 %vm640_vm4, %v3266_v48  ;;  %v3177_v50 = vmul.f32 %v6217_v45, %v6205_v1  ;;  %v3268_v62 = vpop.permute.xlu1 %3267 }
0x1d3c   :  { %v3178_v46 = vmul.f32 %v6219_v49, %v6207_v4  ;;  %v3279_v30 = vsel %vm640_vm4, %v3268_v62, 0 }
0x1d3e   :  { %v3180_v42 = vpack.c.bf16 %v3178_v46, %v3177_v50 }
0x1d3f   :  { %v3264_v26 = vpop.permute.xlu1 %3263 }
0x1d40   :  { %5770 = vmatprep.mubr.msk.bf16.mxu0 %vm701_vm6, %v3180_v42 }
0x1d41   :  { %5771 = vmatmul.mubr.msk.bf16.vlgmr.msra.gmra.mrb[92].mxu0 %vm701_vm6, %v3181_v44 }
0x1d42   :  { %5778 = vmatprep.mubr.msk.bf16.mxu0 %vm640_vm4, %v3262_v36 }
0x1d43   :  { %5775 = vmatpush3.bf16.xpose.msra.mxu0 %v3276_v60 }
0x1d44   :  { %5977 = vmatprep.subr.msk.bf16.mxu0 %vm640_vm4, %v3268_v62 }
0x1d4b   :  { %5777 = vmatpush3.bf16.xpose.msra.mxu0 %v3279_v30 }
0x1d52   :  { %5779 = vmatmul.mubr.msk.bf16.vlgmr.msra.gmra.mrb[96].mxu0 %vm640_vm4, %v3264_v26 }
0x1da5   :  { %v5756_v34 = vpop.f32.mrb[88].mxu0 }
0x1da6   :  { %3074 = vst.msk [vmem:[#allocation3 + $0x10] sm:$0xff] %vm640_vm4, %v5756_v34  ;;  %v3058_v39 = vpop.f32.mrb[89].mxu0 }
0x1da7   :  { %3072 = vst.msk [vmem:[#allocation3] sm:$0xff] %vm640_vm4, %v3058_v39  ;;  %v5757_v52 = vpop.f32.mrb[90].mxu0 }
0x1da8   :  { %v3061_v56 = vpop.f32.mrb[91].mxu0 }
0x1da9   :  { %3073 = vst.msk [vmem:[#allocation3 + $0x8] sm:$0xff] %vm640_vm4, %v3061_v56 }
0x1e14   :  { %v7689_v19 = vpop.f32.mrb[92].mxu0 }
0x1e15   :  { %v7691_v24 = vpop.f32.mrb[93].mxu0 }
0x1e16   :  { %v5773_v20 = vpop.f32.mrb[94].mxu0 }
0x1e17   :  { %v7693_v1 = vpop.f32.mrb[95].mxu0  ;;  %v7724_v20 = vrot.slane %v2919_v27, 4 }
0x1e19   :  { %v3736_v54 = vsel %vm743_vm5, %v7724_v20, 0 }
0x1e25   :  { %v5780_v4 = vpop.f32.mrb[96].mxu0 }
0x1e26   :  { %v3315_v5 = vpop.f32.mrb[97].mxu0  ;;  %v3335_v10 = vsel %vm701_vm6, %v5780_v4, -inf }
0x1e27   :  { %v5781_v6 = vpop.f32.mrb[98].mxu0  ;;  %v3329_v7 = vsel %vm701_vm6, %v3315_v5, -inf }
0x1e28   :  { %3330 = vmax.xlane.f32.xlu0 %v3329_v7  ;;  %v3318_v8 = vpop.f32.mrb[99].mxu0 }
0x1e29   :  { %v3332_v9 = vsel %vm701_vm6, %v3318_v8, -inf }
0x1e2a   :  { %3333 = vmax.xlane.f32.xlu1 %v3332_v9 }
0x1e2c   :  { %3336 = vmax.xlane.f32.xlu0 %v3335_v10 }
0x1eb5   :  { %v3331_v12 = vpop.xlane.xlu0 %3330 }
0x1eb6   :  { %v3338_v14 = vsub.f32 %v3315_v5, %v3331_v12 }
0x1eb7   :  { %v3334_v47 = vpop.xlane.xlu1 %3333 }
0x1eb8   :  { %v3341_v16 = vmul.f32 1.442695, %v3338_v14  ;;  %v3339_v35 = vsub.f32 %v3318_v8, %v3334_v47 }
0x1eb9   :  { %v3337_v18 = vpop.xlane.xlu0 %3336 }
0x1eba   :  { %6220 = vpow2.f32 %v3341_v16  ;;  %v3343_v33 = vmul.f32 1.442695, %v3339_v35  ;;  %v3340_v13 = vsub.f32 %v5780_v4, %v3337_v18  ;;  %v3725_v4 = vrot.slane %v7598_v15, 4 }
0x1ebc   :  { %6222 = vpow2.f32 %v3343_v33  ;;  %v3345_v25 = vmul.f32 1.442695, %v3340_v13  ;;  %v7730_v6 = vsel %vm743_vm5, %v3725_v4, %v7724_v20  ;;  %v3622_v4 = vrot.slane %v7596_v29, 4 }
0x1ebe   :  { %6224 = vpow2.f32 %v3345_v25 }
0x1ec4   :  { %v6221_v63 = vpop.eup %6220 }
0x1ec5   :  { %v3347_v31 = vsel %vm701_vm6, %v6221_v63, 0.0 }
0x1ec6   :  { %v6223_v37 = vpop.eup %6222  ;;  %3348 = vadd.xlane.f32.xlu0 %v3347_v31 }
0x1ec7   :  { %v3350_v45 = vsel %vm701_vm6, %v6223_v37, 0.0 }
0x1ec8   :  { %v6225_v57 = vpop.eup %6224 }
0x1ec9   :  { %v3353_v23 = vsel %vm701_vm6, %v6225_v57, 0.0 }
0x1eca   :  { %3354 = vadd.xlane.f32.xlu1 %v3353_v23  ;;  %3351 = vadd.xlane.f32.xlu0 %v3350_v45 }
0x1edb   :  { %3366 = vrot.lane.b32.xlu1 %v7598_v15, %s6582_s0 }
0x1edf   :  { %3445 = vrot.lane.b32.xlu1 %v7616_v41, %s6583_s9 }
0x1ee0   :  { %3364 = vrot.lane.b32.xlu0 %v7590_v3, %s6582_s0 }
0x1ee3   :  { %3447 = vrot.lane.b32.xlu1 %v7624_v43, %s6583_s9 }
0x1ee4   :  { %3441 = vrot.lane.b32.xlu0 %v7588_v61, %s6583_s9 }
0x1ee7   :  { %3443 = vrot.lane.b32.xlu1 %v7596_v29, %s6583_s9 }
0x1f53   :  { %v3349_v48 = vpop.xlane.xlu0 %3348 }
0x1f54   :  { %6226 = vrcp.f32 %v3349_v48 }
0x1f57   :  { %v3352_v49 = vpop.xlane.xlu0 %3351  ;;  %v3355_v50 = vpop.xlane.xlu1 %3354 }
0x1f58   :  { %6228 = vrcp.f32 %v3352_v49 }
0x1f59   :  { %6230 = vrcp.f32 %v3355_v50 }
0x1f5b   :  { %v3365_v40 = vpop.permute.xlu0 %3364  ;;  %v3367_v41 = vpop.permute.xlu1 %3366 }
0x1f5c   :  { %5782 = vmatprep.subr.bf16.mxu1 %v3365_v40  ;;  %v3376_v42 = vsel %vm743_vm5, %v3367_v41, 0 }
0x1f5d   :  { %5783 = vmatpush3.bf16.msra.mxu1 %v3365_v40 }
0x1f5e   :  { %5978 = vmatprep.subr.msk.bf16.mxu1 %vm743_vm5, %v3367_v41  ;;  %v6227_v46 = vpop.eup %6226 }
0x1f5f   :  { %v3446_v44 = vpop.permute.xlu1 %3445  ;;  %v3359_v60 = vmul.f32 %v6227_v46, %v6221_v63  ;;  %v3442_v39 = vpop.permute.xlu0 %3441 }
0x1f60   :  { %v3456_v52 = vsel %vm640_vm4, %v3446_v44, 0 }
0x1f61   :  { %5785 = vmatpush3.bf16.msra.mxu1 %v3376_v42 }
0x1f62   :  { %v6229_v61 = vpop.eup %6228  ;;  %5979 = vmatprep.subr.msk.bf16.mxu1 %vm640_vm4, %v3446_v44 }
0x1f63   :  { %v6231_v36 = vpop.eup %6230  ;;  %v3360_v62 = vmul.f32 %v6229_v61, %v6223_v37  ;;  %v3448_v56 = vpop.permute.xlu1 %3447 }
0x1f64   :  { %v3361_v30 = vmul.f32 %v6231_v36, %v6225_v57  ;;  %v3459_v5 = vsel %vm640_vm4, %v3448_v56, 0 }
0x1f65   :  { %v3362_v26 = vpack.c.bf16 %v3360_v62, %v3359_v60  ;;  %v7758_v60 = vrot.slane %v2916_v55, 4 }
0x1f66   :  { %v3363_v34 = vpack.c.bf16 %v3361_v30, %v3361_v30 }
0x1f67   :  { %5786 = vmatprep.mubr.msk.bf16.mxu1 %vm701_vm6, %v3362_v26  ;;  %v3444_v7 = vpop.permute.xlu1 %3443  ;;  %v3639_v29 = vsel %vm640_vm4, %v7758_v60, 0 }
0x1f68   :  { %5787 = vmatmul.mubr.msk.bf16.vlgmr.msra.gmra.mrb[96].mxu1 %vm701_vm6, %v3363_v34 }
0x1f69   :  { %5794 = vmatprep.mubr.msk.bf16.mxu1 %vm640_vm4, %v3442_v39  ;;  %v7772_v39 = vrot.slane %v2913_v32, 4 }
0x1f6a   :  { %5791 = vmatpush3.bf16.xpose.msra.mxu1 %v3456_v52 }
0x1f6b   :  { %5980 = vmatprep.subr.msk.bf16.mxu1 %vm640_vm4, %v3448_v56 }
0x1f72   :  { %5793 = vmatpush3.bf16.xpose.msra.mxu1 %v3459_v5  ;;  %v7779_v5 = vsel %vm743_vm5, %v3622_v4, %v7772_v39 }
0x1f73   :  { %5814 = vmatprep.subr.bf16.mxu1 %v7730_v6 }
0x1f79   :  { %5795 = vmatmul.mubr.msk.bf16.vlgmr.msra.gmra.mrb[100].mxu1 %vm640_vm4, %v3444_v7 }
0x1f7a   :  { %5815 = vmatpush3.bf16.msra.mxu1 %v7730_v6 }
0x1f7b   :  { %5984 = vmatprep.subr.msk.bf16.mxu1 %vm743_vm5, %v7724_v20 }
0x1f7e   :  { %5817 = vmatpush3.bf16.msra.mxu1 %v3736_v54 }
0x203b   :  { %v7739_v28 = vpop.f32.mrb[96].mxu1 }
0x203c   :  { %v7741_v27 = vpop.f32.mrb[97].mxu1 }
0x203d   :  { %v5789_v8 = vpop.f32.mrb[98].mxu1 }
0x203e   :  { %v7743_v9 = vpop.f32.mrb[99].mxu1 }
0x204c   :  { %v5796_v10 = vpop.f32.mrb[100].mxu1 }
0x204d   :  { %v3495_v12 = vpop.f32.mrb[101].mxu1  ;;  %v3515_v18 = vsel %vm701_vm6, %v5796_v10, -inf }
0x204e   :  { %v5797_v14 = vpop.f32.mrb[102].mxu1  ;;  %v3509_v47 = vsel %vm701_vm6, %v3495_v12, -inf }
0x204f   :  { %3510 = vmax.xlane.f32.xlu0 %v3509_v47  ;;  %v3498_v16 = vpop.f32.mrb[103].mxu1 }
0x2050   :  { %v3512_v35 = vsel %vm701_vm6, %v3498_v16, -inf }
0x2051   :  { %3513 = vmax.xlane.f32.xlu1 %v3512_v35 }
0x2053   :  { %3516 = vmax.xlane.f32.xlu0 %v3515_v18 }
0x20dc   :  { %v3511_v33 = vpop.xlane.xlu0 %3510 }
0x20dd   :  { %v3518_v13 = vsub.f32 %v3495_v12, %v3511_v33 }
0x20de   :  { %v3514_v25 = vpop.xlane.xlu1 %3513 }
0x20df   :  { %v3521_v63 = vmul.f32 1.442695, %v3518_v13  ;;  %v3519_v31 = vsub.f32 %v3498_v16, %v3514_v25 }
0x20e0   :  { %v3517_v37 = vpop.xlane.xlu0 %3516 }
0x20e1   :  { %6232 = vpow2.f32 %v3521_v63  ;;  %v3523_v57 = vmul.f32 1.442695, %v3519_v31  ;;  %v3520_v23 = vsub.f32 %v5796_v10, %v3517_v37 }
0x20e3   :  { %6234 = vpow2.f32 %v3523_v57  ;;  %v3525_v45 = vmul.f32 1.442695, %v3520_v23 }
0x20e5   :  { %6236 = vpow2.f32 %v3525_v45 }
0x20eb   :  { %v6233_v48 = vpop.eup %6232 }
0x20ec   :  { %v3527_v49 = vsel %vm701_vm6, %v6233_v48, 0.0 }
0x20ed   :  { %v6235_v50 = vpop.eup %6234  ;;  %3528 = vadd.xlane.f32.xlu0 %v3527_v49 }
0x20ee   :  { %v3530_v46 = vsel %vm701_vm6, %v6235_v50, 0.0 }
0x20ef   :  { %v6237_v40 = vpop.eup %6236 }
0x20f0   :  { %v3533_v41 = vsel %vm701_vm6, %v6237_v40, 0.0 }
0x20f1   :  { %3534 = vadd.xlane.f32.xlu1 %v3533_v41  ;;  %3531 = vadd.xlane.f32.xlu0 %v3530_v46 }
0x2102   :  { %3546 = vrot.lane.b32.xlu1 %v7598_v15, %s6583_s9  ;;  %v3626_v15 = vrot.slane %v7624_v43, 4 }
0x2104   :  { %v7765_v26 = vsel %vm743_vm5, %v3626_v15, %v7758_v60 }
0x2105   :  { %v3636_v11 = vsel %vm640_vm4, %v7765_v26, 0 }
0x2107   :  { %3544 = vrot.lane.b32.xlu0 %v7590_v3, %s6583_s9 }
0x217a   :  { %v3529_v42 = vpop.xlane.xlu0 %3528 }
0x217b   :  { %6238 = vrcp.f32 %v3529_v42 }
0x217e   :  { %v3532_v44 = vpop.xlane.xlu0 %3531  ;;  %v3535_v61 = vpop.xlane.xlu1 %3534 }
0x217f   :  { %6240 = vrcp.f32 %v3532_v44 }
0x2180   :  { %6242 = vrcp.f32 %v3535_v61 }
0x2182   :  { %v3545_v36 = vpop.permute.xlu0 %3544  ;;  %v3547_v62 = vpop.permute.xlu1 %3546 }
0x2183   :  { %5798 = vmatprep.subr.bf16.mxu0 %v3545_v36  ;;  %v3556_v30 = vsel %vm743_vm5, %v3547_v62, 0 }
0x2184   :  { %5799 = vmatpush3.bf16.msra.mxu0 %v3545_v36 }
0x2185   :  { %5981 = vmatprep.subr.msk.bf16.mxu0 %vm743_vm5, %v3547_v62  ;;  %v6239_v3 = vpop.eup %6238 }
0x2186   :  { %v3539_v51 = vmul.f32 %v6239_v3, %v6233_v48 }
0x2188   :  { %5801 = vmatpush3.bf16.msra.mxu0 %v3556_v30 }
0x2189   :  { %v6241_v34 = vpop.eup %6240  ;;  %5982 = vmatprep.subr.msk.bf16.mxu0 %vm640_vm4, %v7765_v26 }
0x218a   :  { %v6243_v2 = vpop.eup %6242  ;;  %v3540_v55 = vmul.f32 %v6241_v34, %v6235_v50 }
0x218b   :  { %v3541_v43 = vmul.f32 %v6243_v2, %v6237_v40 }
0x218c   :  { %v3542_v52 = vpack.c.bf16 %v3540_v55, %v3539_v51 }
0x218d   :  { %v3543_v56 = vpack.c.bf16 %v3541_v43, %v3541_v43 }
0x218e   :  { %5802 = vmatprep.mubr.msk.bf16.mxu0 %vm701_vm6, %v3542_v52 }
0x218f   :  { %5803 = vmatmul.mubr.msk.bf16.vlgmr.msra.gmra.mrb[100].mxu0 %vm701_vm6, %v3543_v56 }
0x2190   :  { %5810 = vmatprep.mubr.msk.bf16.mxu0 %vm640_vm4, %v7779_v5 }
0x2191   :  { %5807 = vmatpush3.bf16.xpose.msra.mxu0 %v3636_v11 }
0x2192   :  { %5983 = vmatprep.subr.msk.bf16.mxu0 %vm640_vm4, %v7758_v60 }
0x2199   :  { %5809 = vmatpush3.bf16.xpose.msra.mxu0 %v3639_v29 }
0x21a0   :  { %5811 = vmatmul.mubr.msk.bf16.vlgmr.msra.gmra.mrb[104].mxu0 %vm640_vm4, %v7772_v39 }
0x2262   :  { %v7791_v59 = vpop.f32.mrb[100].mxu0 }
0x2263   :  { %v7793_v32 = vpop.f32.mrb[101].mxu0 }
0x2264   :  { %v5805_v7 = vpop.f32.mrb[102].mxu0 }
0x2265   :  { %v7795_v54 = vpop.f32.mrb[103].mxu0 }
0x2273   :  { %v5812_v8 = vpop.f32.mrb[104].mxu0 }
0x2274   :  { %v3675_v10 = vpop.f32.mrb[105].mxu0  ;;  %v3695_v35 = vsel %vm701_vm6, %v5812_v8, -inf }
0x2275   :  { %v5813_v12 = vpop.f32.mrb[106].mxu0  ;;  %v3689_v14 = vsel %vm701_vm6, %v3675_v10, -inf }
0x2276   :  { %3690 = vmax.xlane.f32.xlu1 %v3689_v14  ;;  %v3678_v47 = vpop.f32.mrb[107].mxu0 }
0x2277   :  { %v3692_v16 = vsel %vm701_vm6, %v3678_v47, -inf }
0x2278   :  { %3693 = vmax.xlane.f32.xlu0 %v3692_v16 }
0x227c   :  { %3696 = vmax.xlane.f32.xlu0 %v3695_v35 }
0x2303   :  { %v3691_v18 = vpop.xlane.xlu1 %3690 }
0x2304   :  { %v3698_v33 = vsub.f32 %v3675_v10, %v3691_v18 }
0x2305   :  { %v3694_v13 = vpop.xlane.xlu0 %3693 }
0x2306   :  { %v3701_v25 = vmul.f32 1.442695, %v3698_v33  ;;  %v3699_v63 = vsub.f32 %v3678_v47, %v3694_v13 }
0x2308   :  { %6244 = vpow2.f32 %v3701_v25  ;;  %v3703_v31 = vmul.f32 1.442695, %v3699_v63 }
0x2309   :  { %v3697_v37 = vpop.xlane.xlu0 %3696 }
0x230a   :  { %6246 = vpow2.f32 %v3703_v31  ;;  %v3700_v57 = vsub.f32 %v5812_v8, %v3697_v37 }
0x230c   :  { %v3705_v23 = vmul.f32 1.442695, %v3700_v57 }
0x230e   :  { %6248 = vpow2.f32 %v3705_v23 }
0x2312   :  { %v6245_v45 = vpop.eup %6244 }
0x2313   :  { %v3707_v48 = vsel %vm701_vm6, %v6245_v45, 0.0 }
0x2314   :  { %v6247_v49 = vpop.eup %6246  ;;  %3708 = vadd.xlane.f32.xlu1 %v3707_v48 }
0x2315   :  { %v3710_v50 = vsel %vm701_vm6, %v6247_v49, 0.0 }
0x2316   :  { %3711 = vadd.xlane.f32.xlu0 %v3710_v50 }
0x2318   :  { %v6249_v40 = vpop.eup %6248 }
0x2319   :  { %v3713_v41 = vsel %vm701_vm6, %v6249_v40, 0.0 }
0x231a   :  { %3714 = vadd.xlane.f32.xlu1 %v3713_v41 }
0x232b   :  { %3795 = vrot.lane.b32.xlu1 %v7758_v60, %s6581_s2 }
0x232c   :  { %3793 = vrot.lane.b32.xlu0 %v7765_v26, %s6581_s2 }
0x232f   :  { %3789 = vrot.lane.b32.xlu1 %v7779_v5, %s6581_s2 }
0x2333   :  { %3791 = vrot.lane.b32.xlu1 %v7772_v39, %s6581_s2 }
0x23a1   :  { %v3709_v46 = vpop.xlane.xlu1 %3708 }
0x23a2   :  { %6250 = vrcp.f32 %v3709_v46 }
0x23a3   :  { %v3712_v42 = vpop.xlane.xlu0 %3711 }
0x23a4   :  { %6252 = vrcp.f32 %v3712_v42 }
0x23a7   :  { %v3715_v44 = vpop.xlane.xlu1 %3714  ;;  %v3794_v61 = vpop.permute.xlu0 %3793 }
0x23a8   :  { %6254 = vrcp.f32 %v3715_v44  ;;  %5985 = vmatprep.subr.msk.bf16.mxu1 %vm640_vm4, %v3794_v61  ;;  %v3804_v43 = vsel %vm640_vm4, %v3794_v61, 0 }
0x23ab   :  { %v3796_v30 = vpop.permute.xlu1 %3795 }
0x23ac   :  { %v6251_v36 = vpop.eup %6250  ;;  %v3807_v56 = vsel %vm640_vm4, %v3796_v30, 0 }
0x23ad   :  { %v3719_v15 = vmul.f32 %v6251_v36, %v6245_v45 }
0x23ae   :  { %v6253_v62 = vpop.eup %6252 }
0x23af   :  { %v3720_v3 = vmul.f32 %v6253_v62, %v6247_v49  ;;  %v3790_v52 = vpop.permute.xlu1 %3789 }
0x23b1   :  { %v3722_v34 = vpack.c.bf16 %v3720_v3, %v3719_v15 }
0x23b2   :  { %v6255_v2 = vpop.eup %6254 }
0x23b3   :  { %v3721_v51 = vmul.f32 %v6255_v2, %v6249_v40  ;;  %5818 = vmatprep.mubr.msk.bf16.mxu1 %vm701_vm6, %v3722_v34  ;;  %v3792_v4 = vpop.permute.xlu1 %3791 }
0x23b5   :  { %v3723_v55 = vpack.c.bf16 %v3721_v51, %v3721_v51 }
0x23b7   :  { %5819 = vmatmul.mubr.msk.bf16.vlgmr.msra.gmra.mrb[104].mxu1 %vm701_vm6, %v3723_v55 }
0x23b8   :  { %5823 = vmatpush3.bf16.xpose.msra.mxu1 %v3804_v43  ;;  %5826 = vmatprep.mubr.msk.bf16.mxu1 %vm640_vm4, %v3790_v52 }
0x23b9   :  { %5986 = vmatprep.subr.msk.bf16.mxu1 %vm640_vm4, %v3796_v30 }
0x23c0   :  { %5825 = vmatpush3.bf16.xpose.msra.mxu1 %v3807_v56 }
0x23c7   :  { %5827 = vmatmul.mubr.msk.bf16.vlgmr.msra.gmra.mrb[108].mxu1 %vm640_vm4, %v3792_v4 }
0x248a   :  { %v5820_v11 = vpop.f32.mrb[104].mxu1 }
0x248b   :  { %3788 = vst.msk [vmem:[#allocation3 + $0x28] sm:$0xff] %vm640_vm4, %v5820_v11  ;;  %v3772_v29 = vpop.f32.mrb[105].mxu1 }
0x248c   :  { %3786 = vst.msk [vmem:[#allocation3 + $0x18] sm:$0xff] %vm640_vm4, %v3772_v29  ;;  %v5821_v7 = vpop.f32.mrb[106].mxu1 }
0x248d   :  { %v3775_v8 = vpop.f32.mrb[107].mxu1 }
0x248e   :  { %3787 = vst.msk [vmem:[#allocation3 + $0x20] sm:$0xff] %vm640_vm4, %v3775_v8 }
0x249a   :  { %v5828_v10 = vpop.f32.mrb[108].mxu1 }
0x249b   :  { %v3843_v12 = vpop.f32.mrb[109].mxu1  ;;  %v3863_v18 = vsel %vm701_vm6, %v5828_v10, -inf }
0x249c   :  { %v5829_v14 = vpop.f32.mrb[110].mxu1  ;;  %v3857_v47 = vsel %vm701_vm6, %v3843_v12, -inf }
0x249d   :  { %3858 = vmax.xlane.f32.xlu0 %v3857_v47  ;;  %v3846_v16 = vpop.f32.mrb[111].mxu1 }
0x249e   :  { %v3860_v35 = vsel %vm701_vm6, %v3846_v16, -inf }
0x249f   :  { %3861 = vmax.xlane.f32.xlu1 %v3860_v35 }
0x24a1   :  { %3864 = vmax.xlane.f32.xlu0 %v3863_v18 }
0x252a   :  { %v3859_v33 = vpop.xlane.xlu0 %3858 }
0x252b   :  { %v3866_v13 = vsub.f32 %v3843_v12, %v3859_v33 }
0x252c   :  { %v3862_v25 = vpop.xlane.xlu1 %3861 }
0x252d   :  { %v3869_v63 = vmul.f32 1.442695, %v3866_v13  ;;  %v3867_v31 = vsub.f32 %v3846_v16, %v3862_v25 }
0x252e   :  { %v3865_v37 = vpop.xlane.xlu0 %3864 }
0x252f   :  { %6256 = vpow2.f32 %v3869_v63  ;;  %v3871_v57 = vmul.f32 1.442695, %v3867_v31  ;;  %v3868_v23 = vsub.f32 %v5828_v10, %v3865_v37 }
0x2531   :  { %6258 = vpow2.f32 %v3871_v57  ;;  %v3873_v45 = vmul.f32 1.442695, %v3868_v23 }
0x2533   :  { %6260 = vpow2.f32 %v3873_v45 }
0x2539   :  { %v6257_v48 = vpop.eup %6256 }
0x253a   :  { %v3875_v49 = vsel %vm701_vm6, %v6257_v48, 0.0 }
0x253b   :  { %v6259_v50 = vpop.eup %6258  ;;  %3876 = vadd.xlane.f32.xlu0 %v3875_v49 }
0x253c   :  { %v3878_v46 = vsel %vm701_vm6, %v6259_v50, 0.0 }
0x253d   :  { %v6261_v40 = vpop.eup %6260 }
0x253e   :  { %v3881_v41 = vsel %vm701_vm6, %v6261_v40, 0.0 }
0x253f   :  { %3882 = vadd.xlane.f32.xlu1 %v3881_v41  ;;  %3879 = vadd.xlane.f32.xlu0 %v3878_v46 }
0x2550   :  { %3894 = vrot.lane.b32.xlu1 %v7724_v20, %s6581_s2 }
0x2554   :  { %3973 = vrot.lane.b32.xlu1 %v7765_v26, %s6582_s0 }
0x2555   :  { %3892 = vrot.lane.b32.xlu0 %v7730_v6, %s6581_s2 }
0x2558   :  { %3975 = vrot.lane.b32.xlu1 %v7758_v60, %s6582_s0 }
0x2559   :  { %3969 = vrot.lane.b32.xlu0 %v7779_v5, %s6582_s0 }
0x255c   :  { %3971 = vrot.lane.b32.xlu1 %v7772_v39, %s6582_s0 }
0x25c8   :  { %v3877_v42 = vpop.xlane.xlu0 %3876 }
0x25c9   :  { %6262 = vrcp.f32 %v3877_v42 }
0x25cc   :  { %v3880_v44 = vpop.xlane.xlu0 %3879  ;;  %v3883_v61 = vpop.xlane.xlu1 %3882 }
0x25cd   :  { %6264 = vrcp.f32 %v3880_v44 }
0x25ce   :  { %6266 = vrcp.f32 %v3883_v61 }
0x25d0   :  { %v3893_v36 = vpop.permute.xlu0 %3892  ;;  %v3895_v62 = vpop.permute.xlu1 %3894 }
0x25d1   :  { %5830 = vmatprep.subr.bf16.mxu0 %v3893_v36  ;;  %v3904_v3 = vsel %vm743_vm5, %v3895_v62, 0 }
0x25d2   :  { %5831 = vmatpush3.bf16.msra.mxu0 %v3893_v36 }
0x25d3   :  { %5987 = vmatprep.subr.msk.bf16.mxu0 %vm743_vm5, %v3895_v62  ;;  %v6263_v15 = vpop.eup %6262 }
0x25d4   :  { %v3974_v30 = vpop.permute.xlu1 %3973  ;;  %v3887_v51 = vmul.f32 %v6263_v15, %v6257_v48  ;;  %v3970_v4 = vpop.permute.xlu0 %3969 }
0x25d5   :  { %v3984_v11 = vsel %vm640_vm4, %v3974_v30, 0 }
0x25d6   :  { %5833 = vmatpush3.bf16.msra.mxu0 %v3904_v3 }
0x25d7   :  { %v6265_v34 = vpop.eup %6264  ;;  %5988 = vmatprep.subr.msk.bf16.mxu0 %vm640_vm4, %v3974_v30 }
0x25d8   :  { %v6267_v2 = vpop.eup %6266  ;;  %v3888_v55 = vmul.f32 %v6265_v34, %v6259_v50  ;;  %v3976_v29 = vpop.permute.xlu1 %3975 }
0x25d9   :  { %v3889_v43 = vmul.f32 %v6267_v2, %v6261_v40  ;;  %v3987_v7 = vsel %vm640_vm4, %v3976_v29, 0 }
0x25da   :  { %v3890_v52 = vpack.c.bf16 %v3888_v55, %v3887_v51 }
0x25db   :  { %v3891_v56 = vpack.c.bf16 %v3889_v43, %v3889_v43 }
0x25dc   :  { %5834 = vmatprep.mubr.msk.bf16.mxu0 %vm701_vm6, %v3890_v52  ;;  %v3972_v8 = vpop.permute.xlu1 %3971 }
0x25dd   :  { %5835 = vmatmul.mubr.msk.bf16.vlgmr.msra.gmra.mrb[108].mxu0 %vm701_vm6, %v3891_v56 }
0x25de   :  { %5842 = vmatprep.mubr.msk.bf16.mxu0 %vm640_vm4, %v3970_v4 }
0x25df   :  { %5839 = vmatpush3.bf16.xpose.msra.mxu0 %v3984_v11 }
0x25e0   :  { %5989 = vmatprep.subr.msk.bf16.mxu0 %vm640_vm4, %v3976_v29 }
0x25e7   :  { %5841 = vmatpush3.bf16.xpose.msra.mxu0 %v3987_v7 }
0x25ee   :  { %5843 = vmatmul.mubr.msk.bf16.vlgmr.msra.gmra.mrb[112].mxu0 %vm640_vm4, %v3972_v8 }
0x26b0   :  { %v7850_v10 = vpop.f32.mrb[108].mxu0 }
0x26b1   :  { %v7852_v12 = vpop.f32.mrb[109].mxu0 }
0x26b2   :  { %v5837_v14 = vpop.f32.mrb[110].mxu0 }
0x26b3   :  { %v7854_v47 = vpop.f32.mrb[111].mxu0 }
0x26c1   :  { %v5844_v16 = vpop.f32.mrb[112].mxu0 }
0x26c2   :  { %v4023_v35 = vpop.f32.mrb[113].mxu0  ;;  %v4043_v63 = vsel %vm701_vm6, %v5844_v16, -inf }
0x26c3   :  { %v5845_v18 = vpop.f32.mrb[114].mxu0  ;;  %v4037_v33 = vsel %vm701_vm6, %v4023_v35, -inf }
0x26c4   :  { %4038 = vmax.xlane.f32.xlu0 %v4037_v33  ;;  %v4026_v13 = vpop.f32.mrb[115].mxu0 }
0x26c5   :  { %v4040_v25 = vsel %vm701_vm6, %v4026_v13, -inf }
0x26c6   :  { %4041 = vmax.xlane.f32.xlu1 %v4040_v25 }
0x26c8   :  { %4044 = vmax.xlane.f32.xlu0 %v4043_v63 }
0x2751   :  { %v4039_v31 = vpop.xlane.xlu0 %4038 }
0x2752   :  { %v4046_v37 = vsub.f32 %v4023_v35, %v4039_v31 }
0x2753   :  { %v4042_v57 = vpop.xlane.xlu1 %4041 }
0x2754   :  { %v4049_v23 = vmul.f32 1.442695, %v4046_v37  ;;  %v4047_v45 = vsub.f32 %v4026_v13, %v4042_v57 }
0x2755   :  { %v4045_v48 = vpop.xlane.xlu0 %4044 }
0x2756   :  { %6268 = vpow2.f32 %v4049_v23  ;;  %v4051_v49 = vmul.f32 1.442695, %v4047_v45  ;;  %v4048_v50 = vsub.f32 %v5844_v16, %v4045_v48 }
0x2758   :  { %6270 = vpow2.f32 %v4051_v49  ;;  %v4053_v40 = vmul.f32 1.442695, %v4048_v50 }
0x275a   :  { %6272 = vpow2.f32 %v4053_v40 }
0x2760   :  { %v6269_v41 = vpop.eup %6268 }
0x2761   :  { %v4055_v46 = vsel %vm701_vm6, %v6269_v41, 0.0 }
0x2762   :  { %v6271_v42 = vpop.eup %6270  ;;  %4056 = vadd.xlane.f32.xlu0 %v4055_v46 }
0x2763   :  { %v4058_v36 = vsel %vm701_vm6, %v6271_v42, 0.0 }
0x2764   :  { %v6273_v44 = vpop.eup %6272 }
0x2765   :  { %v4061_v61 = vsel %vm701_vm6, %v6273_v44, 0.0 }
0x2766   :  { %4062 = vadd.xlane.f32.xlu1 %v4061_v61  ;;  %4059 = vadd.xlane.f32.xlu0 %v4058_v36 }
0x2777   :  { %4074 = vrot.lane.b32.xlu1 %v7724_v20, %s6582_s0 }
0x277b   :  { %4153 = vrot.lane.b32.xlu1 %v7765_v26, %s6583_s9 }
0x277c   :  { %4072 = vrot.lane.b32.xlu0 %v7730_v6, %s6582_s0 }
0x277f   :  { %4155 = vrot.lane.b32.xlu1 %v7758_v60, %s6583_s9 }
0x2780   :  { %4149 = vrot.lane.b32.xlu0 %v7779_v5, %s6583_s9 }
0x2783   :  { %4151 = vrot.lane.b32.xlu1 %v7772_v39, %s6583_s9 }
0x27ef   :  { %v4057_v62 = vpop.xlane.xlu0 %4056 }
0x27f0   :  { %6274 = vrcp.f32 %v4057_v62 }
0x27f3   :  { %v4060_v15 = vpop.xlane.xlu0 %4059  ;;  %v4063_v3 = vpop.xlane.xlu1 %4062 }
0x27f4   :  { %6276 = vrcp.f32 %v4060_v15 }
0x27f5   :  { %6278 = vrcp.f32 %v4063_v3 }
0x27f7   :  { %v4073_v30 = vpop.permute.xlu0 %4072  ;;  %v4075_v26 = vpop.permute.xlu1 %4074 }
0x27f8   :  { %5846 = vmatprep.subr.bf16.mxu1 %v4073_v30  ;;  %v4084_v60 = vsel %vm743_vm5, %v4075_v26, 0 }
0x27f9   :  { %5847 = vmatpush3.bf16.msra.mxu1 %v4073_v30 }
0x27fa   :  { %5990 = vmatprep.subr.msk.bf16.mxu1 %vm743_vm5, %v4075_v26  ;;  %v6275_v34 = vpop.eup %6274 }
0x27fb   :  { %v4154_v2 = vpop.permute.xlu1 %4153  ;;  %v4067_v51 = vmul.f32 %v6275_v34, %v6269_v41  ;;  %v4150_v4 = vpop.permute.xlu0 %4149 }
0x27fc   :  { %v4164_v11 = vsel %vm640_vm4, %v4154_v2, 0 }
0x27fd   :  { %5849 = vmatpush3.bf16.msra.mxu1 %v4084_v60  ;;  %v6038_v60 = vld [vmem:[%s8179_s12 + $0x10] sm:$0xff]  }
0x27fe   :  { %v6277_v5 = vpop.eup %6276  ;;  %5991 = vmatprep.subr.msk.bf16.mxu1 %vm640_vm4, %v4154_v2 }
0x27ff   :  { %v6279_v39 = vpop.eup %6278  ;;  %v4068_v55 = vmul.f32 %v6277_v5, %v6271_v42  ;;  %v4156_v29 = vpop.permute.xlu1 %4155 }
0x2800   :  { %v4069_v43 = vmul.f32 %v6279_v39, %v6273_v44  ;;  %v4167_v7 = vsel %vm640_vm4, %v4156_v29, 0 }
0x2801   :  { %v4070_v52 = vpack.c.bf16 %v4068_v55, %v4067_v51  ;;  %v6039_v51 = vld [vmem:[%s8179_s12 + $0x18] sm:$0xff]  }
0x2802   :  { %v4071_v56 = vpack.c.bf16 %v4069_v43, %v4069_v43 }
0x2803   :  { %5850 = vmatprep.mubr.msk.bf16.mxu1 %vm701_vm6, %v4070_v52  ;;  %v4152_v8 = vpop.permute.xlu1 %4151 }
0x2804   :  { %5851 = vmatmul.mubr.msk.bf16.vlgmr.msra.gmra.mrb[112].mxu1 %vm701_vm6, %v4071_v56 }
0x2805   :  { %5858 = vmatprep.mubr.msk.bf16.mxu1 %vm640_vm4, %v4150_v4 }
0x2806   :  { %5855 = vmatpush3.bf16.xpose.msra.mxu1 %v4164_v11 }
0x2807   :  { %5992 = vmatprep.subr.msk.bf16.mxu1 %vm640_vm4, %v4156_v29 }
0x280e   :  { %5857 = vmatpush3.bf16.xpose.msra.mxu1 %v4167_v7 }
0x280f   :  { %5886 = vmatprep.subr.bf16.mxu1 %v6579_v0 }
0x2815   :  { %5859 = vmatmul.mubr.msk.bf16.vlgmr.msra.gmra.mrb[116].mxu1 %vm640_vm4, %v4152_v8 }
0x2816   :  { %5890 = vmatprep.mubr.msk.bf16.mxu1 %vm6580_vm0, %v6579_v0 }
0x28d7   :  { %v7887_v14 = vpop.f32.mrb[112].mxu1 }
0x28d8   :  { %v4120_v16 = vpop.f32.mrb[113].mxu1 }
0x28d9   :  { %v5853_v35 = vpop.f32.mrb[114].mxu1 }
0x28da   :  { %v4123_v18 = vpop.f32.mrb[115].mxu1 }
0x28e8   :  { %v5860_v33 = vpop.f32.mrb[116].mxu1 }
0x28e9   :  { %v4203_v13 = vpop.f32.mrb[117].mxu1  ;;  %v4223_v57 = vsel %vm701_vm6, %v5860_v33, -inf }
0x28ea   :  { %v5861_v25 = vpop.f32.mrb[118].mxu1  ;;  %v4217_v63 = vsel %vm701_vm6, %v4203_v13, -inf }
0x28eb   :  { %4218 = vmax.xlane.f32.xlu0 %v4217_v63  ;;  %v4206_v31 = vpop.f32.mrb[119].mxu1 }
0x28ec   :  { %v4220_v37 = vsel %vm701_vm6, %v4206_v31, -inf }
0x28ed   :  { %4221 = vmax.xlane.f32.xlu1 %v4220_v37 }
0x28ef   :  { %4224 = vmax.xlane.f32.xlu0 %v4223_v57 }
0x2978   :  { %v4219_v23 = vpop.xlane.xlu0 %4218 }
0x2979   :  { %v4226_v45 = vsub.f32 %v4203_v13, %v4219_v23  ;;  %v5191_v23 = vld [vmem:[#allocation16 + $0x1] ss:$0 sm:$0xff] }
0x297a   :  { %v4222_v48 = vpop.xlane.xlu1 %4221 }
0x297b   :  { %v4229_v49 = vmul.f32 1.442695, %v4226_v45  ;;  %v4227_v50 = vsub.f32 %v4206_v31, %v4222_v48 }
0x297c   :  { %v4225_v40 = vpop.xlane.xlu0 %4224 }
0x297d   :  { %6280 = vpow2.f32 %v4229_v49  ;;  %v4231_v41 = vmul.f32 1.442695, %v4227_v50  ;;  %v4228_v46 = vsub.f32 %v5860_v33, %v4225_v40 }
0x297f   :  { %6282 = vpow2.f32 %v4231_v41  ;;  %v4233_v42 = vmul.f32 1.442695, %v4228_v46 }
0x2981   :  { %6284 = vpow2.f32 %v4233_v42 }
0x2987   :  { %v6281_v44 = vpop.eup %6280 }
0x2988   :  { %v4235_v61 = vsel %vm701_vm6, %v6281_v44, 0.0 }
0x2989   :  { %v6283_v36 = vpop.eup %6282  ;;  %4236 = vadd.xlane.f32.xlu0 %v4235_v61 }
0x298a   :  { %v4238_v3 = vsel %vm701_vm6, %v6283_v36, 0.0 }
0x298b   :  { %v6285_v62 = vpop.eup %6284 }
0x298c   :  { %v4241_v15 = vsel %vm701_vm6, %v6285_v62, 0.0 }
0x298d   :  { %4242 = vadd.xlane.f32.xlu1 %v4241_v15  ;;  %4239 = vadd.xlane.f32.xlu0 %v4238_v3 }
0x299e   :  { %4254 = vrot.lane.b32.xlu1 %v7724_v20, %s6583_s9 }
0x29a2   :  { %3249 = vrot.lane.b32.xlu1 %v7691_v24, %s6568_s8 }
0x29a3   :  { %4252 = vrot.lane.b32.xlu0 %v7730_v6, %s6583_s9 }
0x29a6   :  { %3251 = vrot.lane.b32.xlu1 %v7693_v1, %s6568_s8 }
0x29a7   :  { %3429 = vrot.lane.b32.xlu0 %v7741_v27, %s6571_s6 }
0x29aa   :  { %3431 = vrot.lane.b32.xlu1 %v7743_v9, %s6571_s6 }
0x29ab   :  { %3609 = vrot.lane.b32.xlu0 %v7793_v32, %s6584_s23 }
0x29ae   :  { %3611 = vrot.lane.b32.xlu1 %v7795_v54, %s6584_s23 }
0x29af   :  { %3253 = vrot.lane.b32.xlu0 %v7689_v19, %s6568_s8 }
0x29b2   :  { %3957 = vrot.lane.b32.xlu1 %v7852_v12, %s6568_s8 }
0x29b3   :  { %3433 = vrot.lane.b32.xlu0 %v7739_v28, %s6571_s6 }
0x29b6   :  { %4137 = vrot.lane.b32.xlu1 %v4120_v16, %s6571_s6 }
0x29b7   :  { %3613 = vrot.lane.b32.xlu0 %v7791_v59, %s6584_s23 }
0x29ba   :  { %3961 = vrot.lane.b32.xlu1 %v7850_v10, %s6568_s8 }
0x29bb   :  { %3959 = vrot.lane.b32.xlu0 %v7854_v47, %s6568_s8 }
0x29bf   :  { %4139 = vrot.lane.b32.xlu0 %v4123_v18, %s6571_s6 }
0x2a16   :  { %v4237_v19 = vpop.xlane.xlu0 %4236 }
0x2a17   :  { %6286 = vrcp.f32 %v4237_v19 }
0x2a1a   :  { %v4240_v24 = vpop.xlane.xlu0 %4239  ;;  %v4243_v1 = vpop.xlane.xlu1 %4242 }
0x2a1b   :  { %6288 = vrcp.f32 %v4240_v24 }
0x2a1c   :  { %6290 = vrcp.f32 %v4243_v1 }
0x2a1e   :  { %v4253_v20 = vpop.permute.xlu0 %4252  ;;  %v4255_v6 = vpop.permute.xlu1 %4254 }
0x2a1f   :  { %5862 = vmatprep.subr.bf16.mxu0 %v4253_v20  ;;  %v4264_v59 = vsel %vm743_vm5, %v4255_v6, 0 }
0x2a20   :  { %5863 = vmatpush3.bf16.msra.mxu0 %v4253_v20 }
0x2a21   :  { %5993 = vmatprep.subr.msk.bf16.mxu0 %vm743_vm5, %v4255_v6  ;;  %v6287_v9 = vpop.eup %6286 }
0x2a22   :  { %v3430_v28 = vpop.permute.xlu0 %3429  ;;  %v3250_v27 = vpop.permute.xlu1 %3249  ;;  %v4247_v47 = vmul.f32 %v6287_v9, %v6281_v44 }
0x2a23   :  { %3258 = vst.msk [vmem:[#allocation3] sm:$0xff] %vm981_vm7, %v3250_v27 }
0x2a24   :  { %3438 = vst.msk [vmem:[#allocation3] sm:$0xff] %vm1162_vm8, %v3430_v28  ;;  %5865 = vmatpush3.bf16.msra.mxu0 %v4264_v59 }
0x2a25   :  { %v6289_v32 = vpop.eup %6288  ;;  %5870 = vmatprep.subr.bf16.mxu0 %v6579_v0 }
0x2a26   :  { %v6291_v54 = vpop.eup %6290  ;;  %v3610_v10 = vpop.permute.xlu0 %3609  ;;  %v4248_v30 = vmul.f32 %v6289_v32, %v6283_v36 }
0x2a27   :  { %v3252_v12 = vpop.permute.xlu1 %3251  ;;  %v4249_v26 = vmul.f32 %v6291_v54, %v6285_v62  ;;  %3618 = vst.msk [vmem:[#allocation3] sm:$0xff] %vm1343_vm9, %v3610_v10 }
0x2a28   :  { %3259 = vst.msk [vmem:[#allocation3 + $0x8] sm:$0xff] %vm981_vm7, %v3252_v12  ;;  %v4250_v34 = vpack.c.bf16 %v4248_v30, %v4247_v47 }
0x2a29   :  { %v4251_v2 = vpack.c.bf16 %v4249_v26, %v4249_v26 }
0x2a2a   :  { %5866 = vmatprep.mubr.msk.bf16.mxu0 %vm701_vm6, %v4250_v34  ;;  %v3254_v5 = vpop.permute.xlu0 %3253 }
0x2a2b   :  { %v3432_v39 = vpop.permute.xlu1 %3431  ;;  %3260 = vst.msk [vmem:[#allocation3 + $0x10] sm:$0xff] %vm981_vm7, %v3254_v5  ;;  %5867 = vmatmul.mubr.msk.bf16.vlgmr.msra.gmra.mrb[116].mxu0 %vm701_vm6, %v4251_v2 }
0x2a2c   :  { %3439 = vst.msk [vmem:[#allocation3 + $0x8] sm:$0xff] %vm1162_vm8, %v3432_v39  ;;  %5871 = vmatpush3.bf16.msra.mxu0 %v6038_v60  ;;  %5874 = vmatprep.mubr.msk.bf16.mxu0 %vm6580_vm0, %v6579_v0 }
0x2a2d   :  { %5872 = vmatprep.subr.bf16.mxu0 %v6579_v0 }
0x2a2e   :  { %v3434_v55 = vpop.permute.xlu0 %3433  ;;  %v4329_v29 = vld [vmem:[#allocation3] sm:$0xff] }
0x2a2f   :  { %v3612_v43 = vpop.permute.xlu1 %3611  ;;  %3440 = vst.msk [vmem:[#allocation3 + $0x10] sm:$0xff] %vm1162_vm8, %v3434_v55 }
0x2a30   :  { %3619 = vst.msk [vmem:[#allocation3 + $0x8] sm:$0xff] %vm1343_vm9, %v3612_v43  ;;  %5873 = vmatpush3.bf16.msra.mxu0 %v6039_v51 }
0x2a31   :  { %5902 = vmatprep.subr.bf16.mxu0 %v6579_v0 }
0x2a32   :  { %v3614_v52 = vpop.permute.xlu0 %3613 }
0x2a33   :  { %v3958_v56 = vpop.permute.xlu1 %3957  ;;  %3620 = vst.msk [vmem:[#allocation3 + $0x10] sm:$0xff] %vm1343_vm9, %v3614_v52 }
0x2a34   :  { %3966 = vst.msk [vmem:[#allocation3 + $0x18] sm:$0xff] %vm981_vm7, %v3958_v56 }
0x2a36   :  { %v3960_v4 = vpop.permute.xlu0 %3959 }
0x2a37   :  { %v4138_v11 = vpop.permute.xlu1 %4137  ;;  %v4330_v7 = vld [vmem:[#allocation3 + $0x8] sm:$0xff]  ;;  %3967 = vst.msk [vmem:[#allocation3 + $0x20] sm:$0xff] %vm981_vm7, %v3960_v4  ;;  %v6041_v4 = vld [vmem:[%s8183_s16 + $0x18] sm:$0xff]  }
0x2a38   :  { %4146 = vst.msk [vmem:[#allocation3 + $0x18] sm:$0xff] %vm1162_vm8, %v4138_v11  ;;  %v4335_v8 = vpack.c.bf16 %v4330_v7, %v4329_v29 }
0x2a3a   :  { %5875 = vmatmul.mubr.msk.bf16.vlgmr.msra.gmra.mrb[120].mxu0 %vm260_vm3, %v4335_v8  ;;  %v4140_v16 = vpop.permute.xlu0 %4139  ;;  %v4331_v44 = vld [vmem:[#allocation3 + $0x10] sm:$0xff] }
0x2a3b   :  { %v3962_v35 = vpop.permute.xlu1 %3961  ;;  %5878 = vmatprep.mubr.msk.bf16.mxu0 %vm6580_vm0, %v6579_v0  ;;  %4147 = vst.msk [vmem:[#allocation3 + $0x20] sm:$0xff] %vm1162_vm8, %v4140_v16 }
0x2a3c   :  { %3968 = vst.msk [vmem:[#allocation3 + $0x28] sm:$0xff] %vm981_vm7, %v3962_v35 }
0x2afe   :  { %v5868_v18 = vpop.f32.mrb[116].mxu0 }
0x2aff   :  { %v4300_v33 = vpop.f32.mrb[117].mxu0 }
0x2b00   :  { %4317 = vrot.lane.b32.xlu1 %v4300_v33, %s6584_s23  ;;  %v5869_v13 = vpop.f32.mrb[118].mxu0 }
0x2b01   :  { %v4303_v25 = vpop.f32.mrb[119].mxu0 }
0x2b02   :  { %4319 = vrot.lane.b32.xlu0 %v4303_v25, %s6584_s23 }
0x2b04   :  { %4141 = vrot.lane.b32.xlu1 %v7887_v14, %s6571_s6 }
0x2b08   :  { %4321 = vrot.lane.b32.xlu1 %v5868_v18, %s6584_s23 }
0x2b0d   :  { %v4406_v63 = vpop.f32.mrb[120].mxu0 }
0x2b0e   :  { %v5876_v31 = vpop.f32.mrb[121].mxu0  ;;  %v4407_v45 = vadd.f32 %v5191_v23, %v4406_v63 }
0x2b0f   :  { %v4409_v37 = vpop.f32.mrb[122].mxu0 }
0x2b10   :  { %v5877_v57 = vpop.f32.mrb[123].mxu0  ;;  %v7963_v48 = vadd.f32 %v4407_v45, %v7482_v53  ;;  %v4410_v50 = vadd.f32 %v5191_v23, %v4409_v37 }
0x2b12   :  { %v4439_v49 = vsel %vm260_vm3, %v7963_v48, 0.0  ;;  %v7968_v40 = vadd.f32 %v4410_v50, %v7485_v58 }
0x2b14   :  { %v4442_v14 = vsel %vm260_vm3, %v7968_v40, 0.0 }
0x2b21   :  { %4440 = vadd.xlane.f32.xlu0 %v4439_v49 }
0x2b2c   :  { %4443 = vadd.xlane.f32.xlu1 %v4442_v14 }
0x2b72   :  { %v4318_v41 = vpop.permute.xlu1 %4317 }
0x2b73   :  { %4326 = vst.msk [vmem:[#allocation3 + $0x18] sm:$0xff] %vm1343_vm9, %v4318_v41 }
0x2b74   :  { %v4320_v46 = vpop.permute.xlu0 %4319 }
0x2b75   :  { %4327 = vst.msk [vmem:[#allocation3 + $0x20] sm:$0xff] %vm1343_vm9, %v4320_v46 }
0x2b76   :  { %v4142_v53 = vpop.permute.xlu1 %4141 }
0x2b77   :  { %4148 = vst.msk [vmem:[#allocation3 + $0x28] sm:$0xff] %vm1162_vm8, %v4142_v53 }
0x2b7a   :  { %v4322_v42 = vpop.permute.xlu1 %4321  ;;  %v4332_v61 = vld [vmem:[#allocation3 + $0x18] sm:$0xff] }
0x2b7b   :  { %4328 = vst.msk [vmem:[#allocation3 + $0x28] sm:$0xff] %vm1343_vm9, %v4322_v42  ;;  %v4336_v58 = vpack.c.bf16 %v4332_v61, %v4331_v44 }
0x2b7c   :  { %v4333_v36 = vld [vmem:[#allocation3 + $0x20] sm:$0xff] }
0x2b7d   :  { %5879 = vmatmul.mubr.msk.bf16.gmra.mrb[124].mxu0 %vm260_vm3, %v4336_v58 }
0x2b7e   :  { %5882 = vmatprep.mubr.msk.bf16.mxu0 %vm6580_vm0, %v6579_v0 }
0x2b82   :  { %v4334_v62 = vld [vmem:[#allocation3 + $0x28] sm:$0xff] }
0x2b83   :  { %v4337_v15 = vpack.c.bf16 %v4334_v62, %v4333_v36  ;;  %v8038_v62 = vld [vmem:[#allocation18 + $0x1] ss:$0 sm:$0xff] }
0x2b85   :  { %5883 = vmatmul.mubr.msk.bf16.gmra.mrb[128].mxu0 %vm260_vm3, %v4337_v15 }
0x2b86   :  { %5918 = vmatprep.mubr.msk.bf16.mxu0 %vm6580_vm0, %v6579_v0 }
0x2bae   :  { %v4441_v1 = vpop.xlane.xlu0 %4440 }
0x2baf   :  { %v4457_v59 = vmul.f32 0.03125, %v4441_v1  ;;  %v8044_v1 = vld [vmem:[%s8182_s15 + $0x1] ss:$0 sm:$0xff]  ;;  %s8224_s15 = sld [smem:[#allocation36_spill]] }
0x2bb1   :  { %v4463_v47 = vsub.f32 %v7963_v48, %v4457_v59  ;;  %v6042_v59 = vld [vmem:[%s8185_s18 + $0x40] sm:$0xff]  }
0x2bb2   :  { %5903 = vmatpush3.bf16.msra.mxu0 %v6042_v59 }
0x2bb3   :  { %v4469_v55 = vmul.f32 %v4463_v47, %v4463_v47  ;;  %5904 = vmatprep.subr.bf16.mxu0 %v6579_v0 }
0x2bb5   :  { %v4475_v56 = vsel %vm260_vm3, %v4469_v55, 0.0 }
0x2bb9   :  { %v4444_v9 = vpop.xlane.xlu1 %4443 }
0x2bba   :  { %v4458_v10 = vmul.f32 0.03125, %v4444_v9 }
0x2bbc   :  { %v4464_v60 = vsub.f32 %v7968_v40, %v4458_v10  ;;  %v6044_v10 = vld [vmem:[%s8185_s18 + $0x50] sm:$0xff]  }
0x2bbe   :  { %v4470_v52 = vmul.f32 %v4464_v60, %v4464_v60 }
0x2c50   :  { %v4414_v3 = vpop.f32.mrb[124].mxu0 }
0x2c51   :  { %v4415_v19 = vadd.f32 %v5191_v23, %v4414_v3  ;;  %v5880_v24 = vpop.f32.mrb[125].mxu0 }
0x2c52   :  { %v4417_v20 = vpop.f32.mrb[126].mxu0 }
0x2c53   :  { %v7983_v6 = vadd.f32 %v4415_v19, %v7492_v21  ;;  %v4418_v28 = vadd.f32 %v5191_v23, %v4417_v20  ;;  %v5881_v27 = vpop.f32.mrb[127].mxu0 }
0x2c55   :  { %v7986_v32 = vadd.f32 %v4418_v28, %v7495_v17  ;;  %v4445_v54 = vsel %vm260_vm3, %v7983_v6, 0.0 }
0x2c56   :  { %4446 = vadd.xlane.f32.xlu0 %v4445_v54  ;;  %v6043_v54 = vld [vmem:[%s8185_s18 + $0x48] sm:$0xff]  }
0x2c57   :  { %v4448_v21 = vsel %vm260_vm3, %v7986_v32, 0.0  ;;  %5905 = vmatpush3.bf16.msra.mxu0 %v6043_v54 }
0x2c58   :  { %v4422_v12 = vpop.f32.mrb[128].mxu0  ;;  %5906 = vmatprep.subr.bf16.mxu0 %v6579_v0 }
0x2c59   :  { %v4423_v30 = vadd.f32 %v5191_v23, %v4422_v12  ;;  %v5884_v26 = vpop.f32.mrb[129].mxu0  ;;  %v6045_v12 = vld [vmem:[%s8185_s18 + $0x58] sm:$0xff]  }
0x2c5a   :  { %4449 = vadd.xlane.f32.xlu0 %v4448_v21  ;;  %v4425_v34 = vpop.f32.mrb[130].mxu0  ;;  %v6048_v26 = vld [vmem:[%s8185_s18 + $0x70] sm:$0xff]   ;;  %v6049_v21 = vld [vmem:[%s8185_s18 + $0x78] sm:$0xff]  }
0x2c5b   :  { %v7995_v17 = vadd.f32 %v4423_v30, %v7503_v38  ;;  %v4426_v2 = vadd.f32 %v5191_v23, %v4425_v34  ;;  %v5885_v5 = vpop.f32.mrb[131].mxu0  ;;  %v4478_v38 = vsel %vm260_vm3, %v4470_v52, 0.0  ;;  %5907 = vmatpush3.bf16.msra.mxu0 %v6044_v10  ;;  %v6047_v30 = vld [vmem:[%s8185_s18 + $0x68] sm:$0xff]  }
0x2c5c   :  { %5908 = vmatprep.subr.bf16.mxu0 %v6579_v0 }
0x2c5d   :  { %v7998_v39 = vadd.f32 %v4426_v2, %v7506_v22  ;;  %v4451_v51 = vsel %vm260_vm3, %v7995_v17, 0.0  ;;  %v6040_v22 = vld [vmem:[%s8183_s16 + $0x10] sm:$0xff]  }
0x2c5e   :  { %4452 = vadd.xlane.f32.xlu0 %v4451_v51  ;;  %5887 = vmatpush3.bf16.msra.mxu1 %v6040_v22 }
0x2c5f   :  { %v4454_v43 = vsel %vm260_vm3, %v7998_v39, 0.0  ;;  %5888 = vmatprep.subr.bf16.mxu1 %v6579_v0  ;;  %5909 = vmatpush3.bf16.msra.mxu0 %v6045_v12 }
0x2c60   :  { %4455 = vadd.xlane.f32.xlu1 %v4454_v43  ;;  %5910 = vmatprep.subr.bf16.mxu0 %v6579_v0 }
0x2c62   :  { %4476 = vadd.xlane.f32.xlu0 %v4475_v56  ;;  %5889 = vmatpush3.bf16.msra.mxu1 %v6041_v4 }
0x2c63   :  { %5930 = vmatprep.subr.bf16.mxu1 %v6579_v0 }
0x2c64   :  { %4479 = vadd.xlane.f32.xlu1 %v4478_v38 }
0x2ce3   :  { %v4447_v11 = vpop.xlane.xlu0 %4446 }
0x2ce4   :  { %v4459_v29 = vmul.f32 0.03125, %v4447_v11 }
0x2ce6   :  { %v8015_v7 = vsub.f32 %v7983_v6, %v4459_v29 }
0x2ce7   :  { %v4450_v8 = vpop.xlane.xlu0 %4449 }
0x2ce8   :  { %v4460_v16 = vmul.f32 0.03125, %v4450_v8  ;;  %v4471_v35 = vmul.f32 %v8015_v7, %v8015_v7 }
0x2cea   :  { %v8020_v18 = vsub.f32 %v7986_v32, %v4460_v16  ;;  %v4481_v33 = vsel %vm260_vm3, %v4471_v35, 0.0 }
0x2ceb   :  { %4482 = vadd.xlane.f32.xlu0 %v4481_v33  ;;  %v4453_v13 = vpop.xlane.xlu0 %4452 }
0x2cec   :  { %v4461_v25 = vmul.f32 0.03125, %v4453_v13  ;;  %v4472_v63 = vmul.f32 %v8020_v18, %v8020_v18 }
0x2ced   :  { %v4456_v31 = vpop.xlane.xlu1 %4455 }
0x2cee   :  { %v8026_v37 = vsub.f32 %v7995_v17, %v4461_v25  ;;  %v4462_v57 = vmul.f32 0.03125, %v4456_v31  ;;  %v4484_v23 = vsel %vm260_vm3, %v4472_v63, 0.0 }
0x2cef   :  { %v4477_v45 = vpop.xlane.xlu0 %4476  ;;  %4485 = vadd.xlane.f32.xlu1 %v4484_v23 }
0x2cf0   :  { %v8030_v49 = vsub.f32 %v7998_v39, %v4462_v57  ;;  %v4493_v50 = vmul.f32 0.03125, %v4477_v45  ;;  %v4473_v14 = vmul.f32 %v8026_v37, %v8026_v37 }
0x2cf1   :  { %v4480_v41 = vpop.xlane.xlu1 %4479 }
0x2cf2   :  { %v4499_v46 = vadd.f32 1e-05, %v4493_v50  ;;  %v4494_v53 = vmul.f32 0.03125, %v4480_v41  ;;  %v4487_v42 = vsel %vm260_vm3, %v4473_v14, 0.0  ;;  %v4474_v44 = vmul.f32 %v8030_v49, %v8030_v49 }
0x2cf3   :  { %4488 = vadd.xlane.f32.xlu0 %v4487_v42 }
0x2cf4   :  { %6292 = vrsqrt.f32 %v4499_v46  ;;  %v4500_v61 = vadd.f32 1e-05, %v4494_v53  ;;  %v4490_v58 = vsel %vm260_vm3, %v4474_v44, 0.0 }
0x2cf5   :  { %4491 = vadd.xlane.f32.xlu1 %v4490_v58 }
0x2cf6   :  { %6294 = vrsqrt.f32 %v4500_v61 }
0x2cfe   :  { %v6293_v36 = vpop.eup %6292 }
0x2cff   :  { %v4511_v15 = vmul.f32 %v6293_v36, %v4463_v47  ;;  %v6046_v47 = vld [vmem:[%s8185_s18 + $0x60] sm:$0xff]  }
0x2d00   :  { %v6295_v3 = vpop.eup %6294  ;;  %5911 = vmatpush3.bf16.msra.mxu0 %v6046_v47 }
0x2d01   :  { %v4523_v19 = vmul.f32 %v8038_v62, %v4511_v15  ;;  %v4512_v24 = vmul.f32 %v6295_v3, %v4464_v60  ;;  %5912 = vmatprep.subr.bf16.mxu0 %v6579_v0 }
0x2d03   :  { %v4524_v20 = vmul.f32 %v8038_v62, %v4512_v24  ;;  %v4535_v28 = vadd.f32 %v8044_v1, %v4523_v19 }
0x2d04   :  { %5913 = vmatpush3.bf16.msra.mxu0 %v6047_v30 }
0x2d05   :  { %v4536_v27 = vadd.f32 %v8044_v1, %v4524_v20  ;;  %5914 = vmatprep.subr.bf16.mxu0 %v6579_v0 }
0x2d07   :  { %v4541_v9 = vpack.c.bf16 %v4536_v27, %v4535_v28 }
0x2d08   :  { %5915 = vmatpush3.bf16.msra.mxu0 %v6048_v26 }
0x2d09   :  { %5891 = vmatmul.mubr.msk.bf16.vlgmr.msra.gmra.mrb[120].mxu1 %vm260_vm3, %v4541_v9  ;;  %5916 = vmatprep.subr.bf16.mxu0 %v6579_v0 }
0x2d0a   :  { %5894 = vmatprep.mubr.msk.bf16.mxu1 %vm6580_vm0, %v6579_v0 }
0x2d0c   :  { %5917 = vmatpush3.bf16.msra.mxu0 %v6049_v21 }
0x2d78   :  { %v4483_v34 = vpop.xlane.xlu0 %4482 }
0x2d79   :  { %v4495_v60 = vmul.f32 0.03125, %v4483_v34 }
0x2d7b   :  { %v4501_v2 = vadd.f32 1e-05, %v4495_v60 }
0x2d7c   :  { %v4486_v5 = vpop.xlane.xlu1 %4485 }
0x2d7d   :  { %6296 = vrsqrt.f32 %v4501_v2  ;;  %v4496_v51 = vmul.f32 0.03125, %v4486_v5 }
0x2d7f   :  { %v4502_v55 = vadd.f32 1e-05, %v4496_v51 }
0x2d80   :  { %v4489_v43 = vpop.xlane.xlu0 %4488 }
0x2d81   :  { %6298 = vrsqrt.f32 %v4502_v55  ;;  %v4497_v52 = vmul.f32 0.03125, %v4489_v43 }
0x2d82   :  { %v4492_v56 = vpop.xlane.xlu1 %4491 }
0x2d83   :  { %v4503_v38 = vadd.f32 1e-05, %v4497_v52  ;;  %v4498_v22 = vmul.f32 0.03125, %v4492_v56 }
0x2d85   :  { %6300 = vrsqrt.f32 %v4503_v38  ;;  %v4504_v4 = vadd.f32 1e-05, %v4498_v22 }
0x2d87   :  { %v6297_v11 = vpop.eup %6296  ;;  %6302 = vrsqrt.f32 %v4504_v4 }
0x2d88   :  { %v4513_v29 = vmul.f32 %v6297_v11, %v8015_v7 }
0x2d8a   :  { %v4525_v35 = vmul.f32 %v8038_v62, %v4513_v29 }
0x2d8b   :  { %v6299_v8 = vpop.eup %6298 }
0x2d8c   :  { %v4514_v16 = vmul.f32 %v6299_v8, %v8020_v18  ;;  %v4537_v63 = vadd.f32 %v8044_v1, %v4525_v35 }
0x2d8e   :  { %v4526_v33 = vmul.f32 %v8038_v62, %v4514_v16 }
0x2d8f   :  { %v6301_v13 = vpop.eup %6300 }
0x2d90   :  { %v4515_v25 = vmul.f32 %v6301_v13, %v8026_v37  ;;  %v4538_v31 = vadd.f32 %v8044_v1, %v4526_v33 }
0x2d91   :  { %v6303_v57 = vpop.eup %6302 }
0x2d92   :  { %v4516_v23 = vmul.f32 %v6303_v57, %v8030_v49  ;;  %v4542_v45 = vpack.c.bf16 %v4538_v31, %v4537_v63  ;;  %v4527_v7 = vmul.f32 %v8038_v62, %v4515_v25  ;;  %v5205_v49 = vld [vmem:[%s8184_s17 + $0x1] ss:$0 sm:$0xff] }
0x2d94   :  { %5895 = vmatmul.mubr.msk.bf16.gmra.mrb[124].mxu1 %vm260_vm3, %v4542_v45  ;;  %v4528_v18 = vmul.f32 %v8038_v62, %v4516_v23  ;;  %v4539_v37 = vadd.f32 %v8044_v1, %v4527_v7 }
0x2d95   :  { %5898 = vmatprep.mubr.msk.bf16.mxu1 %vm6580_vm0, %v6579_v0 }
0x2d96   :  { %v4540_v50 = vadd.f32 %v8044_v1, %v4528_v18 }
0x2d98   :  { %v4543_v14 = vpack.c.bf16 %v4540_v50, %v4539_v37 }
0x2d9c   :  { %5899 = vmatmul.mubr.msk.bf16.gmra.mrb[128].mxu1 %vm260_vm3, %v4543_v14 }
0x2d9d   :  { %5934 = vmatprep.mubr.msk.bf16.mxu1 %vm6580_vm0, %v6579_v0 }
0x2ddc   :  { %v4612_v41 = vpop.f32.mrb[120].mxu1 }
0x2ddd   :  { %v4613_v46 = vadd.f32 %v5205_v49, %v4612_v41  ;;  %v5892_v53 = vpop.f32.mrb[121].mxu1 }
0x2dde   :  { %v4615_v42 = vpop.f32.mrb[122].mxu1 }
0x2ddf   :  { %v4641_v44 = vmul.f32 0.044715, %v4613_v46  ;;  %v4616_v61 = vadd.f32 %v5205_v49, %v4615_v42  ;;  %v5893_v58 = vpop.f32.mrb[123].mxu1  ;;  %v4635_v54 = vmul.f32 0.5, %v4613_v46 }
0x2de1   :  { %v4647_v36 = vmul.f32 %v4641_v44, %v4613_v46  ;;  %v4642_v62 = vmul.f32 0.044715, %v4616_v61  ;;  %v4636_v10 = vmul.f32 0.5, %v4616_v61 }
0x2de3   :  { %v4653_v15 = vmul.f32 %v4647_v36, %v4613_v46  ;;  %v4648_v3 = vmul.f32 %v4642_v62, %v4616_v61 }
0x2de5   :  { %v4659_v19 = vadd.f32 %v4653_v15, %v4613_v46  ;;  %v4654_v24 = vmul.f32 %v4648_v3, %v4616_v61 }
0x2de7   :  { %v4665_v1 = vmul.f32 0.7978846, %v4659_v19  ;;  %v4660_v20 = vadd.f32 %v4654_v24, %v4616_v61 }
0x2de9   :  { %6304 = vtanh.f32 %v4665_v1  ;;  %v4666_v28 = vmul.f32 0.7978846, %v4660_v20 }
0x2deb   :  { %6306 = vtanh.f32 %v4666_v28 }
0x2df3   :  { %v6305_v27 = vpop.eup %6304 }
0x2df4   :  { %v4677_v9 = vadd.f32 1.0, %v6305_v27 }
0x2df5   :  { %v6307_v59 = vpop.eup %6306 }
0x2df6   :  { %v4678_v12 = vadd.f32 1.0, %v6307_v59  ;;  %v4683_v47 = vmul.f32 %v4677_v9, %v4635_v54  ;;  %v5228_v59 = vld [vmem:[%s8186_s19 + $0x1] ss:$0 sm:$0xff] }
0x2df8   :  { %v4684_v30 = vmul.f32 %v4678_v12, %v4636_v10 }
0x2dfa   :  { %v4689_v26 = vpack.c.bf16 %v4684_v30, %v4683_v47 }
0x2dfc   :  { %5919 = vmatmul.mubr.bf16.vlgmr.msra.gmra.mrb[132].mxu0 %v4689_v26 }
0x2dfd   :  { %5922 = vmatprep.mubr.msk.bf16.mxu0 %vm6580_vm0, %v6579_v0 }
0x2e67   :  { %v4620_v21 = vpop.f32.mrb[124].mxu1 }
0x2e68   :  { %v4621_v34 = vadd.f32 %v5205_v49, %v4620_v21  ;;  %v5896_v60 = vpop.f32.mrb[125].mxu1 }
0x2e69   :  { %v4623_v2 = vpop.f32.mrb[126].mxu1 }
0x2e6a   :  { %v4643_v5 = vmul.f32 0.044715, %v4621_v34  ;;  %v4624_v51 = vadd.f32 %v5205_v49, %v4623_v2  ;;  %v5897_v55 = vpop.f32.mrb[127].mxu1  ;;  %v4637_v42 = vmul.f32 0.5, %v4621_v34 }
0x2e6c   :  { %v4649_v43 = vmul.f32 %v4643_v5, %v4621_v34  ;;  %v4644_v52 = vmul.f32 0.044715, %v4624_v51  ;;  %v4638_v44 = vmul.f32 0.5, %v4624_v51 }
0x2e6e   :  { %v4655_v56 = vmul.f32 %v4649_v43, %v4621_v34  ;;  %v4650_v38 = vmul.f32 %v4644_v52, %v4624_v51 }
0x2e6f   :  { %v4628_v22 = vpop.f32.mrb[128].mxu1 }
0x2e70   :  { %v4656_v4 = vmul.f32 %v4650_v38, %v4624_v51  ;;  %v4629_v11 = vadd.f32 %v5205_v49, %v4628_v22  ;;  %v5900_v29 = vpop.f32.mrb[129].mxu1  ;;  %v4661_v8 = vadd.f32 %v4655_v56, %v4621_v34 }
0x2e71   :  { %v4631_v16 = vpop.f32.mrb[130].mxu1 }
0x2e72   :  { %v4645_v35 = vmul.f32 0.044715, %v4629_v11  ;;  %v4632_v33 = vadd.f32 %v5205_v49, %v4631_v16  ;;  %v5901_v13 = vpop.f32.mrb[131].mxu1  ;;  %v4662_v25 = vadd.f32 %v4656_v4, %v4624_v51  ;;  %v4667_v63 = vmul.f32 0.7978846, %v4661_v8 }
0x2e73   :  { %v4639_v24 = vmul.f32 0.5, %v4629_v11 }
0x2e74   :  { %v4651_v31 = vmul.f32 %v4645_v35, %v4629_v11  ;;  %v4646_v57 = vmul.f32 0.044715, %v4632_v33  ;;  %v4668_v23 = vmul.f32 0.7978846, %v4662_v25  ;;  %6308 = vtanh.f32 %v4667_v63 }
0x2e75   :  { %v4640_v1 = vmul.f32 0.5, %v4632_v33 }
0x2e76   :  { %v4657_v45 = vmul.f32 %v4651_v31, %v4629_v11  ;;  %v4652_v7 = vmul.f32 %v4646_v57, %v4632_v33  ;;  %6310 = vtanh.f32 %v4668_v23 }
0x2e78   :  { %v4658_v18 = vmul.f32 %v4652_v7, %v4632_v33  ;;  %v4663_v50 = vadd.f32 %v4657_v45, %v4629_v11 }
0x2e7a   :  { %v4664_v37 = vadd.f32 %v4658_v18, %v4632_v33  ;;  %v4669_v14 = vmul.f32 0.7978846, %v4663_v50 }
0x2e7c   :  { %v4670_v41 = vmul.f32 0.7978846, %v4664_v37  ;;  %6312 = vtanh.f32 %v4669_v14 }
0x2e7e   :  { %v6309_v46 = vpop.eup %6308  ;;  %6314 = vtanh.f32 %v4670_v41 }
0x2e7f   :  { %v4679_v53 = vadd.f32 1.0, %v6309_v46 }
0x2e80   :  { %v6311_v49 = vpop.eup %6310 }
0x2e81   :  { %v4680_v61 = vadd.f32 1.0, %v6311_v49  ;;  %v4685_v58 = vmul.f32 %v4679_v53, %v4637_v42 }
0x2e83   :  { %v4686_v36 = vmul.f32 %v4680_v61, %v4638_v44 }
0x2e85   :  { %v4690_v62 = vpack.c.bf16 %v4686_v36, %v4685_v58 }
0x2e86   :  { %v6313_v15 = vpop.eup %6312 }
0x2e87   :  { %5923 = vmatmul.mubr.bf16.gmra.mrb[136].mxu0 %v4690_v62  ;;  %v4681_v3 = vadd.f32 1.0, %v6313_v15 }
0x2e88   :  { %v6315_v19 = vpop.eup %6314  ;;  %5926 = vmatprep.mubr.msk.bf16.mxu0 %vm6580_vm0, %v6579_v0 }
0x2e89   :  { %v4682_v20 = vadd.f32 1.0, %v6315_v19  ;;  %v4687_v28 = vmul.f32 %v4681_v3, %v4639_v24 }
0x2e8b   :  { %v4688_v27 = vmul.f32 %v4682_v20, %v4640_v1 }
0x2e8d   :  { %v4691_v9 = vpack.c.bf16 %v4688_v27, %v4687_v28 }
0x2e8f   :  { %5927 = vmatmul.mubr.bf16.gmra.mrb[140].mxu0 %v4691_v9 }
0x2ecf   :  { %v4799_v54 = vpop.f32.mrb[132].mxu0 }
0x2ed0   :  { %v4800_v10 = vadd.f32 %v5228_v59, %v4799_v54  ;;  %v5920_v12 = vpop.f32.mrb[133].mxu0 }
0x2ed1   :  { %v4802_v47 = vpop.f32.mrb[134].mxu0 }
0x2ed2   :  { %v4822_v30 = vadd.f32 %v4800_v10, %v7963_v48  ;;  %v4803_v26 = vadd.f32 %v5228_v59, %v4802_v47  ;;  %v5921_v21 = vpop.f32.mrb[135].mxu0 }
0x2ed3   :  { %v5237_v21 = vld [vmem:[%s8187_s20] ss:$0 sm:$0xff] }
0x2ed4   :  { %v4823_v34 = vadd.f32 %v4803_v26, %v7968_v40  ;;  %v4830_v60 = vsel %vm260_vm3, %v4822_v30, 0.0 }
0x2ed5   :  { %4831 = vadd.xlane.f32.xlu0 %v4830_v60 }
0x2ed6   :  { %v4833_v2 = vsel %vm260_vm3, %v4823_v34, 0.0 }
0x2ed7   :  { %4834 = vadd.xlane.f32.xlu1 %v4833_v2 }
0x2f5a   :  { %v4807_v5 = vpop.f32.mrb[136].mxu0 }
0x2f5b   :  { %v4808_v51 = vadd.f32 %v5228_v59, %v4807_v5  ;;  %v5924_v55 = vpop.f32.mrb[137].mxu0 }
0x2f5c   :  { %v4810_v43 = vpop.f32.mrb[138].mxu0 }
0x2f5d   :  { %v4824_v52 = vadd.f32 %v4808_v51, %v7983_v6  ;;  %v4811_v56 = vadd.f32 %v5228_v59, %v4810_v43  ;;  %v5925_v38 = vpop.f32.mrb[139].mxu0  ;;  %v5238_v51 = vld [vmem:[%s8223_s7] ss:$0 sm:$0xff] }
0x2f5f   :  { %v4825_v48 = vadd.f32 %v4811_v56, %v7986_v32  ;;  %v4836_v22 = vsel %vm260_vm3, %v4824_v52, 0.0 }
0x2f60   :  { %4837 = vadd.xlane.f32.xlu0 %v4836_v22 }
0x2f61   :  { %v4839_v40 = vsel %vm260_vm3, %v4825_v48, 0.0 }
0x2f62   :  { %v4832_v4 = vpop.xlane.xlu0 %4831  ;;  %4840 = vadd.xlane.f32.xlu1 %v4839_v40  ;;  %v4815_v11 = vpop.f32.mrb[140].mxu0 }
0x2f63   :  { %v4848_v29 = vmul.f32 0.03125, %v4832_v4  ;;  %v4816_v8 = vadd.f32 %v5228_v59, %v4815_v11  ;;  %v5928_v16 = vpop.f32.mrb[141].mxu0 }
0x2f64   :  { %v4818_v35 = vpop.f32.mrb[142].mxu0  ;;  %v4835_v33 = vpop.xlane.xlu1 %4834 }
0x2f65   :  { %v4854_v13 = vsub.f32 %v4822_v30, %v4848_v29  ;;  %v4826_v6 = vadd.f32 %v4816_v8, %v7995_v17  ;;  %v4819_v25 = vadd.f32 %v5228_v59, %v4818_v35  ;;  %v4849_v63 = vmul.f32 0.03125, %v4835_v33  ;;  %v5929_v31 = vpop.f32.mrb[143].mxu0  ;;  %v6050_v17 = vld [vmem:[%s8189_s22] sm:$0xff]  }
0x2f66   :  { %5931 = vmatpush3.bf16.msra.mxu1 %v6050_v17 }
0x2f67   :  { %v4827_v32 = vadd.f32 %v4819_v25, %v7998_v39  ;;  %v4855_v57 = vsub.f32 %v4823_v34, %v4849_v63  ;;  %v4842_v23 = vsel %vm260_vm3, %v4826_v6, 0.0  ;;  %v4860_v45 = vmul.f32 %v4854_v13, %v4854_v13  ;;  %5932 = vmatprep.subr.bf16.mxu1 %v6579_v0  ;;  %v6051_v39 = vld [vmem:[%s8189_s22 + $0x8] sm:$0xff]  }
0x2f68   :  { %4843 = vadd.xlane.f32.xlu0 %v4842_v23 }
0x2f69   :  { %v4845_v7 = vsel %vm260_vm3, %v4827_v32, 0.0  ;;  %v4861_v18 = vmul.f32 %v4855_v57, %v4855_v57  ;;  %v4866_v50 = vsel %vm260_vm3, %v4860_v45, 0.0 }
0x2f6a   :  { %4846 = vadd.xlane.f32.xlu1 %v4845_v7  ;;  %5933 = vmatpush3.bf16.msra.mxu1 %v6051_v39 }
0x2f6b   :  { %v4869_v37 = vsel %vm260_vm3, %v4861_v18, 0.0 }
0x2f6c   :  { %4867 = vadd.xlane.f32.xlu0 %v4866_v50 }
0x2f6e   :  { %4870 = vadd.xlane.f32.xlu1 %v4869_v37 }
0x2fed   :  { %v4838_v14 = vpop.xlane.xlu0 %4837 }
0x2fee   :  { %v4850_v41 = vmul.f32 0.03125, %v4838_v14 }
0x2fef   :  { %v4841_v46 = vpop.xlane.xlu1 %4840 }
0x2ff0   :  { %v4856_v53 = vsub.f32 %v4824_v52, %v4850_v41  ;;  %v4851_v49 = vmul.f32 0.03125, %v4841_v46 }
0x2ff2   :  { %v4857_v42 = vsub.f32 %v4825_v48, %v4851_v49  ;;  %v4862_v44 = vmul.f32 %v4856_v53, %v4856_v53 }
0x2ff4   :  { %v4872_v61 = vsel %vm260_vm3, %v4862_v44, 0.0  ;;  %v4863_v58 = vmul.f32 %v4857_v42, %v4857_v42 }
0x2ff5   :  { %4873 = vadd.xlane.f32.xlu0 %v4872_v61  ;;  %v4844_v36 = vpop.xlane.xlu0 %4843 }
0x2ff6   :  { %v4852_v62 = vmul.f32 0.03125, %v4844_v36  ;;  %v4875_v15 = vsel %vm260_vm3, %v4863_v58, 0.0 }
0x2ff7   :  { %4876 = vadd.xlane.f32.xlu1 %v4875_v15  ;;  %v4847_v3 = vpop.xlane.xlu1 %4846 }
0x2ff8   :  { %v4858_v19 = vsub.f32 %v4826_v6, %v4852_v62  ;;  %v4853_v24 = vmul.f32 0.03125, %v4847_v3 }
0x2ff9   :  { %v4868_v1 = vpop.xlane.xlu0 %4867 }
0x2ffa   :  { %v4859_v20 = vsub.f32 %v4827_v32, %v4853_v24  ;;  %v4884_v28 = vmul.f32 0.03125, %v4868_v1  ;;  %v4864_v27 = vmul.f32 %v4858_v19, %v4858_v19 }
0x2ffb   :  { %v4871_v9 = vpop.xlane.xlu1 %4870 }
0x2ffc   :  { %v4890_v59 = vadd.f32 1e-05, %v4884_v28  ;;  %v4885_v54 = vmul.f32 0.03125, %v4871_v9  ;;  %v4878_v10 = vsel %vm260_vm3, %v4864_v27, 0.0  ;;  %v4865_v12 = vmul.f32 %v4859_v20, %v4859_v20 }
0x2ffd   :  { %4879 = vadd.xlane.f32.xlu0 %v4878_v10 }
0x2ffe   :  { %6316 = vrsqrt.f32 %v4890_v59  ;;  %v4891_v47 = vadd.f32 1e-05, %v4885_v54  ;;  %v4881_v30 = vsel %vm260_vm3, %v4865_v12, 0.0 }
0x2fff   :  { %4882 = vadd.xlane.f32.xlu1 %v4881_v30 }
0x3000   :  { %6318 = vrsqrt.f32 %v4891_v47 }
0x3008   :  { %v6317_v26 = vpop.eup %6316 }
0x3009   :  { %v4902_v34 = vmul.f32 %v6317_v26, %v4854_v13 }
0x300a   :  { %v6319_v60 = vpop.eup %6318 }
0x300b   :  { %v4914_v2 = vmul.f32 %v5237_v21, %v4902_v34  ;;  %v4903_v5 = vmul.f32 %v6319_v60, %v4855_v57 }
0x300d   :  { %v4915_v55 = vmul.f32 %v5237_v21, %v4903_v5  ;;  %v4926_v43 = vadd.f32 %v5238_v51, %v4914_v2 }
0x300f   :  { %v4927_v52 = vadd.f32 %v5238_v51, %v4915_v55 }
0x3011   :  { %v4932_v56 = vpack.c.bf16 %v4927_v52, %v4926_v43 }
0x3013   :  { %5935 = vmatmul.mubr.msk.bf16.vlgmr.msra.gmra.mrb[132].mxu1 %vm260_vm3, %v4932_v56 }
0x3014   :  { %5938 = vmatprep.mubr.msk.bf16.mxu1 %vm6580_vm0, %v6579_v0 }
0x3082   :  { %v4874_v38 = vpop.xlane.xlu0 %4873 }
0x3083   :  { %v4886_v48 = vmul.f32 0.03125, %v4874_v38 }
0x3084   :  { %v4877_v22 = vpop.xlane.xlu1 %4876 }
0x3085   :  { %v4892_v40 = vadd.f32 1e-05, %v4886_v48  ;;  %v4887_v4 = vmul.f32 0.03125, %v4877_v22 }
0x3087   :  { %6320 = vrsqrt.f32 %v4892_v40  ;;  %v4893_v11 = vadd.f32 1e-05, %v4887_v4 }
0x3089   :  { %6322 = vrsqrt.f32 %v4893_v11 }
0x308a   :  { %v4880_v29 = vpop.xlane.xlu0 %4879 }
0x308b   :  { %v4888_v8 = vmul.f32 0.03125, %v4880_v29 }
0x308c   :  { %v4883_v16 = vpop.xlane.xlu1 %4882 }
0x308d   :  { %v4894_v35 = vadd.f32 1e-05, %v4888_v8  ;;  %v4889_v33 = vmul.f32 0.03125, %v4883_v16 }
0x308f   :  { %6324 = vrsqrt.f32 %v4894_v35  ;;  %v4895_v13 = vadd.f32 1e-05, %v4889_v33 }
0x3091   :  { %v6321_v6 = vpop.eup %6320  ;;  %6326 = vrsqrt.f32 %v4895_v13 }
0x3092   :  { %v4904_v25 = vmul.f32 %v6321_v6, %v4856_v53 }
0x3093   :  { %v6323_v63 = vpop.eup %6322 }
0x3094   :  { %v4905_v31 = vmul.f32 %v6323_v63, %v4857_v42  ;;  %v4916_v32 = vmul.f32 %v5237_v21, %v4904_v25  ;;  %v5239_v42 = vld [vmem:[%s8224_s15] ss:$0 sm:$0xff] }
0x3096   :  { %v4917_v57 = vmul.f32 %v5237_v21, %v4905_v31  ;;  %v4928_v23 = vadd.f32 %v5238_v51, %v4916_v32 }
0x3098   :  { %v4929_v45 = vadd.f32 %v5238_v51, %v4917_v57 }
0x3099   :  { %v6325_v7 = vpop.eup %6324 }
0x309a   :  { %v4906_v18 = vmul.f32 %v6325_v7, %v4858_v19  ;;  %v4933_v50 = vpack.c.bf16 %v4929_v45, %v4928_v23 }
0x309b   :  { %v6327_v37 = vpop.eup %6326 }
0x309c   :  { %v4907_v17 = vmul.f32 %v6327_v37, %v4859_v20  ;;  %5939 = vmatmul.mubr.msk.bf16.gmra.mrb[136].mxu1 %vm260_vm3, %v4933_v50  ;;  %v4918_v39 = vmul.f32 %v5237_v21, %v4906_v18 }
0x309d   :  { %5942 = vmatprep.mubr.msk.bf16.mxu1 %vm6580_vm0, %v6579_v0 }
0x309e   :  { %v4919_v14 = vmul.f32 %v5237_v21, %v4907_v17  ;;  %v4930_v41 = vadd.f32 %v5238_v51, %v4918_v39 }
0x30a0   :  { %v4931_v46 = vadd.f32 %v5238_v51, %v4919_v14 }
0x30a2   :  { %v4934_v53 = vpack.c.bf16 %v4931_v46, %v4930_v41 }
0x30a4   :  { %5943 = vmatmul.mubr.msk.bf16.gmra.mrb[140].mxu1 %vm260_vm3, %v4934_v53 }
0x30e6   :  { %v5001_v49 = vpop.f32.mrb[132].mxu1 }
0x30e7   :  { %v5936_v44 = vpop.f32.mrb[133].mxu1 }
0x30e8   :  { %v5003_v61 = vpop.f32.mrb[134].mxu1 }
0x30e9   :  { %v5004_v58 = vadd.f32 %v5239_v42, %v5003_v61  ;;  %v5937_v36 = vpop.f32.mrb[135].mxu1 }
0x30eb   :  { %5022 = vst [vmem:[#allocation19] sm:$0xff] %v5004_v58 }
0x316f   :  { %v5008_v62 = vpop.f32.mrb[136].mxu1 }
0x3170   :  { %v5009_v15 = vadd.f32 %v5239_v42, %v5008_v62  ;;  %v5940_v3 = vpop.f32.mrb[137].mxu1 }
0x3171   :  { %v5011_v0 = vpop.f32.mrb[138].mxu1 }
0x3172   :  { %5023 = vst [vmem:[#allocation19 + $0x8] sm:$0xff] %v5009_v15  ;;  %v5941_v19 = vpop.f32.mrb[139].mxu1 }
0x3177   :  { %v5015_v24 = vpop.f32.mrb[140].mxu1 }
0x3178   :  { %v5016_v1 = vadd.f32 %v5239_v42, %v5015_v24  ;;  %v5944_v20 = vpop.f32.mrb[141].mxu1 }
0x3179   :  { %v5018_v28 = vpop.f32.mrb[142].mxu1 }
0x317a   :  { %5024 = vst [vmem:[#allocation19 + $0x10] sm:$0xff] %v5016_v1  ;;  %v5019_v27 = vadd.f32 %v5239_v42, %v5018_v28  ;;  %v5945_v9 = vpop.f32.mrb[143].mxu1 }
0x317c   :  { %5025 = vst [vmem:[#allocation19 + $0x18] sm:$0xff] %v5019_v27 }
0x317d   :  { %6543 = shalt.err (!%p6540_p6)
}
0x317e   :  { %s8225_s28 = sld [smem:[#allocation37_spill]] }
0x3184   :  { %s6544_s29 = scalar_lea.hbm %s8225_s28, 512 }
0x3185   :  { %p6545_p7 = scmp.ne.s32.totalorder %s8225_s28, %s6544_s29  ;;  %p6548_p8 = scmp.lt.u32.totalorder %s6544_s29, %s8225_s28 }
0x3187   :  { %p6550_p9 = pnand %p6548_p8, %p6545_p7 }
0x3189   :  { %6553 = shalt.err (!%p6550_p9)
}
0x318a   :  { %5037 = dma.vmem_to_hbm [thread:$0]  %s5032_s14, 512, %s8225_s28, [#allocation6], %s6567_s25, %s6567_s25, %s6568_s8  }
0x318b   :  { %6564 = dma.done.wait [#allocation6], 512  }
0x318c   :  { %6565 = vsyncadd [#allocation6], 4294966784 }
0x318d   :  { %5041 = vsyncpa [#allocation5], 1 }
0x318e   :  { %5042 = vsyncpa [#allocation8], 1 }
0x318f   :  { %5043 = vsyncpa [#allocation11], 1 }
0x3190   :  { %5044 = vsyncpa [#allocation14], 1 }
0x3191   :  { %5045 = vsyncpa [#allocation17], 1 }
0x3192   :  { %5046 = vsyncpa [#allocation6], 1 }

</bundles_post_ra>
